<compile_context>
chip_gen: v5e
topology: v5e:2x2
jax: 0.10.0
libtpu: 0.0.40
codegen_flags: <defaults>
</compile_context>

<pallas_src>
import jax
import jax.numpy as jnp
import numpy as np
from jax.experimental import pallas as pl
from jax.experimental.pallas import tpu as pltpu

HIGHEST = jax.lax.Precision.HIGHEST  # used only by the pure-JAX reference


# ----------------------------------------------------------------------------
# helpers
# ----------------------------------------------------------------------------
def _row_tiling(rows):
    """Whole array as one block when small; else 512-row tiles (pad rows)."""
    if rows <= 1024:
        return rows, rows
    rt = 512
    return rt, ((rows + rt - 1) // rt) * rt


def _pad_rows(a, padded_rows):
    pad = padded_rows - a.shape[0]
    if pad:
        a = jnp.pad(a, ((0, pad),) + ((0, 0),) * (a.ndim - 1))
    return a


def _pick_time_block(T, B, H, budget_bytes=12 * 1024 * 1024, max_unroll=128):
    """Largest divisor of T (capped for compile time) whose double-buffered gate +
    output blocks fit the VMEM budget.  Small shapes collapse to TB=T (single grid
    step), removing ~0.35us/step overhead and per-step W_hh reloads."""
    def step_bytes(tb):
        G = 4 * H
        # 2 dirs x 2 pipeline buffers x (gate block + hseq block), f32
        return 2 * 2 * tb * B * (G + H) * 4

    best = 1
    for d in range(1, min(T, max_unroll) + 1):
        if T % d == 0 and step_bytes(d) <= budget_bytes:
            best = d
    return best


# ----------------------------------------------------------------------------
# K1: hoisted input-gate projection for BOTH directions in one big matmul
# ----------------------------------------------------------------------------
def input_gates_pallas(x_flat, w_ih_cat, b_cat):
    """x_flat: (R, Din); w_ih_cat: (Din, 8H) = [W_ih_f | W_ih_b]; b_cat: (1, 8H).
    Returns (gx_f, gx_b), each (R, 4H) (biases already folded in)."""
    R, Din = x_flat.shape
    G2 = w_ih_cat.shape[1]
    G = G2 // 2
    rt, rp = _row_tiling(R)
    x_p = _pad_rows(x_flat, rp)

    def kernel(x_ref, w_ref, b_ref, gf_ref, gb_ref):
        prod = jnp.dot(x_ref[...], w_ref[...],
                       preferred_element_type=jnp.float32) + b_ref[...]
        gf_ref[...] = prod[:, :G]   # lane split at a 128-aligned boundary (G = 4H)
        gb_ref[...] = prod[:, G:]

    gf, gb = pl.pallas_call(
        kernel,
        out_shape=(jax.ShapeDtypeStruct((rp, G), jnp.float32),
                   jax.ShapeDtypeStruct((rp, G), jnp.float32)),
        grid_spec=pltpu.PrefetchScalarGridSpec(
            num_scalar_prefetch=0,
            grid=(rp // rt,),
            in_specs=[pl.BlockSpec((rt, Din), lambda r: (r, 0)),
                      pl.BlockSpec((Din, G2), lambda r: (0, 0)),
                      pl.BlockSpec((1, G2), lambda r: (0, 0))],
            out_specs=(pl.BlockSpec((rt, G), lambda r: (r, 0)),
                       pl.BlockSpec((rt, G), lambda r: (r, 0)))),
        compiler_params=pltpu.CompilerParams(
            dimension_semantics=("parallel",)),
    )(x_p, w_ih_cat, b_cat)
    return gf[:R], gb[:R]


# ----------------------------------------------------------------------------
# K2: fused bidirectional LSTM recurrence (single pallas_call, VMEM-budgeted blocks)
# ----------------------------------------------------------------------------
def bilstm_scan_pallas(gx_f, gx_b, h0, c0, w_hh_blockdiag, *, time_block):
    """gx_f/gx_b: (T, B, 4H) time-major precomputed input gates (both stored in
    ORIGINAL time order; bwd is fed through a time-reversed index_map).
    h0/c0: (2, B, H) initial states (dir 0 = fwd, 1 = bwd).
    w_hh_blockdiag: (2H, 8H) = blockdiag(W_hh_f, W_hh_b) -> one MXU op per step.
    Returns hseq_f, hseq_b (each (T, B, H), original time order), h_n, c_n (2, B, H)."""
    T, B, G = gx_f.shape
    H = G // 4
    TB = time_block
    assert T % TB == 0
    nT = T // TB

    def kernel(gxf_ref, gxb_ref, h0_ref, c0_ref, whh_ref,
               hseqf_ref, hseqb_ref, hfin_ref, cfin_ref,
               hf_sc, cf_sc, hb_sc, cb_sc):
        @pl.when(pl.program_id(0) == 0)
        def _init():
            hf_sc[...] = h0_ref[0, :, :]
            cf_sc[...] = c0_ref[0, :, :]
            hb_sc[...] = h0_ref[1, :, :]
            cb_sc[...] = c0_ref[1, :, :]

        whh = whh_ref[...]                     # (2H, 8H), read once per grid step
        h_f, c_f = hf_sc[...], cf_sc[...]      # state carried in vregs inside the block
        h_b, c_b = hb_sc[...], cb_sc[...]

        def cell(g4, c_prev):
            # PyTorch gate order i, f, g, o along the 4H axis.
            if H % 128 == 0:
                # lane-aligned per-gate slices: only 5H columns of EUP work per step
                i_g = jax.nn.sigmoid(g4[:, 0:H])
                f_g = jax.nn.sigmoid(g4[:, H:2 * H])
                g_g = jnp.tanh(g4[:, 2 * H:3 * H])
                o_g = jax.nn.sigmoid(g4[:, 3 * H:4 * H])
            else:
                # sub-vreg gate width: two whole-tile EUP passes are cheaper
                sig = jax.nn.sigmoid(g4)
                th = jnp.tanh(g4)
                i_g, f_g, o_g = sig[:, 0:H], sig[:, H:2 * H], sig[:, 3 * H:4 * H]
                g_g = th[:, 2 * H:3 * H]
            c_new = f_g * c_prev + i_g * g_g
            h_new = o_g * jnp.tanh(c_new)
            return h_new, c_new

        # TB recurrence steps per grid iteration (static unroll; TB capped for compile).
        for i in range(TB):
            # fwd handles original time  t*TB + i
            # bwd handles original time  (nT-1-t)*TB + (TB-1-i)   (reverse order)
            # NOTE: recurrent matmul uses default (single-pass bf16) MXU precision;
            # re-validate tolerance for very long sequences.
            g = jnp.concatenate([gxf_ref[i, :, :], gxb_ref[TB - 1 - i, :, :]], axis=-1)
            g = g + jnp.dot(jnp.concatenate([h_f, h_b], axis=-1), whh,
                            preferred_element_type=jnp.float32)
            h_f, c_f = cell(g[:, :G], c_f)
            h_b, c_b = cell(g[:, G:], c_b)
            hseqf_ref[i, :, :] = h_f
            hseqb_ref[TB - 1 - i, :, :] = h_b

        if nT > 1:  # persist recurrent state only when another grid step follows
            hf_sc[...] = h_f
            cf_sc[...] = c_f
            hb_sc[...] = h_b
            cb_sc[...] = c_b

        @pl.when(pl.program_id(0) == nT - 1)
        def _fin():
            hfin_ref[0, :, :] = h_f
            hfin_ref[1, :, :] = h_b
            cfin_ref[0, :, :] = c_f
            cfin_ref[1, :, :] = c_b

    return pl.pallas_call(
        kernel,
        out_shape=(jax.ShapeDtypeStruct((T, B, H), jnp.float32),
                   jax.ShapeDtypeStruct((T, B, H), jnp.float32),
                   jax.ShapeDtypeStruct((2, B, H), jnp.float32),
                   jax.ShapeDtypeStruct((2, B, H), jnp.float32)),
        grid_spec=pltpu.PrefetchScalarGridSpec(
            num_scalar_prefetch=0,
            grid=(nT,),
            in_specs=[pl.BlockSpec((TB, B, G), lambda t: (t, 0, 0)),
                      pl.BlockSpec((TB, B, G), lambda t: (nT - 1 - t, 0, 0)),
                      pl.BlockSpec((2, B, H), lambda t: (0, 0, 0)),
                      pl.BlockSpec((2, B, H), lambda t: (0, 0, 0)),
                      pl.BlockSpec((2 * H, 8 * H), lambda t: (0, 0))],
            out_specs=(pl.BlockSpec((TB, B, H), lambda t: (t, 0, 0)),
                       pl.BlockSpec((TB, B, H), lambda t: (nT - 1 - t, 0, 0)),
                       pl.BlockSpec((2, B, H), lambda t: (0, 0, 0)),
                       pl.BlockSpec((2, B, H), lambda t: (0, 0, 0))),
            scratch_shapes=[pltpu.VMEM((B, H), jnp.float32),
                            pltpu.VMEM((B, H), jnp.float32),
                            pltpu.VMEM((B, H), jnp.float32),
                            pltpu.VMEM((B, H), jnp.float32)]),
        compiler_params=pltpu.CompilerParams(
            dimension_semantics=("arbitrary",),
            vmem_limit_bytes=32 * 1024 * 1024),
    )(gx_f, gx_b, h0, c0, w_hh_blockdiag)


# ----------------------------------------------------------------------------
# K3: output projection over all T*B rows at once (row-tiled grid)
# ----------------------------------------------------------------------------
def proj_pallas(hf_flat, hb_flat, w_f, w_b, b):
    """out = hf @ w_f + hb @ w_b + b  ;  (R, H) x2 -> (R, Dout)."""
    R, H = hf_flat.shape
    Dout = w_f.shape[1]
    rt, rp = _row_tiling(R)
    hf_p = _pad_rows(hf_flat, rp)
    hb_p = _pad_rows(hb_flat, rp)

    def kernel(hf_ref, hb_ref, wf_ref, wb_ref, b_ref, o_ref):
        o_ref[...] = (jnp.dot(hf_ref[...], wf_ref[...], preferred_element_type=jnp.float32)
                      + jnp.dot(hb_ref[...], wb_ref[...], preferred_element_type=jnp.float32)
                      + b_ref[...])

    out = pl.pallas_call(
        kernel,
        out_shape=jax.ShapeDtypeStruct((rp, Dout), jnp.float32),
        grid_spec=pltpu.PrefetchScalarGridSpec(
            num_scalar_prefetch=0,
            grid=(rp // rt,),
            in_specs=[pl.BlockSpec((rt, H), lambda r: (r, 0)),
                      pl.BlockSpec((rt, H), lambda r: (r, 0)),
                      pl.BlockSpec((H, Dout), lambda r: (0, 0)),
                      pl.BlockSpec((H, Dout), lambda r: (0, 0)),
                      pl.BlockSpec((1, Dout), lambda r: (0, 0))],
            out_specs=pl.BlockSpec((rt, Dout), lambda r: (r, 0))),
        compiler_params=pltpu.CompilerParams(
            dimension_semantics=("parallel",)),
    )(hf_p, hb_p, w_f, w_b, b)
    return out[:R]


# ----------------------------------------------------------------------------
# SingleLSTM forward (bidirectional=True, dropout=0 -> identity)
# ----------------------------------------------------------------------------
def single_lstm_forward(x, params, state=None):
    """x: (B, T, Din).  Returns (out (B, T, Din), (h_n (2, B, H), c_n (2, B, H)))."""
    B, T, Din = x.shape
    H = params['w_hh_fwd'].shape[0]
    G = 4 * H
    TB = _pick_time_block(T, B, H)

    # ---- K1: hoisted input projection, one matmul for both directions ----
    # TODO(synk): fold this transpose (and the one after K3) into BlockSpec index maps.
    x_tm = jnp.transpose(x, (1, 0, 2))                         # (T, B, Din) time-major
    w_ih_cat = jnp.concatenate([params['w_ih_fwd'], params['w_ih_bwd']], axis=1)
    b_cat = jnp.concatenate([params['b_fwd'], params['b_bwd']], axis=1)
    gx_f_flat, gx_b_flat = input_gates_pallas(x_tm.reshape(T * B, Din), w_ih_cat, b_cat)
    gx_f = gx_f_flat.reshape(T, B, G)
    gx_b = gx_b_flat.reshape(T, B, G)

    # ---- K2: fused bidirectional recurrence (block-diagonal recurrent weight) ----
    if state is None:
        h0 = jnp.zeros((2, B, H), jnp.float32)
        c0 = jnp.zeros((2, B, H), jnp.float32)
    else:
        h0, c0 = state
    zH = jnp.zeros((H, G), jnp.float32)
    w_hh_bd = jnp.concatenate(
        [jnp.concatenate([params['w_hh_fwd'], zH], axis=1),
         jnp.concatenate([zH, params['w_hh_bwd']], axis=1)], axis=0)   # (2H, 8H)
    hseq_f, hseq_b, h_n, c_n = bilstm_scan_pallas(
        gx_f, gx_b, h0, c0, w_hh_bd, time_block=TB)

    # ---- K3: projection back to Din over all rows ----
    proj_flat = proj_pallas(hseq_f.reshape(T * B, H), hseq_b.reshape(T * B, H),
                            params['proj_w'][:H], params['proj_w'][H:],
                            params['proj_b'])
    out = jnp.transpose(proj_flat.reshape(T, B, Din), (1, 0, 2))  # (B, T, Din)
    return out, (h_n, c_n)


# ----------------------------------------------------------------------------
# Pure-JAX reference (mirrors the PyTorch semantics, f32 HIGHEST precision)
# ----------------------------------------------------------------------------
def _ref_single_lstm(x, p, state=None):
    B, T, Din = x.shape
    H = p['w_hh_fwd'].shape[0]
    if state is None:
        h0 = jnp.zeros((2, B, H), jnp.float32)
        c0 = jnp.zeros((2, B, H), jnp.float32)
    else:
        h0, c0 = state
    x_tm = jnp.transpose(x, (1, 0, 2))

    def run_dir(xs, h, c, w_ih, w_hh, b):
        def step(carry, x_t):
            h, c = carry
            g = (jnp.dot(x_t, w_ih, precision=HIGHEST)
                 + jnp.dot(h, w_hh, precision=HIGHEST) + b)
            i = jax.nn.sigmoid(g[:, :H])
            f = jax.nn.sigmoid(g[:, H:2 * H])
            gg = jnp.tanh(g[:, 2 * H:3 * H])
            o = jax.nn.sigmoid(g[:, 3 * H:])
            c = f * c + i * gg
            h = o * jnp.tanh(c)
            return (h, c), h
        (h, c), hs = jax.lax.scan(step, (h, c), xs)
        return hs, h, c

    hs_f, hF, cF = run_dir(x_tm, h0[0], c0[0], p['w_ih_fwd'], p['w_hh_fwd'], p['b_fwd'])
    hs_br, hB, cB = run_dir(x_tm[::-1], h0[1], c0[1], p['w_ih_bwd'], p['w_hh_bwd'], p['b_bwd'])
    rnn_out = jnp.concatenate([hs_f, hs_br[::-1]], axis=-1)     # (T, B, 2H)
    proj = jnp.dot(rnn_out, p['proj_w'], precision=HIGHEST) + p['proj_b'][0]
    return (jnp.transpose(proj, (1, 0, 2)),
            (jnp.stack([hF, hB]), jnp.stack([cF, cB])))


# ----------------------------------------------------------------------------
# Deterministic synthetic parameters (shapes follow nn.LSTM + nn.Linear)
# ----------------------------------------------------------------------------
def init_single_lstm_params(key, input_size, hidden):
    ks = jax.random.split(key, 8)
    s = 0.1
    n = lambda k, shp: s * jax.random.normal(k, shp, jnp.float32)
    return {
        'w_ih_fwd': n(ks[0], (input_size, 4 * hidden)),   # weight_ih_l0.T
        'w_hh_fwd': n(ks[1], (hidden, 4 * hidden)),       # weight_hh_l0.T
        'b_fwd':    n(ks[2], (1, 4 * hidden)),            # b_ih + b_hh folded
        'w_ih_bwd': n(ks[3], (input_size, 4 * hidden)),
        'w_hh_bwd': n(ks[4], (hidden, 4 * hidden)),
        'b_bwd':    n(ks[5], (1, 4 * hidden)),
        'proj_w':   n(ks[6], (2 * hidden, input_size)),   # proj.weight.T
        'proj_b':   n(ks[7], (1, input_size)),
    }


if __name__ == "__main__":
    B, T, D, H = 2, 20, 16, 32      # batch, seq_len, input_size, hidden_size

    key = jax.random.PRNGKey(0)
    kx, kp, ks = jax.random.split(key, 3)
    x = jax.random.normal(kx, (B, T, D), jnp.float32)
    params = init_single_lstm_params(kp, D, H)

    fwd = jax.jit(single_lstm_forward)

    # 1) state=None (zeros), as on the first call.
    out, (h_n, c_n) = fwd(x, params)
    out = jax.block_until_ready(out)
    assert out.shape == (B, T, D), out.shape
    assert h_n.shape == (2, B, H) and c_n.shape == (2, B, H)

    ref_out, (ref_h, ref_c) = _ref_single_lstm(x, params)
    err = max(float(jnp.max(jnp.abs(out - ref_out))),
              float(jnp.max(jnp.abs(h_n - ref_h))),
              float(jnp.max(jnp.abs(c_n - ref_c))))
    # Tolerance sized for default-precision (single-pass bf16) MXU matmuls vs f32 ref.
    assert np.isfinite(err) and err < 3e-2, f"mismatch vs reference: {err}"

    # 2) with a provided (h0, c0) initial state (as when chaining segment states).
    h0 = 0.1 * jax.random.normal(ks, (2, B, H), jnp.float32)
    c0 = 0.1 * jax.random.normal(jax.random.fold_in(ks, 1), (2, B, H), jnp.float32)
    out2, (h2, c2) = fwd(x, params, (h0, c0))
    out2 = jax.block_until_ready(out2)
    ref_out2, (rh2, rc2) = _ref_single_lstm(x, params, (h0, c0))
    err2 = max(float(jnp.max(jnp.abs(out2 - ref_out2))),
               float(jnp.max(jnp.abs(h2 - rh2))),
               float(jnp.max(jnp.abs(c2 - rc2))))
    assert np.isfinite(err2) and err2 < 3e-2, f"mismatch vs reference (with state): {err2}"

    print("KERNEL_OK")
</pallas_src>

<mosaic_0001>
module attributes {stable_mosaic.version = 11 : i64} {
  func.func @kernel(%arg0: i32, %arg1: memref<40x16xf32, #tpu.memory_space<vmem>>, %arg2: memref<16x256xf32, #tpu.memory_space<vmem>>, %arg3: memref<1x256xf32, #tpu.memory_space<vmem>>, %arg4: memref<40x128xf32, #tpu.memory_space<vmem>>, %arg5: memref<40x128xf32, #tpu.memory_space<vmem>>) attributes {dimension_semantics = [#tpu.dimension_semantics<parallel>], iteration_bounds = array<i64: 1>, scalar_prefetch = 0 : i64, scratch_operands = 0 : i64, tpu.core_type = #tpu.core_type<tc>, window_params = [{transform_indices = @transform_0, window_bounds = array<i64: 40, 16>}, {pipeline_mode = #tpu.pipeline_mode<synchronous>, transform_indices = @transform_1, window_bounds = array<i64: 16, 256>}, {pipeline_mode = #tpu.pipeline_mode<synchronous>, transform_indices = @transform_2, window_bounds = array<i64: 1, 256>}, {transform_indices = @transform_3, window_bounds = array<i64: 40, 128>}, {transform_indices = @transform_4, window_bounds = array<i64: 40, 128>}]} {
    %c0 = arith.constant 0 : index
    %c0_0 = arith.constant 0 : index
    %0 = vector.load %arg1[%c0, %c0_0] : memref<40x16xf32, #tpu.memory_space<vmem>>, vector<40x16xf32>
    %c0_1 = arith.constant 0 : index
    %c0_2 = arith.constant 0 : index
    %1 = vector.load %arg2[%c0_1, %c0_2] : memref<16x256xf32, #tpu.memory_space<vmem>>, vector<16x256xf32>
    %cst = arith.constant dense<0.000000e+00> : vector<40x256xf32>
    %2 = tpu.matmul %0, %1, %cst {dimension_numbers = #tpu.dot_dimension_numbers<[1], [0], [0], [1], [0, 0, 1, 1], [], []>} : vector<40x16xf32>, vector<16x256xf32>, vector<40x256xf32> -> vector<40x256xf32>
    %c0_3 = arith.constant 0 : index
    %c0_4 = arith.constant 0 : index
    %3 = vector.load %arg3[%c0_3, %c0_4] : memref<1x256xf32, #tpu.memory_space<vmem>>, vector<1x256xf32>
    %4 = vector.broadcast %3 : vector<1x256xf32> to vector<40x256xf32>
    %5 = arith.addf %2, %4 : vector<40x256xf32>
    %6 = vector.extract_strided_slice %5 {offsets = [0, 0], sizes = [40, 128], strides = [1, 1]} : vector<40x256xf32> to vector<40x128xf32>
    %c0_5 = arith.constant 0 : index
    %c0_6 = arith.constant 0 : index
    %7 = vector.load %arg4[%c0_5, %c0_6] : memref<40x128xf32, #tpu.memory_space<vmem>>, vector<40x128xf32>
    tpu.vector_store %arg4[%c0_5, %c0_6], %6 {strides = array<i32>} : memref<40x128xf32, #tpu.memory_space<vmem>>, vector<40x128xf32>,
    %8 = vector.extract_strided_slice %5 {offsets = [0, 128], sizes = [40, 128], strides = [1, 1]} : vector<40x256xf32> to vector<40x128xf32>
    %c0_7 = arith.constant 0 : index
    %c0_8 = arith.constant 0 : index
    %9 = vector.load %arg5[%c0_7, %c0_8] : memref<40x128xf32, #tpu.memory_space<vmem>>, vector<40x128xf32>
    tpu.vector_store %arg5[%c0_7, %c0_8], %8 {strides = array<i32>} : memref<40x128xf32, #tpu.memory_space<vmem>>, vector<40x128xf32>,
    return
  }
  func.func @transform_0(%arg0: i32) -> (i32, i32) {
    %c0_i32 = arith.constant 0 : i32
    %c0_i32_0 = arith.constant 0 : i32
    return %arg0, %c0_i32 : i32, i32
  }
  func.func @transform_1(%arg0: i32) -> (i32, i32) {
    %c0_i32 = arith.constant 0 : i32
    %c0_i32_0 = arith.constant 0 : i32
    %c0_i32_1 = arith.constant 0 : i32
    return %c0_i32, %c0_i32_0 : i32, i32
  }
  func.func @transform_2(%arg0: i32) -> (i32, i32) {
    %c0_i32 = arith.constant 0 : i32
    %c0_i32_0 = arith.constant 0 : i32
    %c0_i32_1 = arith.constant 0 : i32
    return %c0_i32, %c0_i32_0 : i32, i32
  }
  func.func @transform_3(%arg0: i32) -> (i32, i32) {
    %c0_i32 = arith.constant 0 : i32
    %c0_i32_0 = arith.constant 0 : i32
    return %arg0, %c0_i32 : i32, i32
  }
  func.func @transform_4(%arg0: i32) -> (i32, i32) {
    %c0_i32 = arith.constant 0 : i32
    %c0_i32_0 = arith.constant 0 : i32
    return %arg0, %c0_i32 : i32, i32
  }
}

module attributes {stable_mosaic.version = 11 : i64} {
  func.func @kernel(%arg0: i32, %arg1: memref<40x32xf32, #tpu.memory_space<vmem>>, %arg2: memref<40x32xf32, #tpu.memory_space<vmem>>, %arg3: memref<32x16xf32, #tpu.memory_space<vmem>>, %arg4: memref<32x16xf32, #tpu.memory_space<vmem>>, %arg5: memref<1x16xf32, #tpu.memory_space<vmem>>, %arg6: memref<40x16xf32, #tpu.memory_space<vmem>>) attributes {dimension_semantics = [#tpu.dimension_semantics<parallel>], iteration_bounds = array<i64: 1>, scalar_prefetch = 0 : i64, scratch_operands = 0 : i64, tpu.core_type = #tpu.core_type<tc>, window_params = [{transform_indices = @transform_0, window_bounds = array<i64: 40, 32>}, {transform_indices = @transform_1, window_bounds = array<i64: 40, 32>}, {pipeline_mode = #tpu.pipeline_mode<synchronous>, transform_indices = @transform_2, window_bounds = array<i64: 32, 16>}, {pipeline_mode = #tpu.pipeline_mode<synchronous>, transform_indices = @transform_3, window_bounds = array<i64: 32, 16>}, {pipeline_mode = #tpu.pipeline_mode<synchronous>, transform_indices = @transform_4, window_bounds = array<i64: 1, 16>}, {transform_indices = @transform_5, window_bounds = array<i64: 40, 16>}]} {
    %c0 = arith.constant 0 : index
    %c0_0 = arith.constant 0 : index
    %0 = vector.load %arg1[%c0, %c0_0] : memref<40x32xf32, #tpu.memory_space<vmem>>, vector<40x32xf32>
    %c0_1 = arith.constant 0 : index
    %c0_2 = arith.constant 0 : index
    %1 = vector.load %arg3[%c0_1, %c0_2] : memref<32x16xf32, #tpu.memory_space<vmem>>, vector<32x16xf32>
    %cst = arith.constant dense<0.000000e+00> : vector<40x16xf32>
    %2 = tpu.matmul %0, %1, %cst {dimension_numbers = #tpu.dot_dimension_numbers<[1], [0], [0], [1], [0, 0, 1, 1], [], []>} : vector<40x32xf32>, vector<32x16xf32>, vector<40x16xf32> -> vector<40x16xf32>
    %c0_3 = arith.constant 0 : index
    %c0_4 = arith.constant 0 : index
    %3 = vector.load %arg2[%c0_3, %c0_4] : memref<40x32xf32, #tpu.memory_space<vmem>>, vector<40x32xf32>
    %c0_5 = arith.constant 0 : index
    %c0_6 = arith.constant 0 : index
    %4 = vector.load %arg4[%c0_5, %c0_6] : memref<32x16xf32, #tpu.memory_space<vmem>>, vector<32x16xf32>
    %cst_7 = arith.constant dense<0.000000e+00> : vector<40x16xf32>
    %5 = tpu.matmul %3, %4, %cst_7 {dimension_numbers = #tpu.dot_dimension_numbers<[1], [0], [0], [1], [0, 0, 1, 1], [], []>} : vector<40x32xf32>, vector<32x16xf32>, vector<40x16xf32> -> vector<40x16xf32>
    %6 = arith.addf %2, %5 : vector<40x16xf32>
    %c0_8 = arith.constant 0 : index
    %c0_9 = arith.constant 0 : index
    %7 = vector.load %arg5[%c0_8, %c0_9] : memref<1x16xf32, #tpu.memory_space<vmem>>, vector<1x16xf32>
    %8 = vector.broadcast %7 : vector<1x16xf32> to vector<40x16xf32>
    %9 = arith.addf %6, %8 : vector<40x16xf32>
    %c0_10 = arith.constant 0 : index
    %c0_11 = arith.constant 0 : index
    %10 = vector.load %arg6[%c0_10, %c0_11] : memref<40x16xf32, #tpu.memory_space<vmem>>, vector<40x16xf32>
    tpu.vector_store %arg6[%c0_10, %c0_11], %9 {strides = array<i32>} : memref<40x16xf32, #tpu.memory_space<vmem>>, vector<40x16xf32>,
    return
  }
  func.func @transform_0(%arg0: i32) -> (i32, i32) {
    %c0_i32 = arith.constant 0 : i32
    %c0_i32_0 = arith.constant 0 : i32
    return %arg0, %c0_i32 : i32, i32
  }
  func.func @transform_1(%arg0: i32) -> (i32, i32) {
    %c0_i32 = arith.constant 0 : i32
    %c0_i32_0 = arith.constant 0 : i32
    return %arg0, %c0_i32 : i32, i32
  }
  func.func @transform_2(%arg0: i32) -> (i32, i32) {
    %c0_i32 = arith.constant 0 : i32
    %c0_i32_0 = arith.constant 0 : i32
    %c0_i32_1 = arith.constant 0 : i32
    return %c0_i32, %c0_i32_0 : i32, i32
  }
  func.func @transform_3(%arg0: i32) -> (i32, i32) {
    %c0_i32 = arith.constant 0 : i32
    %c0_i32_0 = arith.constant 0 : i32
    %c0_i32_1 = arith.constant 0 : i32
    return %c0_i32, %c0_i32_0 : i32, i32
  }
  func.func @transform_4(%arg0: i32) -> (i32, i32) {
    %c0_i32 = arith.constant 0 : i32
    %c0_i32_0 = arith.constant 0 : i32
    %c0_i32_1 = arith.constant 0 : i32
    return %c0_i32, %c0_i32_0 : i32, i32
  }
  func.func @transform_5(%arg0: i32) -> (i32, i32) {
    %c0_i32 = arith.constant 0 : i32
    %c0_i32_0 = arith.constant 0 : i32
    return %arg0, %c0_i32 : i32, i32
  }
}

module attributes {stable_mosaic.version = 11 : i64} {
  func.func @kernel(%arg0: i32, %arg1: memref<20x2x128xf32, #tpu.memory_space<vmem>>, %arg2: memref<20x2x128xf32, #tpu.memory_space<vmem>>, %arg3: memref<2x2x32xf32, #tpu.memory_space<vmem>>, %arg4: memref<2x2x32xf32, #tpu.memory_space<vmem>>, %arg5: memref<64x256xf32, #tpu.memory_space<vmem>>, %arg6: memref<20x2x32xf32, #tpu.memory_space<vmem>>, %arg7: memref<20x2x32xf32, #tpu.memory_space<vmem>>, %arg8: memref<2x2x32xf32, #tpu.memory_space<vmem>>, %arg9: memref<2x2x32xf32, #tpu.memory_space<vmem>>, %arg10: memref<2x32xf32, #tpu.memory_space<vmem>>, %arg11: memref<2x32xf32, #tpu.memory_space<vmem>>, %arg12: memref<2x32xf32, #tpu.memory_space<vmem>>, %arg13: memref<2x32xf32, #tpu.memory_space<vmem>>) attributes {dimension_semantics = [#tpu.dimension_semantics<arbitrary>], iteration_bounds = array<i64: 1>, scalar_prefetch = 0 : i64, scratch_operands = 4 : i64, tpu.core_type = #tpu.core_type<tc>, window_params = [{transform_indices = @transform_0, window_bounds = array<i64: 20, 2, 128>}, {transform_indices = @transform_1, window_bounds = array<i64: 20, 2, 128>}, {pipeline_mode = #tpu.pipeline_mode<synchronous>, transform_indices = @transform_2, window_bounds = array<i64: 2, 2, 32>}, {pipeline_mode = #tpu.pipeline_mode<synchronous>, transform_indices = @transform_3, window_bounds = array<i64: 2, 2, 32>}, {pipeline_mode = #tpu.pipeline_mode<synchronous>, transform_indices = @transform_4, window_bounds = array<i64: 64, 256>}, {transform_indices = @transform_5, window_bounds = array<i64: 20, 2, 32>}, {transform_indices = @transform_6, window_bounds = array<i64: 20, 2, 32>}, {pipeline_mode = #tpu.pipeline_mode<synchronous>, transform_indices = @transform_7, window_bounds = array<i64: 2, 2, 32>}, {pipeline_mode = #tpu.pipeline_mode<synchronous>, transform_indices = @transform_8, window_bounds = array<i64: 2, 2, 32>}]} {
    %c0_i32 = arith.constant 0 : i32
    %0 = arith.cmpi eq, %arg0, %c0_i32 : i32
    %1 = arith.extui %0 : i1 to i32
    %c0_i32_0 = arith.constant 0 : i32
    %2 = arith.cmpi ne, %1, %c0_i32_0 : i32
    scf.if %2 {
      %c0_292 = arith.constant 0 : index
      %c0_293 = arith.constant 0 : index
      %c0_294 = arith.constant 0 : index
      %931 = vector.load %arg3[%c0_292, %c0_293, %c0_294] : memref<2x2x32xf32, #tpu.memory_space<vmem>>, vector<1x2x32xf32>
      %932 = vector.shape_cast %931 : vector<1x2x32xf32> to vector<2x32xf32>
      %c0_295 = arith.constant 0 : index
      %c0_296 = arith.constant 0 : index
      %933 = vector.load %arg10[%c0_295, %c0_296] : memref<2x32xf32, #tpu.memory_space<vmem>>, vector<2x32xf32>
      tpu.vector_store %arg10[%c0_295, %c0_296], %932 {strides = array<i32>} : memref<2x32xf32, #tpu.memory_space<vmem>>, vector<2x32xf32>,
      %c0_297 = arith.constant 0 : index
      %c0_298 = arith.constant 0 : index
      %c0_299 = arith.constant 0 : index
      %934 = vector.load %arg4[%c0_297, %c0_298, %c0_299] : memref<2x2x32xf32, #tpu.memory_space<vmem>>, vector<1x2x32xf32>
      %935 = vector.shape_cast %934 : vector<1x2x32xf32> to vector<2x32xf32>
      %c0_300 = arith.constant 0 : index
      %c0_301 = arith.constant 0 : index
      %936 = vector.load %arg11[%c0_300, %c0_301] : memref<2x32xf32, #tpu.memory_space<vmem>>, vector<2x32xf32>
      tpu.vector_store %arg11[%c0_300, %c0_301], %935 {strides = array<i32>} : memref<2x32xf32, #tpu.memory_space<vmem>>, vector<2x32xf32>,
      %c1_302 = arith.constant 1 : index
      %c0_303 = arith.constant 0 : index
      %c0_304 = arith.constant 0 : index
      %937 = vector.load %arg3[%c1_302, %c0_303, %c0_304] : memref<2x2x32xf32, #tpu.memory_space<vmem>>, vector<1x2x32xf32>
      %938 = vector.shape_cast %937 : vector<1x2x32xf32> to vector<2x32xf32>
      %c0_305 = arith.constant 0 : index
      %c0_306 = arith.constant 0 : index
      %939 = vector.load %arg12[%c0_305, %c0_306] : memref<2x32xf32, #tpu.memory_space<vmem>>, vector<2x32xf32>
      tpu.vector_store %arg12[%c0_305, %c0_306], %938 {strides = array<i32>} : memref<2x32xf32, #tpu.memory_space<vmem>>, vector<2x32xf32>,
      %c1_307 = arith.constant 1 : index
      %c0_308 = arith.constant 0 : index
      %c0_309 = arith.constant 0 : index
      %940 = vector.load %arg4[%c1_307, %c0_308, %c0_309] : memref<2x2x32xf32, #tpu.memory_space<vmem>>, vector<1x2x32xf32>
      %941 = vector.shape_cast %940 : vector<1x2x32xf32> to vector<2x32xf32>
      %c0_310 = arith.constant 0 : index
      %c0_311 = arith.constant 0 : index
      %942 = vector.load %arg13[%c0_310, %c0_311] : memref<2x32xf32, #tpu.memory_space<vmem>>, vector<2x32xf32>
      tpu.vector_store %arg13[%c0_310, %c0_311], %941 {strides = array<i32>} : memref<2x32xf32, #tpu.memory_space<vmem>>, vector<2x32xf32>,
    } else {
    }
    %c0 = arith.constant 0 : index
    %c0_1 = arith.constant 0 : index
    %3 = vector.load %arg5[%c0, %c0_1] : memref<64x256xf32, #tpu.memory_space<vmem>>, vector<64x256xf32>
    %c0_2 = arith.constant 0 : index
    %c0_3 = arith.constant 0 : index
    %4 = vector.load %arg10[%c0_2, %c0_3] : memref<2x32xf32, #tpu.memory_space<vmem>>, vector<2x32xf32>
    %c0_4 = arith.constant 0 : index
    %c0_5 = arith.constant 0 : index
    %5 = vector.load %arg11[%c0_4, %c0_5] : memref<2x32xf32, #tpu.memory_space<vmem>>, vector<2x32xf32>
    %c0_6 = arith.constant 0 : index
    %c0_7 = arith.constant 0 : index
    %6 = vector.load %arg12[%c0_6, %c0_7] : memref<2x32xf32, #tpu.memory_space<vmem>>, vector<2x32xf32>
    %c0_8 = arith.constant 0 : index
    %c0_9 = arith.constant 0 : index
    %7 = vector.load %arg13[%c0_8, %c0_9] : memref<2x32xf32, #tpu.memory_space<vmem>>, vector<2x32xf32>
    %c0_10 = arith.constant 0 : index
    %c0_11 = arith.constant 0 : index
    %c0_12 = arith.constant 0 : index
    %8 = vector.load %arg1[%c0_10, %c0_11, %c0_12] : memref<20x2x128xf32, #tpu.memory_space<vmem>>, vector<1x2x128xf32>
    %9 = vector.shape_cast %8 : vector<1x2x128xf32> to vector<2x128xf32>
    %c19 = arith.constant 19 : index
    %c0_13 = arith.constant 0 : index
    %c0_14 = arith.constant 0 : index
    %10 = vector.load %arg2[%c19, %c0_13, %c0_14] : memref<20x2x128xf32, #tpu.memory_space<vmem>>, vector<1x2x128xf32>
    %11 = vector.shape_cast %10 : vector<1x2x128xf32> to vector<2x128xf32>
    %12 = tpu.concatenate %9, %11 in 1 : vector<2x128xf32>, vector<2x128xf32> -> vector<2x256xf32>
    %13 = tpu.concatenate %4, %6 in 1 : vector<2x32xf32>, vector<2x32xf32> -> vector<2x64xf32>
    %cst = arith.constant dense<0.000000e+00> : vector<2x256xf32>
    %14 = tpu.matmul %13, %3, %cst {dimension_numbers = #tpu.dot_dimension_numbers<[1], [0], [0], [1], [0, 0, 1, 1], [], []>} : vector<2x64xf32>, vector<64x256xf32>, vector<2x256xf32> -> vector<2x256xf32>
    %15 = arith.addf %12, %14 : vector<2x256xf32>
    %16 = vector.extract_strided_slice %15 {offsets = [0, 0], sizes = [2, 128], strides = [1, 1]} : vector<2x256xf32> to vector<2x128xf32>
    %17 = arith.negf %16 : vector<2x128xf32>
    %18 = math.exp %17 : vector<2x128xf32>
    %cst_15 = arith.constant 1.000000e+00 : f32
    %19 = vector.broadcast %cst_15 : f32 to vector<2x128xf32>
    %20 = arith.addf %19, %18 : vector<2x128xf32>
    %21 = arith.divf %19, %20 : vector<2x128xf32>
    %22 = math.tanh %16 : vector<2x128xf32>
    %23 = vector.extract_strided_slice %21 {offsets = [0, 0], sizes = [2, 32], strides = [1, 1]} : vector<2x128xf32> to vector<2x32xf32>
    %24 = vector.extract_strided_slice %21 {offsets = [0, 32], sizes = [2, 32], strides = [1, 1]} : vector<2x128xf32> to vector<2x32xf32>
    %25 = vector.extract_strided_slice %21 {offsets = [0, 96], sizes = [2, 32], strides = [1, 1]} : vector<2x128xf32> to vector<2x32xf32>
    %26 = vector.extract_strided_slice %22 {offsets = [0, 64], sizes = [2, 32], strides = [1, 1]} : vector<2x128xf32> to vector<2x32xf32>
    %27 = arith.mulf %24, %5 : vector<2x32xf32>
    %28 = arith.mulf %23, %26 : vector<2x32xf32>
    %29 = arith.addf %27, %28 : vector<2x32xf32>
    %30 = math.tanh %29 : vector<2x32xf32>
    %31 = arith.mulf %25, %30 : vector<2x32xf32>
    %32 = vector.extract_strided_slice %15 {offsets = [0, 128], sizes = [2, 128], strides = [1, 1]} : vector<2x256xf32> to vector<2x128xf32>
    %33 = arith.negf %32 : vector<2x128xf32>
    %34 = math.exp %33 : vector<2x128xf32>
    %cst_16 = arith.constant 1.000000e+00 : f32
    %35 = vector.broadcast %cst_16 : f32 to vector<2x128xf32>
    %36 = arith.addf %35, %34 : vector<2x128xf32>
    %37 = arith.divf %35, %36 : vector<2x128xf32>
    %38 = math.tanh %32 : vector<2x128xf32>
    %39 = vector.extract_strided_slice %37 {offsets = [0, 0], sizes = [2, 32], strides = [1, 1]} : vector<2x128xf32> to vector<2x32xf32>
    %40 = vector.extract_strided_slice %37 {offsets = [0, 32], sizes = [2, 32], strides = [1, 1]} : vector<2x128xf32> to vector<2x32xf32>
    %41 = vector.extract_strided_slice %37 {offsets = [0, 96], sizes = [2, 32], strides = [1, 1]} : vector<2x128xf32> to vector<2x32xf32>
    %42 = vector.extract_strided_slice %38 {offsets = [0, 64], sizes = [2, 32], strides = [1, 1]} : vector<2x128xf32> to vector<2x32xf32>
    %43 = arith.mulf %40, %7 : vector<2x32xf32>
    %44 = arith.mulf %39, %42 : vector<2x32xf32>
    %45 = arith.addf %43, %44 : vector<2x32xf32>
    %46 = math.tanh %45 : vector<2x32xf32>
    %47 = arith.mulf %41, %46 : vector<2x32xf32>
    %c0_17 = arith.constant 0 : index
    %c0_18 = arith.constant 0 : index
    %c0_19 = arith.constant 0 : index
    %48 = vector.load %arg6[%c0_17, %c0_18, %c0_19] : memref<20x2x32xf32, #tpu.memory_space<vmem>>, vector<1x2x32xf32>
    %49 = vector.shape_cast %48 : vector<1x2x32xf32> to vector<2x32xf32>
    %50 = vector.shape_cast %31 : vector<2x32xf32> to vector<1x2x32xf32>
    tpu.vector_store %arg6[%c0_17, %c0_18, %c0_19], %50 {strides = array<i32>} : memref<20x2x32xf32, #tpu.memory_space<vmem>>, vector<1x2x32xf32>,
    %c19_20 = arith.constant 19 : index
    %c0_21 = arith.constant 0 : index
    %c0_22 = arith.constant 0 : index
    %51 = vector.load %arg7[%c19_20, %c0_21, %c0_22] : memref<20x2x32xf32, #tpu.memory_space<vmem>>, vector<1x2x32xf32>
    %52 = vector.shape_cast %51 : vector<1x2x32xf32> to vector<2x32xf32>
    %53 = vector.shape_cast %47 : vector<2x32xf32> to vector<1x2x32xf32>
    tpu.vector_store %arg7[%c19_20, %c0_21, %c0_22], %53 {strides = array<i32>} : memref<20x2x32xf32, #tpu.memory_space<vmem>>, vector<1x2x32xf32>,
    %c1 = arith.constant 1 : index
    %c0_23 = arith.constant 0 : index
    %c0_24 = arith.constant 0 : index
    %54 = vector.load %arg1[%c1, %c0_23, %c0_24] : memref<20x2x128xf32, #tpu.memory_space<vmem>>, vector<1x2x128xf32>
    %55 = vector.shape_cast %54 : vector<1x2x128xf32> to vector<2x128xf32>
    %c18 = arith.constant 18 : index
    %c0_25 = arith.constant 0 : index
    %c0_26 = arith.constant 0 : index
    %56 = vector.load %arg2[%c18, %c0_25, %c0_26] : memref<20x2x128xf32, #tpu.memory_space<vmem>>, vector<1x2x128xf32>
    %57 = vector.shape_cast %56 : vector<1x2x128xf32> to vector<2x128xf32>
    %58 = tpu.concatenate %55, %57 in 1 : vector<2x128xf32>, vector<2x128xf32> -> vector<2x256xf32>
    %59 = tpu.concatenate %31, %47 in 1 : vector<2x32xf32>, vector<2x32xf32> -> vector<2x64xf32>
    %cst_27 = arith.constant dense<0.000000e+00> : vector<2x256xf32>
    %60 = tpu.matmul %59, %3, %cst_27 {dimension_numbers = #tpu.dot_dimension_numbers<[1], [0], [0], [1], [0, 0, 1, 1], [], []>} : vector<2x64xf32>, vector<64x256xf32>, vector<2x256xf32> -> vector<2x256xf32>
    %61 = arith.addf %58, %60 : vector<2x256xf32>
    %62 = vector.extract_strided_slice %61 {offsets = [0, 0], sizes = [2, 128], strides = [1, 1]} : vector<2x256xf32> to vector<2x128xf32>
    %63 = arith.negf %62 : vector<2x128xf32>
    %64 = math.exp %63 : vector<2x128xf32>
    %cst_28 = arith.constant 1.000000e+00 : f32
    %65 = vector.broadcast %cst_28 : f32 to vector<2x128xf32>
    %66 = arith.addf %65, %64 : vector<2x128xf32>
    %67 = arith.divf %65, %66 : vector<2x128xf32>
    %68 = math.tanh %62 : vector<2x128xf32>
    %69 = vector.extract_strided_slice %67 {offsets = [0, 0], sizes = [2, 32], strides = [1, 1]} : vector<2x128xf32> to vector<2x32xf32>
    %70 = vector.extract_strided_slice %67 {offsets = [0, 32], sizes = [2, 32], strides = [1, 1]} : vector<2x128xf32> to vector<2x32xf32>
    %71 = vector.extract_strided_slice %67 {offsets = [0, 96], sizes = [2, 32], strides = [1, 1]} : vector<2x128xf32> to vector<2x32xf32>
    %72 = vector.extract_strided_slice %68 {offsets = [0, 64], sizes = [2, 32], strides = [1, 1]} : vector<2x128xf32> to vector<2x32xf32>
    %73 = arith.mulf %70, %29 : vector<2x32xf32>
    %74 = arith.mulf %69, %72 : vector<2x32xf32>
    %75 = arith.addf %73, %74 : vector<2x32xf32>
    %76 = math.tanh %75 : vector<2x32xf32>
    %77 = arith.mulf %71, %76 : vector<2x32xf32>
    %78 = vector.extract_strided_slice %61 {offsets = [0, 128], sizes = [2, 128], strides = [1, 1]} : vector<2x256xf32> to vector<2x128xf32>
    %79 = arith.negf %78 : vector<2x128xf32>
    %80 = math.exp %79 : vector<2x128xf32>
    %cst_29 = arith.constant 1.000000e+00 : f32
    %81 = vector.broadcast %cst_29 : f32 to vector<2x128xf32>
    %82 = arith.addf %81, %80 : vector<2x128xf32>
    %83 = arith.divf %81, %82 : vector<2x128xf32>
    %84 = math.tanh %78 : vector<2x128xf32>
    %85 = vector.extract_strided_slice %83 {offsets = [0, 0], sizes = [2, 32], strides = [1, 1]} : vector<2x128xf32> to vector<2x32xf32>
    %86 = vector.extract_strided_slice %83 {offsets = [0, 32], sizes = [2, 32], strides = [1, 1]} : vector<2x128xf32> to vector<2x32xf32>
    %87 = vector.extract_strided_slice %83 {offsets = [0, 96], sizes = [2, 32], strides = [1, 1]} : vector<2x128xf32> to vector<2x32xf32>
    %88 = vector.extract_strided_slice %84 {offsets = [0, 64], sizes = [2, 32], strides = [1, 1]} : vector<2x128xf32> to vector<2x32xf32>
    %89 = arith.mulf %86, %45 : vector<2x32xf32>
    %90 = arith.mulf %85, %88 : vector<2x32xf32>
    %91 = arith.addf %89, %90 : vector<2x32xf32>
    %92 = math.tanh %91 : vector<2x32xf32>
    %93 = arith.mulf %87, %92 : vector<2x32xf32>
    %c1_30 = arith.constant 1 : index
    %c0_31 = arith.constant 0 : index
    %c0_32 = arith.constant 0 : index
    %94 = vector.load %arg6[%c1_30, %c0_31, %c0_32] : memref<20x2x32xf32, #tpu.memory_space<vmem>>, vector<1x2x32xf32>
    %95 = vector.shape_cast %94 : vector<1x2x32xf32> to vector<2x32xf32>
    %96 = vector.shape_cast %77 : vector<2x32xf32> to vector<1x2x32xf32>
    tpu.vector_store %arg6[%c1_30, %c0_31, %c0_32], %96 {strides = array<i32>} : memref<20x2x32xf32, #tpu.memory_space<vmem>>, vector<1x2x32xf32>,
    %c18_33 = arith.constant 18 : index
    %c0_34 = arith.constant 0 : index
    %c0_35 = arith.constant 0 : index
    %97 = vector.load %arg7[%c18_33, %c0_34, %c0_35] : memref<20x2x32xf32, #tpu.memory_space<vmem>>, vector<1x2x32xf32>
    %98 = vector.shape_cast %97 : vector<1x2x32xf32> to vector<2x32xf32>
    %99 = vector.shape_cast %93 : vector<2x32xf32> to vector<1x2x32xf32>
    tpu.vector_store %arg7[%c18_33, %c0_34, %c0_35], %99 {strides = array<i32>} : memref<20x2x32xf32, #tpu.memory_space<vmem>>, vector<1x2x32xf32>,
    %c2 = arith.constant 2 : index
    %c0_36 = arith.constant 0 : index
    %c0_37 = arith.constant 0 : index
    %100 = vector.load %arg1[%c2, %c0_36, %c0_37] : memref<20x2x128xf32, #tpu.memory_space<vmem>>, vector<1x2x128xf32>
    %101 = vector.shape_cast %100 : vector<1x2x128xf32> to vector<2x128xf32>
    %c17 = arith.constant 17 : index
    %c0_38 = arith.constant 0 : index
    %c0_39 = arith.constant 0 : index
    %102 = vector.load %arg2[%c17, %c0_38, %c0_39] : memref<20x2x128xf32, #tpu.memory_space<vmem>>, vector<1x2x128xf32>
    %103 = vector.shape_cast %102 : vector<1x2x128xf32> to vector<2x128xf32>
    %104 = tpu.concatenate %101, %103 in 1 : vector<2x128xf32>, vector<2x128xf32> -> vector<2x256xf32>
    %105 = tpu.concatenate %77, %93 in 1 : vector<2x32xf32>, vector<2x32xf32> -> vector<2x64xf32>
    %cst_40 = arith.constant dense<0.000000e+00> : vector<2x256xf32>
    %106 = tpu.matmul %105, %3, %cst_40 {dimension_numbers = #tpu.dot_dimension_numbers<[1], [0], [0], [1], [0, 0, 1, 1], [], []>} : vector<2x64xf32>, vector<64x256xf32>, vector<2x256xf32> -> vector<2x256xf32>
    %107 = arith.addf %104, %106 : vector<2x256xf32>
    %108 = vector.extract_strided_slice %107 {offsets = [0, 0], sizes = [2, 128], strides = [1, 1]} : vector<2x256xf32> to vector<2x128xf32>
    %109 = arith.negf %108 : vector<2x128xf32>
    %110 = math.exp %109 : vector<2x128xf32>
    %cst_41 = arith.constant 1.000000e+00 : f32
    %111 = vector.broadcast %cst_41 : f32 to vector<2x128xf32>
    %112 = arith.addf %111, %110 : vector<2x128xf32>
    %113 = arith.divf %111, %112 : vector<2x128xf32>
    %114 = math.tanh %108 : vector<2x128xf32>
    %115 = vector.extract_strided_slice %113 {offsets = [0, 0], sizes = [2, 32], strides = [1, 1]} : vector<2x128xf32> to vector<2x32xf32>
    %116 = vector.extract_strided_slice %113 {offsets = [0, 32], sizes = [2, 32], strides = [1, 1]} : vector<2x128xf32> to vector<2x32xf32>
    %117 = vector.extract_strided_slice %113 {offsets = [0, 96], sizes = [2, 32], strides = [1, 1]} : vector<2x128xf32> to vector<2x32xf32>
    %118 = vector.extract_strided_slice %114 {offsets = [0, 64], sizes = [2, 32], strides = [1, 1]} : vector<2x128xf32> to vector<2x32xf32>
    %119 = arith.mulf %116, %75 : vector<2x32xf32>
    %120 = arith.mulf %115, %118 : vector<2x32xf32>
    %121 = arith.addf %119, %120 : vector<2x32xf32>
    %122 = math.tanh %121 : vector<2x32xf32>
    %123 = arith.mulf %117, %122 : vector<2x32xf32>
    %124 = vector.extract_strided_slice %107 {offsets = [0, 128], sizes = [2, 128], strides = [1, 1]} : vector<2x256xf32> to vector<2x128xf32>
    %125 = arith.negf %124 : vector<2x128xf32>
    %126 = math.exp %125 : vector<2x128xf32>
    %cst_42 = arith.constant 1.000000e+00 : f32
    %127 = vector.broadcast %cst_42 : f32 to vector<2x128xf32>
    %128 = arith.addf %127, %126 : vector<2x128xf32>
    %129 = arith.divf %127, %128 : vector<2x128xf32>
    %130 = math.tanh %124 : vector<2x128xf32>
    %131 = vector.extract_strided_slice %129 {offsets = [0, 0], sizes = [2, 32], strides = [1, 1]} : vector<2x128xf32> to vector<2x32xf32>
    %132 = vector.extract_strided_slice %129 {offsets = [0, 32], sizes = [2, 32], strides = [1, 1]} : vector<2x128xf32> to vector<2x32xf32>
    %133 = vector.extract_strided_slice %129 {offsets = [0, 96], sizes = [2, 32], strides = [1, 1]} : vector<2x128xf32> to vector<2x32xf32>
    %134 = vector.extract_strided_slice %130 {offsets = [0, 64], sizes = [2, 32], strides = [1, 1]} : vector<2x128xf32> to vector<2x32xf32>
    %135 = arith.mulf %132, %91 : vector<2x32xf32>
    %136 = arith.mulf %131, %134 : vector<2x32xf32>
    %137 = arith.addf %135, %136 : vector<2x32xf32>
    %138 = math.tanh %137 : vector<2x32xf32>
    %139 = arith.mulf %133, %138 : vector<2x32xf32>
    %c2_43 = arith.constant 2 : index
    %c0_44 = arith.constant 0 : index
    %c0_45 = arith.constant 0 : index
    %140 = vector.load %arg6[%c2_43, %c0_44, %c0_45] : memref<20x2x32xf32, #tpu.memory_space<vmem>>, vector<1x2x32xf32>
    %141 = vector.shape_cast %140 : vector<1x2x32xf32> to vector<2x32xf32>
    %142 = vector.shape_cast %123 : vector<2x32xf32> to vector<1x2x32xf32>
    tpu.vector_store %arg6[%c2_43, %c0_44, %c0_45], %142 {strides = array<i32>} : memref<20x2x32xf32, #tpu.memory_space<vmem>>, vector<1x2x32xf32>,
    %c17_46 = arith.constant 17 : index
    %c0_47 = arith.constant 0 : index
    %c0_48 = arith.constant 0 : index
    %143 = vector.load %arg7[%c17_46, %c0_47, %c0_48] : memref<20x2x32xf32, #tpu.memory_space<vmem>>, vector<1x2x32xf32>
    %144 = vector.shape_cast %143 : vector<1x2x32xf32> to vector<2x32xf32>
    %145 = vector.shape_cast %139 : vector<2x32xf32> to vector<1x2x32xf32>
    tpu.vector_store %arg7[%c17_46, %c0_47, %c0_48], %145 {strides = array<i32>} : memref<20x2x32xf32, #tpu.memory_space<vmem>>, vector<1x2x32xf32>,
    %c3 = arith.constant 3 : index
    %c0_49 = arith.constant 0 : index
    %c0_50 = arith.constant 0 : index
    %146 = vector.load %arg1[%c3, %c0_49, %c0_50] : memref<20x2x128xf32, #tpu.memory_space<vmem>>, vector<1x2x128xf32>
    %147 = vector.shape_cast %146 : vector<1x2x128xf32> to vector<2x128xf32>
    %c16 = arith.constant 16 : index
    %c0_51 = arith.constant 0 : index
    %c0_52 = arith.constant 0 : index
    %148 = vector.load %arg2[%c16, %c0_51, %c0_52] : memref<20x2x128xf32, #tpu.memory_space<vmem>>, vector<1x2x128xf32>
    %149 = vector.shape_cast %148 : vector<1x2x128xf32> to vector<2x128xf32>
    %150 = tpu.concatenate %147, %149 in 1 : vector<2x128xf32>, vector<2x128xf32> -> vector<2x256xf32>
    %151 = tpu.concatenate %123, %139 in 1 : vector<2x32xf32>, vector<2x32xf32> -> vector<2x64xf32>
    %cst_53 = arith.constant dense<0.000000e+00> : vector<2x256xf32>
    %152 = tpu.matmul %151, %3, %cst_53 {dimension_numbers = #tpu.dot_dimension_numbers<[1], [0], [0], [1], [0, 0, 1, 1], [], []>} : vector<2x64xf32>, vector<64x256xf32>, vector<2x256xf32> -> vector<2x256xf32>
    %153 = arith.addf %150, %152 : vector<2x256xf32>
    %154 = vector.extract_strided_slice %153 {offsets = [0, 0], sizes = [2, 128], strides = [1, 1]} : vector<2x256xf32> to vector<2x128xf32>
    %155 = arith.negf %154 : vector<2x128xf32>
    %156 = math.exp %155 : vector<2x128xf32>
    %cst_54 = arith.constant 1.000000e+00 : f32
    %157 = vector.broadcast %cst_54 : f32 to vector<2x128xf32>
    %158 = arith.addf %157, %156 : vector<2x128xf32>
    %159 = arith.divf %157, %158 : vector<2x128xf32>
    %160 = math.tanh %154 : vector<2x128xf32>
    %161 = vector.extract_strided_slice %159 {offsets = [0, 0], sizes = [2, 32], strides = [1, 1]} : vector<2x128xf32> to vector<2x32xf32>
    %162 = vector.extract_strided_slice %159 {offsets = [0, 32], sizes = [2, 32], strides = [1, 1]} : vector<2x128xf32> to vector<2x32xf32>
    %163 = vector.extract_strided_slice %159 {offsets = [0, 96], sizes = [2, 32], strides = [1, 1]} : vector<2x128xf32> to vector<2x32xf32>
    %164 = vector.extract_strided_slice %160 {offsets = [0, 64], sizes = [2, 32], strides = [1, 1]} : vector<2x128xf32> to vector<2x32xf32>
    %165 = arith.mulf %162, %121 : vector<2x32xf32>
    %166 = arith.mulf %161, %164 : vector<2x32xf32>
    %167 = arith.addf %165, %166 : vector<2x32xf32>
    %168 = math.tanh %167 : vector<2x32xf32>
    %169 = arith.mulf %163, %168 : vector<2x32xf32>
    %170 = vector.extract_strided_slice %153 {offsets = [0, 128], sizes = [2, 128], strides = [1, 1]} : vector<2x256xf32> to vector<2x128xf32>
    %171 = arith.negf %170 : vector<2x128xf32>
    %172 = math.exp %171 : vector<2x128xf32>
    %cst_55 = arith.constant 1.000000e+00 : f32
    %173 = vector.broadcast %cst_55 : f32 to vector<2x128xf32>
    %174 = arith.addf %173, %172 : vector<2x128xf32>
    %175 = arith.divf %173, %174 : vector<2x128xf32>
    %176 = math.tanh %170 : vector<2x128xf32>
    %177 = vector.extract_strided_slice %175 {offsets = [0, 0], sizes = [2, 32], strides = [1, 1]} : vector<2x128xf32> to vector<2x32xf32>
    %178 = vector.extract_strided_slice %175 {offsets = [0, 32], sizes = [2, 32], strides = [1, 1]} : vector<2x128xf32> to vector<2x32xf32>
    %179 = vector.extract_strided_slice %175 {offsets = [0, 96], sizes = [2, 32], strides = [1, 1]} : vector<2x128xf32> to vector<2x32xf32>
    %180 = vector.extract_strided_slice %176 {offsets = [0, 64], sizes = [2, 32], strides = [1, 1]} : vector<2x128xf32> to vector<2x32xf32>
    %181 = arith.mulf %178, %137 : vector<2x32xf32>
    %182 = arith.mulf %177, %180 : vector<2x32xf32>
    %183 = arith.addf %181, %182 : vector<2x32xf32>
    %184 = math.tanh %183 : vector<2x32xf32>
    %185 = arith.mulf %179, %184 : vector<2x32xf32>
    %c3_56 = arith.constant 3 : index
    %c0_57 = arith.constant 0 : index
    %c0_58 = arith.constant 0 : index
    %186 = vector.load %arg6[%c3_56, %c0_57, %c0_58] : memref<20x2x32xf32, #tpu.memory_space<vmem>>, vector<1x2x32xf32>
    %187 = vector.shape_cast %186 : vector<1x2x32xf32> to vector<2x32xf32>
    %188 = vector.shape_cast %169 : vector<2x32xf32> to vector<1x2x32xf32>
    tpu.vector_store %arg6[%c3_56, %c0_57, %c0_58], %188 {strides = array<i32>} : memref<20x2x32xf32, #tpu.memory_space<vmem>>, vector<1x2x32xf32>,
    %c16_59 = arith.constant 16 : index
    %c0_60 = arith.constant 0 : index
    %c0_61 = arith.constant 0 : index
    %189 = vector.load %arg7[%c16_59, %c0_60, %c0_61] : memref<20x2x32xf32, #tpu.memory_space<vmem>>, vector<1x2x32xf32>
    %190 = vector.shape_cast %189 : vector<1x2x32xf32> to vector<2x32xf32>
    %191 = vector.shape_cast %185 : vector<2x32xf32> to vector<1x2x32xf32>
    tpu.vector_store %arg7[%c16_59, %c0_60, %c0_61], %191 {strides = array<i32>} : memref<20x2x32xf32, #tpu.memory_space<vmem>>, vector<1x2x32xf32>,
    %c4 = arith.constant 4 : index
    %c0_62 = arith.constant 0 : index
    %c0_63 = arith.constant 0 : index
    %192 = vector.load %arg1[%c4, %c0_62, %c0_63] : memref<20x2x128xf32, #tpu.memory_space<vmem>>, vector<1x2x128xf32>
    %193 = vector.shape_cast %192 : vector<1x2x128xf32> to vector<2x128xf32>
    %c15 = arith.constant 15 : index
    %c0_64 = arith.constant 0 : index
    %c0_65 = arith.constant 0 : index
    %194 = vector.load %arg2[%c15, %c0_64, %c0_65] : memref<20x2x128xf32, #tpu.memory_space<vmem>>, vector<1x2x128xf32>
    %195 = vector.shape_cast %194 : vector<1x2x128xf32> to vector<2x128xf32>
    %196 = tpu.concatenate %193, %195 in 1 : vector<2x128xf32>, vector<2x128xf32> -> vector<2x256xf32>
    %197 = tpu.concatenate %169, %185 in 1 : vector<2x32xf32>, vector<2x32xf32> -> vector<2x64xf32>
    %cst_66 = arith.constant dense<0.000000e+00> : vector<2x256xf32>
    %198 = tpu.matmul %197, %3, %cst_66 {dimension_numbers = #tpu.dot_dimension_numbers<[1], [0], [0], [1], [0, 0, 1, 1], [], []>} : vector<2x64xf32>, vector<64x256xf32>, vector<2x256xf32> -> vector<2x256xf32>
    %199 = arith.addf %196, %198 : vector<2x256xf32>
    %200 = vector.extract_strided_slice %199 {offsets = [0, 0], sizes = [2, 128], strides = [1, 1]} : vector<2x256xf32> to vector<2x128xf32>
    %201 = arith.negf %200 : vector<2x128xf32>
    %202 = math.exp %201 : vector<2x128xf32>
    %cst_67 = arith.constant 1.000000e+00 : f32
    %203 = vector.broadcast %cst_67 : f32 to vector<2x128xf32>
    %204 = arith.addf %203, %202 : vector<2x128xf32>
    %205 = arith.divf %203, %204 : vector<2x128xf32>
    %206 = math.tanh %200 : vector<2x128xf32>
    %207 = vector.extract_strided_slice %205 {offsets = [0, 0], sizes = [2, 32], strides = [1, 1]} : vector<2x128xf32> to vector<2x32xf32>
    %208 = vector.extract_strided_slice %205 {offsets = [0, 32], sizes = [2, 32], strides = [1, 1]} : vector<2x128xf32> to vector<2x32xf32>
    %209 = vector.extract_strided_slice %205 {offsets = [0, 96], sizes = [2, 32], strides = [1, 1]} : vector<2x128xf32> to vector<2x32xf32>
    %210 = vector.extract_strided_slice %206 {offsets = [0, 64], sizes = [2, 32], strides = [1, 1]} : vector<2x128xf32> to vector<2x32xf32>
    %211 = arith.mulf %208, %167 : vector<2x32xf32>
    %212 = arith.mulf %207, %210 : vector<2x32xf32>
    %213 = arith.addf %211, %212 : vector<2x32xf32>
    %214 = math.tanh %213 : vector<2x32xf32>
    %215 = arith.mulf %209, %214 : vector<2x32xf32>
    %216 = vector.extract_strided_slice %199 {offsets = [0, 128], sizes = [2, 128], strides = [1, 1]} : vector<2x256xf32> to vector<2x128xf32>
    %217 = arith.negf %216 : vector<2x128xf32>
    %218 = math.exp %217 : vector<2x128xf32>
    %cst_68 = arith.constant 1.000000e+00 : f32
    %219 = vector.broadcast %cst_68 : f32 to vector<2x128xf32>
    %220 = arith.addf %219, %218 : vector<2x128xf32>
    %221 = arith.divf %219, %220 : vector<2x128xf32>
    %222 = math.tanh %216 : vector<2x128xf32>
    %223 = vector.extract_strided_slice %221 {offsets = [0, 0], sizes = [2, 32], strides = [1, 1]} : vector<2x128xf32> to vector<2x32xf32>
    %224 = vector.extract_strided_slice %221 {offsets = [0, 32], sizes = [2, 32], strides = [1, 1]} : vector<2x128xf32> to vector<2x32xf32>
    %225 = vector.extract_strided_slice %221 {offsets = [0, 96], sizes = [2, 32], strides = [1, 1]} : vector<2x128xf32> to vector<2x32xf32>
    %226 = vector.extract_strided_slice %222 {offsets = [0, 64], sizes = [2, 32], strides = [1, 1]} : vector<2x128xf32> to vector<2x32xf32>
    %227 = arith.mulf %224, %183 : vector<2x32xf32>
    %228 = arith.mulf %223, %226 : vector<2x32xf32>
    %229 = arith.addf %227, %228 : vector<2x32xf32>
    %230 = math.tanh %229 : vector<2x32xf32>
    %231 = arith.mulf %225, %230 : vector<2x32xf32>
    %c4_69 = arith.constant 4 : index
    %c0_70 = arith.constant 0 : index
    %c0_71 = arith.constant 0 : index
    %232 = vector.load %arg6[%c4_69, %c0_70, %c0_71] : memref<20x2x32xf32, #tpu.memory_space<vmem>>, vector<1x2x32xf32>
    %233 = vector.shape_cast %232 : vector<1x2x32xf32> to vector<2x32xf32>
    %234 = vector.shape_cast %215 : vector<2x32xf32> to vector<1x2x32xf32>
    tpu.vector_store %arg6[%c4_69, %c0_70, %c0_71], %234 {strides = array<i32>} : memref<20x2x32xf32, #tpu.memory_space<vmem>>, vector<1x2x32xf32>,
    %c15_72 = arith.constant 15 : index
    %c0_73 = arith.constant 0 : index
    %c0_74 = arith.constant 0 : index
    %235 = vector.load %arg7[%c15_72, %c0_73, %c0_74] : memref<20x2x32xf32, #tpu.memory_space<vmem>>, vector<1x2x32xf32>
    %236 = vector.shape_cast %235 : vector<1x2x32xf32> to vector<2x32xf32>
    %237 = vector.shape_cast %231 : vector<2x32xf32> to vector<1x2x32xf32>
    tpu.vector_store %arg7[%c15_72, %c0_73, %c0_74], %237 {strides = array<i32>} : memref<20x2x32xf32, #tpu.memory_space<vmem>>, vector<1x2x32xf32>,
    %c5 = arith.constant 5 : index
    %c0_75 = arith.constant 0 : index
    %c0_76 = arith.constant 0 : index
    %238 = vector.load %arg1[%c5, %c0_75, %c0_76] : memref<20x2x128xf32, #tpu.memory_space<vmem>>, vector<1x2x128xf32>
    %239 = vector.shape_cast %238 : vector<1x2x128xf32> to vector<2x128xf32>
    %c14 = arith.constant 14 : index
    %c0_77 = arith.constant 0 : index
    %c0_78 = arith.constant 0 : index
    %240 = vector.load %arg2[%c14, %c0_77, %c0_78] : memref<20x2x128xf32, #tpu.memory_space<vmem>>, vector<1x2x128xf32>
    %241 = vector.shape_cast %240 : vector<1x2x128xf32> to vector<2x128xf32>
    %242 = tpu.concatenate %239, %241 in 1 : vector<2x128xf32>, vector<2x128xf32> -> vector<2x256xf32>
    %243 = tpu.concatenate %215, %231 in 1 : vector<2x32xf32>, vector<2x32xf32> -> vector<2x64xf32>
    %cst_79 = arith.constant dense<0.000000e+00> : vector<2x256xf32>
    %244 = tpu.matmul %243, %3, %cst_79 {dimension_numbers = #tpu.dot_dimension_numbers<[1], [0], [0], [1], [0, 0, 1, 1], [], []>} : vector<2x64xf32>, vector<64x256xf32>, vector<2x256xf32> -> vector<2x256xf32>
    %245 = arith.addf %242, %244 : vector<2x256xf32>
    %246 = vector.extract_strided_slice %245 {offsets = [0, 0], sizes = [2, 128], strides = [1, 1]} : vector<2x256xf32> to vector<2x128xf32>
    %247 = arith.negf %246 : vector<2x128xf32>
    %248 = math.exp %247 : vector<2x128xf32>
    %cst_80 = arith.constant 1.000000e+00 : f32
    %249 = vector.broadcast %cst_80 : f32 to vector<2x128xf32>
    %250 = arith.addf %249, %248 : vector<2x128xf32>
    %251 = arith.divf %249, %250 : vector<2x128xf32>
    %252 = math.tanh %246 : vector<2x128xf32>
    %253 = vector.extract_strided_slice %251 {offsets = [0, 0], sizes = [2, 32], strides = [1, 1]} : vector<2x128xf32> to vector<2x32xf32>
    %254 = vector.extract_strided_slice %251 {offsets = [0, 32], sizes = [2, 32], strides = [1, 1]} : vector<2x128xf32> to vector<2x32xf32>
    %255 = vector.extract_strided_slice %251 {offsets = [0, 96], sizes = [2, 32], strides = [1, 1]} : vector<2x128xf32> to vector<2x32xf32>
    %256 = vector.extract_strided_slice %252 {offsets = [0, 64], sizes = [2, 32], strides = [1, 1]} : vector<2x128xf32> to vector<2x32xf32>
    %257 = arith.mulf %254, %213 : vector<2x32xf32>
    %258 = arith.mulf %253, %256 : vector<2x32xf32>
    %259 = arith.addf %257, %258 : vector<2x32xf32>
    %260 = math.tanh %259 : vector<2x32xf32>
    %261 = arith.mulf %255, %260 : vector<2x32xf32>
    %262 = vector.extract_strided_slice %245 {offsets = [0, 128], sizes = [2, 128], strides = [1, 1]} : vector<2x256xf32> to vector<2x128xf32>
    %263 = arith.negf %262 : vector<2x128xf32>
    %264 = math.exp %263 : vector<2x128xf32>
    %cst_81 = arith.constant 1.000000e+00 : f32
    %265 = vector.broadcast %cst_81 : f32 to vector<2x128xf32>
    %266 = arith.addf %265, %264 : vector<2x128xf32>
    %267 = arith.divf %265, %266 : vector<2x128xf32>
    %268 = math.tanh %262 : vector<2x128xf32>
    %269 = vector.extract_strided_slice %267 {offsets = [0, 0], sizes = [2, 32], strides = [1, 1]} : vector<2x128xf32> to vector<2x32xf32>
    %270 = vector.extract_strided_slice %267 {offsets = [0, 32], sizes = [2, 32], strides = [1, 1]} : vector<2x128xf32> to vector<2x32xf32>
    %271 = vector.extract_strided_slice %267 {offsets = [0, 96], sizes = [2, 32], strides = [1, 1]} : vector<2x128xf32> to vector<2x32xf32>
    %272 = vector.extract_strided_slice %268 {offsets = [0, 64], sizes = [2, 32], strides = [1, 1]} : vector<2x128xf32> to vector<2x32xf32>
    %273 = arith.mulf %270, %229 : vector<2x32xf32>
    %274 = arith.mulf %269, %272 : vector<2x32xf32>
    %275 = arith.addf %273, %274 : vector<2x32xf32>
    %276 = math.tanh %275 : vector<2x32xf32>
    %277 = arith.mulf %271, %276 : vector<2x32xf32>
    %c5_82 = arith.constant 5 : index
    %c0_83 = arith.constant 0 : index
    %c0_84 = arith.constant 0 : index
    %278 = vector.load %arg6[%c5_82, %c0_83, %c0_84] : memref<20x2x32xf32, #tpu.memory_space<vmem>>, vector<1x2x32xf32>
    %279 = vector.shape_cast %278 : vector<1x2x32xf32> to vector<2x32xf32>
    %280 = vector.shape_cast %261 : vector<2x32xf32> to vector<1x2x32xf32>
    tpu.vector_store %arg6[%c5_82, %c0_83, %c0_84], %280 {strides = array<i32>} : memref<20x2x32xf32, #tpu.memory_space<vmem>>, vector<1x2x32xf32>,
    %c14_85 = arith.constant 14 : index
    %c0_86 = arith.constant 0 : index
    %c0_87 = arith.constant 0 : index
    %281 = vector.load %arg7[%c14_85, %c0_86, %c0_87] : memref<20x2x32xf32, #tpu.memory_space<vmem>>, vector<1x2x32xf32>
    %282 = vector.shape_cast %281 : vector<1x2x32xf32> to vector<2x32xf32>
    %283 = vector.shape_cast %277 : vector<2x32xf32> to vector<1x2x32xf32>
    tpu.vector_store %arg7[%c14_85, %c0_86, %c0_87], %283 {strides = array<i32>} : memref<20x2x32xf32, #tpu.memory_space<vmem>>, vector<1x2x32xf32>,
    %c6 = arith.constant 6 : index
    %c0_88 = arith.constant 0 : index
    %c0_89 = arith.constant 0 : index
    %284 = vector.load %arg1[%c6, %c0_88, %c0_89] : memref<20x2x128xf32, #tpu.memory_space<vmem>>, vector<1x2x128xf32>
    %285 = vector.shape_cast %284 : vector<1x2x128xf32> to vector<2x128xf32>
    %c13 = arith.constant 13 : index
    %c0_90 = arith.constant 0 : index
    %c0_91 = arith.constant 0 : index
    %286 = vector.load %arg2[%c13, %c0_90, %c0_91] : memref<20x2x128xf32, #tpu.memory_space<vmem>>, vector<1x2x128xf32>
    %287 = vector.shape_cast %286 : vector<1x2x128xf32> to vector<2x128xf32>
    %288 = tpu.concatenate %285, %287 in 1 : vector<2x128xf32>, vector<2x128xf32> -> vector<2x256xf32>
    %289 = tpu.concatenate %261, %277 in 1 : vector<2x32xf32>, vector<2x32xf32> -> vector<2x64xf32>
    %cst_92 = arith.constant dense<0.000000e+00> : vector<2x256xf32>
    %290 = tpu.matmul %289, %3, %cst_92 {dimension_numbers = #tpu.dot_dimension_numbers<[1], [0], [0], [1], [0, 0, 1, 1], [], []>} : vector<2x64xf32>, vector<64x256xf32>, vector<2x256xf32> -> vector<2x256xf32>
    %291 = arith.addf %288, %290 : vector<2x256xf32>
    %292 = vector.extract_strided_slice %291 {offsets = [0, 0], sizes = [2, 128], strides = [1, 1]} : vector<2x256xf32> to vector<2x128xf32>
    %293 = arith.negf %292 : vector<2x128xf32>
    %294 = math.exp %293 : vector<2x128xf32>
    %cst_93 = arith.constant 1.000000e+00 : f32
    %295 = vector.broadcast %cst_93 : f32 to vector<2x128xf32>
    %296 = arith.addf %295, %294 : vector<2x128xf32>
    %297 = arith.divf %295, %296 : vector<2x128xf32>
    %298 = math.tanh %292 : vector<2x128xf32>
    %299 = vector.extract_strided_slice %297 {offsets = [0, 0], sizes = [2, 32], strides = [1, 1]} : vector<2x128xf32> to vector<2x32xf32>
    %300 = vector.extract_strided_slice %297 {offsets = [0, 32], sizes = [2, 32], strides = [1, 1]} : vector<2x128xf32> to vector<2x32xf32>
    %301 = vector.extract_strided_slice %297 {offsets = [0, 96], sizes = [2, 32], strides = [1, 1]} : vector<2x128xf32> to vector<2x32xf32>
    %302 = vector.extract_strided_slice %298 {offsets = [0, 64], sizes = [2, 32], strides = [1, 1]} : vector<2x128xf32> to vector<2x32xf32>
    %303 = arith.mulf %300, %259 : vector<2x32xf32>
    %304 = arith.mulf %299, %302 : vector<2x32xf32>
    %305 = arith.addf %303, %304 : vector<2x32xf32>
    %306 = math.tanh %305 : vector<2x32xf32>
    %307 = arith.mulf %301, %306 : vector<2x32xf32>
    %308 = vector.extract_strided_slice %291 {offsets = [0, 128], sizes = [2, 128], strides = [1, 1]} : vector<2x256xf32> to vector<2x128xf32>
    %309 = arith.negf %308 : vector<2x128xf32>
    %310 = math.exp %309 : vector<2x128xf32>
    %cst_94 = arith.constant 1.000000e+00 : f32
    %311 = vector.broadcast %cst_94 : f32 to vector<2x128xf32>
    %312 = arith.addf %311, %310 : vector<2x128xf32>
    %313 = arith.divf %311, %312 : vector<2x128xf32>
    %314 = math.tanh %308 : vector<2x128xf32>
    %315 = vector.extract_strided_slice %313 {offsets = [0, 0], sizes = [2, 32], strides = [1, 1]} : vector<2x128xf32> to vector<2x32xf32>
    %316 = vector.extract_strided_slice %313 {offsets = [0, 32], sizes = [2, 32], strides = [1, 1]} : vector<2x128xf32> to vector<2x32xf32>
    %317 = vector.extract_strided_slice %313 {offsets = [0, 96], sizes = [2, 32], strides = [1, 1]} : vector<2x128xf32> to vector<2x32xf32>
    %318 = vector.extract_strided_slice %314 {offsets = [0, 64], sizes = [2, 32], strides = [1, 1]} : vector<2x128xf32> to vector<2x32xf32>
    %319 = arith.mulf %316, %275 : vector<2x32xf32>
    %320 = arith.mulf %315, %318 : vector<2x32xf32>
    %321 = arith.addf %319, %320 : vector<2x32xf32>
    %322 = math.tanh %321 : vector<2x32xf32>
    %323 = arith.mulf %317, %322 : vector<2x32xf32>
    %c6_95 = arith.constant 6 : index
    %c0_96 = arith.constant 0 : index
    %c0_97 = arith.constant 0 : index
    %324 = vector.load %arg6[%c6_95, %c0_96, %c0_97] : memref<20x2x32xf32, #tpu.memory_space<vmem>>, vector<1x2x32xf32>
    %325 = vector.shape_cast %324 : vector<1x2x32xf32> to vector<2x32xf32>
    %326 = vector.shape_cast %307 : vector<2x32xf32> to vector<1x2x32xf32>
    tpu.vector_store %arg6[%c6_95, %c0_96, %c0_97], %326 {strides = array<i32>} : memref<20x2x32xf32, #tpu.memory_space<vmem>>, vector<1x2x32xf32>,
    %c13_98 = arith.constant 13 : index
    %c0_99 = arith.constant 0 : index
    %c0_100 = arith.constant 0 : index
    %327 = vector.load %arg7[%c13_98, %c0_99, %c0_100] : memref<20x2x32xf32, #tpu.memory_space<vmem>>, vector<1x2x32xf32>
    %328 = vector.shape_cast %327 : vector<1x2x32xf32> to vector<2x32xf32>
    %329 = vector.shape_cast %323 : vector<2x32xf32> to vector<1x2x32xf32>
    tpu.vector_store %arg7[%c13_98, %c0_99, %c0_100], %329 {strides = array<i32>} : memref<20x2x32xf32, #tpu.memory_space<vmem>>, vector<1x2x32xf32>,
    %c7 = arith.constant 7 : index
    %c0_101 = arith.constant 0 : index
    %c0_102 = arith.constant 0 : index
    %330 = vector.load %arg1[%c7, %c0_101, %c0_102] : memref<20x2x128xf32, #tpu.memory_space<vmem>>, vector<1x2x128xf32>
    %331 = vector.shape_cast %330 : vector<1x2x128xf32> to vector<2x128xf32>
    %c12 = arith.constant 12 : index
    %c0_103 = arith.constant 0 : index
    %c0_104 = arith.constant 0 : index
    %332 = vector.load %arg2[%c12, %c0_103, %c0_104] : memref<20x2x128xf32, #tpu.memory_space<vmem>>, vector<1x2x128xf32>
    %333 = vector.shape_cast %332 : vector<1x2x128xf32> to vector<2x128xf32>
    %334 = tpu.concatenate %331, %333 in 1 : vector<2x128xf32>, vector<2x128xf32> -> vector<2x256xf32>
    %335 = tpu.concatenate %307, %323 in 1 : vector<2x32xf32>, vector<2x32xf32> -> vector<2x64xf32>
    %cst_105 = arith.constant dense<0.000000e+00> : vector<2x256xf32>
    %336 = tpu.matmul %335, %3, %cst_105 {dimension_numbers = #tpu.dot_dimension_numbers<[1], [0], [0], [1], [0, 0, 1, 1], [], []>} : vector<2x64xf32>, vector<64x256xf32>, vector<2x256xf32> -> vector<2x256xf32>
    %337 = arith.addf %334, %336 : vector<2x256xf32>
    %338 = vector.extract_strided_slice %337 {offsets = [0, 0], sizes = [2, 128], strides = [1, 1]} : vector<2x256xf32> to vector<2x128xf32>
    %339 = arith.negf %338 : vector<2x128xf32>
    %340 = math.exp %339 : vector<2x128xf32>
    %cst_106 = arith.constant 1.000000e+00 : f32
    %341 = vector.broadcast %cst_106 : f32 to vector<2x128xf32>
    %342 = arith.addf %341, %340 : vector<2x128xf32>
    %343 = arith.divf %341, %342 : vector<2x128xf32>
    %344 = math.tanh %338 : vector<2x128xf32>
    %345 = vector.extract_strided_slice %343 {offsets = [0, 0], sizes = [2, 32], strides = [1, 1]} : vector<2x128xf32> to vector<2x32xf32>
    %346 = vector.extract_strided_slice %343 {offsets = [0, 32], sizes = [2, 32], strides = [1, 1]} : vector<2x128xf32> to vector<2x32xf32>
    %347 = vector.extract_strided_slice %343 {offsets = [0, 96], sizes = [2, 32], strides = [1, 1]} : vector<2x128xf32> to vector<2x32xf32>
    %348 = vector.extract_strided_slice %344 {offsets = [0, 64], sizes = [2, 32], strides = [1, 1]} : vector<2x128xf32> to vector<2x32xf32>
    %349 = arith.mulf %346, %305 : vector<2x32xf32>
    %350 = arith.mulf %345, %348 : vector<2x32xf32>
    %351 = arith.addf %349, %350 : vector<2x32xf32>
    %352 = math.tanh %351 : vector<2x32xf32>
    %353 = arith.mulf %347, %352 : vector<2x32xf32>
    %354 = vector.extract_strided_slice %337 {offsets = [0, 128], sizes = [2, 128], strides = [1, 1]} : vector<2x256xf32> to vector<2x128xf32>
    %355 = arith.negf %354 : vector<2x128xf32>
    %356 = math.exp %355 : vector<2x128xf32>
    %cst_107 = arith.constant 1.000000e+00 : f32
    %357 = vector.broadcast %cst_107 : f32 to vector<2x128xf32>
    %358 = arith.addf %357, %356 : vector<2x128xf32>
    %359 = arith.divf %357, %358 : vector<2x128xf32>
    %360 = math.tanh %354 : vector<2x128xf32>
    %361 = vector.extract_strided_slice %359 {offsets = [0, 0], sizes = [2, 32], strides = [1, 1]} : vector<2x128xf32> to vector<2x32xf32>
    %362 = vector.extract_strided_slice %359 {offsets = [0, 32], sizes = [2, 32], strides = [1, 1]} : vector<2x128xf32> to vector<2x32xf32>
    %363 = vector.extract_strided_slice %359 {offsets = [0, 96], sizes = [2, 32], strides = [1, 1]} : vector<2x128xf32> to vector<2x32xf32>
    %364 = vector.extract_strided_slice %360 {offsets = [0, 64], sizes = [2, 32], strides = [1, 1]} : vector<2x128xf32> to vector<2x32xf32>
    %365 = arith.mulf %362, %321 : vector<2x32xf32>
    %366 = arith.mulf %361, %364 : vector<2x32xf32>
    %367 = arith.addf %365, %366 : vector<2x32xf32>
    %368 = math.tanh %367 : vector<2x32xf32>
    %369 = arith.mulf %363, %368 : vector<2x32xf32>
    %c7_108 = arith.constant 7 : index
    %c0_109 = arith.constant 0 : index
    %c0_110 = arith.constant 0 : index
    %370 = vector.load %arg6[%c7_108, %c0_109, %c0_110] : memref<20x2x32xf32, #tpu.memory_space<vmem>>, vector<1x2x32xf32>
    %371 = vector.shape_cast %370 : vector<1x2x32xf32> to vector<2x32xf32>
    %372 = vector.shape_cast %353 : vector<2x32xf32> to vector<1x2x32xf32>
    tpu.vector_store %arg6[%c7_108, %c0_109, %c0_110], %372 {strides = array<i32>} : memref<20x2x32xf32, #tpu.memory_space<vmem>>, vector<1x2x32xf32>,
    %c12_111 = arith.constant 12 : index
    %c0_112 = arith.constant 0 : index
    %c0_113 = arith.constant 0 : index
    %373 = vector.load %arg7[%c12_111, %c0_112, %c0_113] : memref<20x2x32xf32, #tpu.memory_space<vmem>>, vector<1x2x32xf32>
    %374 = vector.shape_cast %373 : vector<1x2x32xf32> to vector<2x32xf32>
    %375 = vector.shape_cast %369 : vector<2x32xf32> to vector<1x2x32xf32>
    tpu.vector_store %arg7[%c12_111, %c0_112, %c0_113], %375 {strides = array<i32>} : memref<20x2x32xf32, #tpu.memory_space<vmem>>, vector<1x2x32xf32>,
    %c8 = arith.constant 8 : index
    %c0_114 = arith.constant 0 : index
    %c0_115 = arith.constant 0 : index
    %376 = vector.load %arg1[%c8, %c0_114, %c0_115] : memref<20x2x128xf32, #tpu.memory_space<vmem>>, vector<1x2x128xf32>
    %377 = vector.shape_cast %376 : vector<1x2x128xf32> to vector<2x128xf32>
    %c11 = arith.constant 11 : index
    %c0_116 = arith.constant 0 : index
    %c0_117 = arith.constant 0 : index
    %378 = vector.load %arg2[%c11, %c0_116, %c0_117] : memref<20x2x128xf32, #tpu.memory_space<vmem>>, vector<1x2x128xf32>
    %379 = vector.shape_cast %378 : vector<1x2x128xf32> to vector<2x128xf32>
    %380 = tpu.concatenate %377, %379 in 1 : vector<2x128xf32>, vector<2x128xf32> -> vector<2x256xf32>
    %381 = tpu.concatenate %353, %369 in 1 : vector<2x32xf32>, vector<2x32xf32> -> vector<2x64xf32>
    %cst_118 = arith.constant dense<0.000000e+00> : vector<2x256xf32>
    %382 = tpu.matmul %381, %3, %cst_118 {dimension_numbers = #tpu.dot_dimension_numbers<[1], [0], [0], [1], [0, 0, 1, 1], [], []>} : vector<2x64xf32>, vector<64x256xf32>, vector<2x256xf32> -> vector<2x256xf32>
    %383 = arith.addf %380, %382 : vector<2x256xf32>
    %384 = vector.extract_strided_slice %383 {offsets = [0, 0], sizes = [2, 128], strides = [1, 1]} : vector<2x256xf32> to vector<2x128xf32>
    %385 = arith.negf %384 : vector<2x128xf32>
    %386 = math.exp %385 : vector<2x128xf32>
    %cst_119 = arith.constant 1.000000e+00 : f32
    %387 = vector.broadcast %cst_119 : f32 to vector<2x128xf32>
    %388 = arith.addf %387, %386 : vector<2x128xf32>
    %389 = arith.divf %387, %388 : vector<2x128xf32>
    %390 = math.tanh %384 : vector<2x128xf32>
    %391 = vector.extract_strided_slice %389 {offsets = [0, 0], sizes = [2, 32], strides = [1, 1]} : vector<2x128xf32> to vector<2x32xf32>
    %392 = vector.extract_strided_slice %389 {offsets = [0, 32], sizes = [2, 32], strides = [1, 1]} : vector<2x128xf32> to vector<2x32xf32>
    %393 = vector.extract_strided_slice %389 {offsets = [0, 96], sizes = [2, 32], strides = [1, 1]} : vector<2x128xf32> to vector<2x32xf32>
    %394 = vector.extract_strided_slice %390 {offsets = [0, 64], sizes = [2, 32], strides = [1, 1]} : vector<2x128xf32> to vector<2x32xf32>
    %395 = arith.mulf %392, %351 : vector<2x32xf32>
    %396 = arith.mulf %391, %394 : vector<2x32xf32>
    %397 = arith.addf %395, %396 : vector<2x32xf32>
    %398 = math.tanh %397 : vector<2x32xf32>
    %399 = arith.mulf %393, %398 : vector<2x32xf32>
    %400 = vector.extract_strided_slice %383 {offsets = [0, 128], sizes = [2, 128], strides = [1, 1]} : vector<2x256xf32> to vector<2x128xf32>
    %401 = arith.negf %400 : vector<2x128xf32>
    %402 = math.exp %401 : vector<2x128xf32>
    %cst_120 = arith.constant 1.000000e+00 : f32
    %403 = vector.broadcast %cst_120 : f32 to vector<2x128xf32>
    %404 = arith.addf %403, %402 : vector<2x128xf32>
    %405 = arith.divf %403, %404 : vector<2x128xf32>
    %406 = math.tanh %400 : vector<2x128xf32>
    %407 = vector.extract_strided_slice %405 {offsets = [0, 0], sizes = [2, 32], strides = [1, 1]} : vector<2x128xf32> to vector<2x32xf32>
    %408 = vector.extract_strided_slice %405 {offsets = [0, 32], sizes = [2, 32], strides = [1, 1]} : vector<2x128xf32> to vector<2x32xf32>
    %409 = vector.extract_strided_slice %405 {offsets = [0, 96], sizes = [2, 32], strides = [1, 1]} : vector<2x128xf32> to vector<2x32xf32>
    %410 = vector.extract_strided_slice %406 {offsets = [0, 64], sizes = [2, 32], strides = [1, 1]} : vector<2x128xf32> to vector<2x32xf32>
    %411 = arith.mulf %408, %367 : vector<2x32xf32>
    %412 = arith.mulf %407, %410 : vector<2x32xf32>
    %413 = arith.addf %411, %412 : vector<2x32xf32>
    %414 = math.tanh %413 : vector<2x32xf32>
    %415 = arith.mulf %409, %414 : vector<2x32xf32>
    %c8_121 = arith.constant 8 : index
    %c0_122 = arith.constant 0 : index
    %c0_123 = arith.constant 0 : index
    %416 = vector.load %arg6[%c8_121, %c0_122, %c0_123] : memref<20x2x32xf32, #tpu.memory_space<vmem>>, vector<1x2x32xf32>
    %417 = vector.shape_cast %416 : vector<1x2x32xf32> to vector<2x32xf32>
    %418 = vector.shape_cast %399 : vector<2x32xf32> to vector<1x2x32xf32>
    tpu.vector_store %arg6[%c8_121, %c0_122, %c0_123], %418 {strides = array<i32>} : memref<20x2x32xf32, #tpu.memory_space<vmem>>, vector<1x2x32xf32>,
    %c11_124 = arith.constant 11 : index
    %c0_125 = arith.constant 0 : index
    %c0_126 = arith.constant 0 : index
    %419 = vector.load %arg7[%c11_124, %c0_125, %c0_126] : memref<20x2x32xf32, #tpu.memory_space<vmem>>, vector<1x2x32xf32>
    %420 = vector.shape_cast %419 : vector<1x2x32xf32> to vector<2x32xf32>
    %421 = vector.shape_cast %415 : vector<2x32xf32> to vector<1x2x32xf32>
    tpu.vector_store %arg7[%c11_124, %c0_125, %c0_126], %421 {strides = array<i32>} : memref<20x2x32xf32, #tpu.memory_space<vmem>>, vector<1x2x32xf32>,
    %c9 = arith.constant 9 : index
    %c0_127 = arith.constant 0 : index
    %c0_128 = arith.constant 0 : index
    %422 = vector.load %arg1[%c9, %c0_127, %c0_128] : memref<20x2x128xf32, #tpu.memory_space<vmem>>, vector<1x2x128xf32>
    %423 = vector.shape_cast %422 : vector<1x2x128xf32> to vector<2x128xf32>
    %c10 = arith.constant 10 : index
    %c0_129 = arith.constant 0 : index
    %c0_130 = arith.constant 0 : index
    %424 = vector.load %arg2[%c10, %c0_129, %c0_130] : memref<20x2x128xf32, #tpu.memory_space<vmem>>, vector<1x2x128xf32>
    %425 = vector.shape_cast %424 : vector<1x2x128xf32> to vector<2x128xf32>
    %426 = tpu.concatenate %423, %425 in 1 : vector<2x128xf32>, vector<2x128xf32> -> vector<2x256xf32>
    %427 = tpu.concatenate %399, %415 in 1 : vector<2x32xf32>, vector<2x32xf32> -> vector<2x64xf32>
    %cst_131 = arith.constant dense<0.000000e+00> : vector<2x256xf32>
    %428 = tpu.matmul %427, %3, %cst_131 {dimension_numbers = #tpu.dot_dimension_numbers<[1], [0], [0], [1], [0, 0, 1, 1], [], []>} : vector<2x64xf32>, vector<64x256xf32>, vector<2x256xf32> -> vector<2x256xf32>
    %429 = arith.addf %426, %428 : vector<2x256xf32>
    %430 = vector.extract_strided_slice %429 {offsets = [0, 0], sizes = [2, 128], strides = [1, 1]} : vector<2x256xf32> to vector<2x128xf32>
    %431 = arith.negf %430 : vector<2x128xf32>
    %432 = math.exp %431 : vector<2x128xf32>
    %cst_132 = arith.constant 1.000000e+00 : f32
    %433 = vector.broadcast %cst_132 : f32 to vector<2x128xf32>
    %434 = arith.addf %433, %432 : vector<2x128xf32>
    %435 = arith.divf %433, %434 : vector<2x128xf32>
    %436 = math.tanh %430 : vector<2x128xf32>
    %437 = vector.extract_strided_slice %435 {offsets = [0, 0], sizes = [2, 32], strides = [1, 1]} : vector<2x128xf32> to vector<2x32xf32>
    %438 = vector.extract_strided_slice %435 {offsets = [0, 32], sizes = [2, 32], strides = [1, 1]} : vector<2x128xf32> to vector<2x32xf32>
    %439 = vector.extract_strided_slice %435 {offsets = [0, 96], sizes = [2, 32], strides = [1, 1]} : vector<2x128xf32> to vector<2x32xf32>
    %440 = vector.extract_strided_slice %436 {offsets = [0, 64], sizes = [2, 32], strides = [1, 1]} : vector<2x128xf32> to vector<2x32xf32>
    %441 = arith.mulf %438, %397 : vector<2x32xf32>
    %442 = arith.mulf %437, %440 : vector<2x32xf32>
    %443 = arith.addf %441, %442 : vector<2x32xf32>
    %444 = math.tanh %443 : vector<2x32xf32>
    %445 = arith.mulf %439, %444 : vector<2x32xf32>
    %446 = vector.extract_strided_slice %429 {offsets = [0, 128], sizes = [2, 128], strides = [1, 1]} : vector<2x256xf32> to vector<2x128xf32>
    %447 = arith.negf %446 : vector<2x128xf32>
    %448 = math.exp %447 : vector<2x128xf32>
    %cst_133 = arith.constant 1.000000e+00 : f32
    %449 = vector.broadcast %cst_133 : f32 to vector<2x128xf32>
    %450 = arith.addf %449, %448 : vector<2x128xf32>
    %451 = arith.divf %449, %450 : vector<2x128xf32>
    %452 = math.tanh %446 : vector<2x128xf32>
    %453 = vector.extract_strided_slice %451 {offsets = [0, 0], sizes = [2, 32], strides = [1, 1]} : vector<2x128xf32> to vector<2x32xf32>
    %454 = vector.extract_strided_slice %451 {offsets = [0, 32], sizes = [2, 32], strides = [1, 1]} : vector<2x128xf32> to vector<2x32xf32>
    %455 = vector.extract_strided_slice %451 {offsets = [0, 96], sizes = [2, 32], strides = [1, 1]} : vector<2x128xf32> to vector<2x32xf32>
    %456 = vector.extract_strided_slice %452 {offsets = [0, 64], sizes = [2, 32], strides = [1, 1]} : vector<2x128xf32> to vector<2x32xf32>
    %457 = arith.mulf %454, %413 : vector<2x32xf32>
    %458 = arith.mulf %453, %456 : vector<2x32xf32>
    %459 = arith.addf %457, %458 : vector<2x32xf32>
    %460 = math.tanh %459 : vector<2x32xf32>
    %461 = arith.mulf %455, %460 : vector<2x32xf32>
    %c9_134 = arith.constant 9 : index
    %c0_135 = arith.constant 0 : index
    %c0_136 = arith.constant 0 : index
    %462 = vector.load %arg6[%c9_134, %c0_135, %c0_136] : memref<20x2x32xf32, #tpu.memory_space<vmem>>, vector<1x2x32xf32>
    %463 = vector.shape_cast %462 : vector<1x2x32xf32> to vector<2x32xf32>
    %464 = vector.shape_cast %445 : vector<2x32xf32> to vector<1x2x32xf32>
    tpu.vector_store %arg6[%c9_134, %c0_135, %c0_136], %464 {strides = array<i32>} : memref<20x2x32xf32, #tpu.memory_space<vmem>>, vector<1x2x32xf32>,
    %c10_137 = arith.constant 10 : index
    %c0_138 = arith.constant 0 : index
    %c0_139 = arith.constant 0 : index
    %465 = vector.load %arg7[%c10_137, %c0_138, %c0_139] : memref<20x2x32xf32, #tpu.memory_space<vmem>>, vector<1x2x32xf32>
    %466 = vector.shape_cast %465 : vector<1x2x32xf32> to vector<2x32xf32>
    %467 = vector.shape_cast %461 : vector<2x32xf32> to vector<1x2x32xf32>
    tpu.vector_store %arg7[%c10_137, %c0_138, %c0_139], %467 {strides = array<i32>} : memref<20x2x32xf32, #tpu.memory_space<vmem>>, vector<1x2x32xf32>,
    %c10_140 = arith.constant 10 : index
    %c0_141 = arith.constant 0 : index
    %c0_142 = arith.constant 0 : index
    %468 = vector.load %arg1[%c10_140, %c0_141, %c0_142] : memref<20x2x128xf32, #tpu.memory_space<vmem>>, vector<1x2x128xf32>
    %469 = vector.shape_cast %468 : vector<1x2x128xf32> to vector<2x128xf32>
    %c9_143 = arith.constant 9 : index
    %c0_144 = arith.constant 0 : index
    %c0_145 = arith.constant 0 : index
    %470 = vector.load %arg2[%c9_143, %c0_144, %c0_145] : memref<20x2x128xf32, #tpu.memory_space<vmem>>, vector<1x2x128xf32>
    %471 = vector.shape_cast %470 : vector<1x2x128xf32> to vector<2x128xf32>
    %472 = tpu.concatenate %469, %471 in 1 : vector<2x128xf32>, vector<2x128xf32> -> vector<2x256xf32>
    %473 = tpu.concatenate %445, %461 in 1 : vector<2x32xf32>, vector<2x32xf32> -> vector<2x64xf32>
    %cst_146 = arith.constant dense<0.000000e+00> : vector<2x256xf32>
    %474 = tpu.matmul %473, %3, %cst_146 {dimension_numbers = #tpu.dot_dimension_numbers<[1], [0], [0], [1], [0, 0, 1, 1], [], []>} : vector<2x64xf32>, vector<64x256xf32>, vector<2x256xf32> -> vector<2x256xf32>
    %475 = arith.addf %472, %474 : vector<2x256xf32>
    %476 = vector.extract_strided_slice %475 {offsets = [0, 0], sizes = [2, 128], strides = [1, 1]} : vector<2x256xf32> to vector<2x128xf32>
    %477 = arith.negf %476 : vector<2x128xf32>
    %478 = math.exp %477 : vector<2x128xf32>
    %cst_147 = arith.constant 1.000000e+00 : f32
    %479 = vector.broadcast %cst_147 : f32 to vector<2x128xf32>
    %480 = arith.addf %479, %478 : vector<2x128xf32>
    %481 = arith.divf %479, %480 : vector<2x128xf32>
    %482 = math.tanh %476 : vector<2x128xf32>
    %483 = vector.extract_strided_slice %481 {offsets = [0, 0], sizes = [2, 32], strides = [1, 1]} : vector<2x128xf32> to vector<2x32xf32>
    %484 = vector.extract_strided_slice %481 {offsets = [0, 32], sizes = [2, 32], strides = [1, 1]} : vector<2x128xf32> to vector<2x32xf32>
    %485 = vector.extract_strided_slice %481 {offsets = [0, 96], sizes = [2, 32], strides = [1, 1]} : vector<2x128xf32> to vector<2x32xf32>
    %486 = vector.extract_strided_slice %482 {offsets = [0, 64], sizes = [2, 32], strides = [1, 1]} : vector<2x128xf32> to vector<2x32xf32>
    %487 = arith.mulf %484, %443 : vector<2x32xf32>
    %488 = arith.mulf %483, %486 : vector<2x32xf32>
    %489 = arith.addf %487, %488 : vector<2x32xf32>
    %490 = math.tanh %489 : vector<2x32xf32>
    %491 = arith.mulf %485, %490 : vector<2x32xf32>
    %492 = vector.extract_strided_slice %475 {offsets = [0, 128], sizes = [2, 128], strides = [1, 1]} : vector<2x256xf32> to vector<2x128xf32>
    %493 = arith.negf %492 : vector<2x128xf32>
    %494 = math.exp %493 : vector<2x128xf32>
    %cst_148 = arith.constant 1.000000e+00 : f32
    %495 = vector.broadcast %cst_148 : f32 to vector<2x128xf32>
    %496 = arith.addf %495, %494 : vector<2x128xf32>
    %497 = arith.divf %495, %496 : vector<2x128xf32>
    %498 = math.tanh %492 : vector<2x128xf32>
    %499 = vector.extract_strided_slice %497 {offsets = [0, 0], sizes = [2, 32], strides = [1, 1]} : vector<2x128xf32> to vector<2x32xf32>
    %500 = vector.extract_strided_slice %497 {offsets = [0, 32], sizes = [2, 32], strides = [1, 1]} : vector<2x128xf32> to vector<2x32xf32>
    %501 = vector.extract_strided_slice %497 {offsets = [0, 96], sizes = [2, 32], strides = [1, 1]} : vector<2x128xf32> to vector<2x32xf32>
    %502 = vector.extract_strided_slice %498 {offsets = [0, 64], sizes = [2, 32], strides = [1, 1]} : vector<2x128xf32> to vector<2x32xf32>
    %503 = arith.mulf %500, %459 : vector<2x32xf32>
    %504 = arith.mulf %499, %502 : vector<2x32xf32>
    %505 = arith.addf %503, %504 : vector<2x32xf32>
    %506 = math.tanh %505 : vector<2x32xf32>
    %507 = arith.mulf %501, %506 : vector<2x32xf32>
    %c10_149 = arith.constant 10 : index
    %c0_150 = arith.constant 0 : index
    %c0_151 = arith.constant 0 : index
    %508 = vector.load %arg6[%c10_149, %c0_150, %c0_151] : memref<20x2x32xf32, #tpu.memory_space<vmem>>, vector<1x2x32xf32>
    %509 = vector.shape_cast %508 : vector<1x2x32xf32> to vector<2x32xf32>
    %510 = vector.shape_cast %491 : vector<2x32xf32> to vector<1x2x32xf32>
    tpu.vector_store %arg6[%c10_149, %c0_150, %c0_151], %510 {strides = array<i32>} : memref<20x2x32xf32, #tpu.memory_space<vmem>>, vector<1x2x32xf32>,
    %c9_152 = arith.constant 9 : index
    %c0_153 = arith.constant 0 : index
    %c0_154 = arith.constant 0 : index
    %511 = vector.load %arg7[%c9_152, %c0_153, %c0_154] : memref<20x2x32xf32, #tpu.memory_space<vmem>>, vector<1x2x32xf32>
    %512 = vector.shape_cast %511 : vector<1x2x32xf32> to vector<2x32xf32>
    %513 = vector.shape_cast %507 : vector<2x32xf32> to vector<1x2x32xf32>
    tpu.vector_store %arg7[%c9_152, %c0_153, %c0_154], %513 {strides = array<i32>} : memref<20x2x32xf32, #tpu.memory_space<vmem>>, vector<1x2x32xf32>,
    %c11_155 = arith.constant 11 : index
    %c0_156 = arith.constant 0 : index
    %c0_157 = arith.constant 0 : index
    %514 = vector.load %arg1[%c11_155, %c0_156, %c0_157] : memref<20x2x128xf32, #tpu.memory_space<vmem>>, vector<1x2x128xf32>
    %515 = vector.shape_cast %514 : vector<1x2x128xf32> to vector<2x128xf32>
    %c8_158 = arith.constant 8 : index
    %c0_159 = arith.constant 0 : index
    %c0_160 = arith.constant 0 : index
    %516 = vector.load %arg2[%c8_158, %c0_159, %c0_160] : memref<20x2x128xf32, #tpu.memory_space<vmem>>, vector<1x2x128xf32>
    %517 = vector.shape_cast %516 : vector<1x2x128xf32> to vector<2x128xf32>
    %518 = tpu.concatenate %515, %517 in 1 : vector<2x128xf32>, vector<2x128xf32> -> vector<2x256xf32>
    %519 = tpu.concatenate %491, %507 in 1 : vector<2x32xf32>, vector<2x32xf32> -> vector<2x64xf32>
    %cst_161 = arith.constant dense<0.000000e+00> : vector<2x256xf32>
    %520 = tpu.matmul %519, %3, %cst_161 {dimension_numbers = #tpu.dot_dimension_numbers<[1], [0], [0], [1], [0, 0, 1, 1], [], []>} : vector<2x64xf32>, vector<64x256xf32>, vector<2x256xf32> -> vector<2x256xf32>
    %521 = arith.addf %518, %520 : vector<2x256xf32>
    %522 = vector.extract_strided_slice %521 {offsets = [0, 0], sizes = [2, 128], strides = [1, 1]} : vector<2x256xf32> to vector<2x128xf32>
    %523 = arith.negf %522 : vector<2x128xf32>
    %524 = math.exp %523 : vector<2x128xf32>
    %cst_162 = arith.constant 1.000000e+00 : f32
    %525 = vector.broadcast %cst_162 : f32 to vector<2x128xf32>
    %526 = arith.addf %525, %524 : vector<2x128xf32>
    %527 = arith.divf %525, %526 : vector<2x128xf32>
    %528 = math.tanh %522 : vector<2x128xf32>
    %529 = vector.extract_strided_slice %527 {offsets = [0, 0], sizes = [2, 32], strides = [1, 1]} : vector<2x128xf32> to vector<2x32xf32>
    %530 = vector.extract_strided_slice %527 {offsets = [0, 32], sizes = [2, 32], strides = [1, 1]} : vector<2x128xf32> to vector<2x32xf32>
    %531 = vector.extract_strided_slice %527 {offsets = [0, 96], sizes = [2, 32], strides = [1, 1]} : vector<2x128xf32> to vector<2x32xf32>
    %532 = vector.extract_strided_slice %528 {offsets = [0, 64], sizes = [2, 32], strides = [1, 1]} : vector<2x128xf32> to vector<2x32xf32>
    %533 = arith.mulf %530, %489 : vector<2x32xf32>
    %534 = arith.mulf %529, %532 : vector<2x32xf32>
    %535 = arith.addf %533, %534 : vector<2x32xf32>
    %536 = math.tanh %535 : vector<2x32xf32>
    %537 = arith.mulf %531, %536 : vector<2x32xf32>
    %538 = vector.extract_strided_slice %521 {offsets = [0, 128], sizes = [2, 128], strides = [1, 1]} : vector<2x256xf32> to vector<2x128xf32>
    %539 = arith.negf %538 : vector<2x128xf32>
    %540 = math.exp %539 : vector<2x128xf32>
    %cst_163 = arith.constant 1.000000e+00 : f32
    %541 = vector.broadcast %cst_163 : f32 to vector<2x128xf32>
    %542 = arith.addf %541, %540 : vector<2x128xf32>
    %543 = arith.divf %541, %542 : vector<2x128xf32>
    %544 = math.tanh %538 : vector<2x128xf32>
    %545 = vector.extract_strided_slice %543 {offsets = [0, 0], sizes = [2, 32], strides = [1, 1]} : vector<2x128xf32> to vector<2x32xf32>
    %546 = vector.extract_strided_slice %543 {offsets = [0, 32], sizes = [2, 32], strides = [1, 1]} : vector<2x128xf32> to vector<2x32xf32>
    %547 = vector.extract_strided_slice %543 {offsets = [0, 96], sizes = [2, 32], strides = [1, 1]} : vector<2x128xf32> to vector<2x32xf32>
    %548 = vector.extract_strided_slice %544 {offsets = [0, 64], sizes = [2, 32], strides = [1, 1]} : vector<2x128xf32> to vector<2x32xf32>
    %549 = arith.mulf %546, %505 : vector<2x32xf32>
    %550 = arith.mulf %545, %548 : vector<2x32xf32>
    %551 = arith.addf %549, %550 : vector<2x32xf32>
    %552 = math.tanh %551 : vector<2x32xf32>
    %553 = arith.mulf %547, %552 : vector<2x32xf32>
    %c11_164 = arith.constant 11 : index
    %c0_165 = arith.constant 0 : index
    %c0_166 = arith.constant 0 : index
    %554 = vector.load %arg6[%c11_164, %c0_165, %c0_166] : memref<20x2x32xf32, #tpu.memory_space<vmem>>, vector<1x2x32xf32>
    %555 = vector.shape_cast %554 : vector<1x2x32xf32> to vector<2x32xf32>
    %556 = vector.shape_cast %537 : vector<2x32xf32> to vector<1x2x32xf32>
    tpu.vector_store %arg6[%c11_164, %c0_165, %c0_166], %556 {strides = array<i32>} : memref<20x2x32xf32, #tpu.memory_space<vmem>>, vector<1x2x32xf32>,
    %c8_167 = arith.constant 8 : index
    %c0_168 = arith.constant 0 : index
    %c0_169 = arith.constant 0 : index
    %557 = vector.load %arg7[%c8_167, %c0_168, %c0_169] : memref<20x2x32xf32, #tpu.memory_space<vmem>>, vector<1x2x32xf32>
    %558 = vector.shape_cast %557 : vector<1x2x32xf32> to vector<2x32xf32>
    %559 = vector.shape_cast %553 : vector<2x32xf32> to vector<1x2x32xf32>
    tpu.vector_store %arg7[%c8_167, %c0_168, %c0_169], %559 {strides = array<i32>} : memref<20x2x32xf32, #tpu.memory_space<vmem>>, vector<1x2x32xf32>,
    %c12_170 = arith.constant 12 : index
    %c0_171 = arith.constant 0 : index
    %c0_172 = arith.constant 0 : index
    %560 = vector.load %arg1[%c12_170, %c0_171, %c0_172] : memref<20x2x128xf32, #tpu.memory_space<vmem>>, vector<1x2x128xf32>
    %561 = vector.shape_cast %560 : vector<1x2x128xf32> to vector<2x128xf32>
    %c7_173 = arith.constant 7 : index
    %c0_174 = arith.constant 0 : index
    %c0_175 = arith.constant 0 : index
    %562 = vector.load %arg2[%c7_173, %c0_174, %c0_175] : memref<20x2x128xf32, #tpu.memory_space<vmem>>, vector<1x2x128xf32>
    %563 = vector.shape_cast %562 : vector<1x2x128xf32> to vector<2x128xf32>
    %564 = tpu.concatenate %561, %563 in 1 : vector<2x128xf32>, vector<2x128xf32> -> vector<2x256xf32>
    %565 = tpu.concatenate %537, %553 in 1 : vector<2x32xf32>, vector<2x32xf32> -> vector<2x64xf32>
    %cst_176 = arith.constant dense<0.000000e+00> : vector<2x256xf32>
    %566 = tpu.matmul %565, %3, %cst_176 {dimension_numbers = #tpu.dot_dimension_numbers<[1], [0], [0], [1], [0, 0, 1, 1], [], []>} : vector<2x64xf32>, vector<64x256xf32>, vector<2x256xf32> -> vector<2x256xf32>
    %567 = arith.addf %564, %566 : vector<2x256xf32>
    %568 = vector.extract_strided_slice %567 {offsets = [0, 0], sizes = [2, 128], strides = [1, 1]} : vector<2x256xf32> to vector<2x128xf32>
    %569 = arith.negf %568 : vector<2x128xf32>
    %570 = math.exp %569 : vector<2x128xf32>
    %cst_177 = arith.constant 1.000000e+00 : f32
    %571 = vector.broadcast %cst_177 : f32 to vector<2x128xf32>
    %572 = arith.addf %571, %570 : vector<2x128xf32>
    %573 = arith.divf %571, %572 : vector<2x128xf32>
    %574 = math.tanh %568 : vector<2x128xf32>
    %575 = vector.extract_strided_slice %573 {offsets = [0, 0], sizes = [2, 32], strides = [1, 1]} : vector<2x128xf32> to vector<2x32xf32>
    %576 = vector.extract_strided_slice %573 {offsets = [0, 32], sizes = [2, 32], strides = [1, 1]} : vector<2x128xf32> to vector<2x32xf32>
    %577 = vector.extract_strided_slice %573 {offsets = [0, 96], sizes = [2, 32], strides = [1, 1]} : vector<2x128xf32> to vector<2x32xf32>
    %578 = vector.extract_strided_slice %574 {offsets = [0, 64], sizes = [2, 32], strides = [1, 1]} : vector<2x128xf32> to vector<2x32xf32>
    %579 = arith.mulf %576, %535 : vector<2x32xf32>
    %580 = arith.mulf %575, %578 : vector<2x32xf32>
    %581 = arith.addf %579, %580 : vector<2x32xf32>
    %582 = math.tanh %581 : vector<2x32xf32>
    %583 = arith.mulf %577, %582 : vector<2x32xf32>
    %584 = vector.extract_strided_slice %567 {offsets = [0, 128], sizes = [2, 128], strides = [1, 1]} : vector<2x256xf32> to vector<2x128xf32>
    %585 = arith.negf %584 : vector<2x128xf32>
    %586 = math.exp %585 : vector<2x128xf32>
    %cst_178 = arith.constant 1.000000e+00 : f32
    %587 = vector.broadcast %cst_178 : f32 to vector<2x128xf32>
    %588 = arith.addf %587, %586 : vector<2x128xf32>
    %589 = arith.divf %587, %588 : vector<2x128xf32>
    %590 = math.tanh %584 : vector<2x128xf32>
    %591 = vector.extract_strided_slice %589 {offsets = [0, 0], sizes = [2, 32], strides = [1, 1]} : vector<2x128xf32> to vector<2x32xf32>
    %592 = vector.extract_strided_slice %589 {offsets = [0, 32], sizes = [2, 32], strides = [1, 1]} : vector<2x128xf32> to vector<2x32xf32>
    %593 = vector.extract_strided_slice %589 {offsets = [0, 96], sizes = [2, 32], strides = [1, 1]} : vector<2x128xf32> to vector<2x32xf32>
    %594 = vector.extract_strided_slice %590 {offsets = [0, 64], sizes = [2, 32], strides = [1, 1]} : vector<2x128xf32> to vector<2x32xf32>
    %595 = arith.mulf %592, %551 : vector<2x32xf32>
    %596 = arith.mulf %591, %594 : vector<2x32xf32>
    %597 = arith.addf %595, %596 : vector<2x32xf32>
    %598 = math.tanh %597 : vector<2x32xf32>
    %599 = arith.mulf %593, %598 : vector<2x32xf32>
    %c12_179 = arith.constant 12 : index
    %c0_180 = arith.constant 0 : index
    %c0_181 = arith.constant 0 : index
    %600 = vector.load %arg6[%c12_179, %c0_180, %c0_181] : memref<20x2x32xf32, #tpu.memory_space<vmem>>, vector<1x2x32xf32>
    %601 = vector.shape_cast %600 : vector<1x2x32xf32> to vector<2x32xf32>
    %602 = vector.shape_cast %583 : vector<2x32xf32> to vector<1x2x32xf32>
    tpu.vector_store %arg6[%c12_179, %c0_180, %c0_181], %602 {strides = array<i32>} : memref<20x2x32xf32, #tpu.memory_space<vmem>>, vector<1x2x32xf32>,
    %c7_182 = arith.constant 7 : index
    %c0_183 = arith.constant 0 : index
    %c0_184 = arith.constant 0 : index
    %603 = vector.load %arg7[%c7_182, %c0_183, %c0_184] : memref<20x2x32xf32, #tpu.memory_space<vmem>>, vector<1x2x32xf32>
    %604 = vector.shape_cast %603 : vector<1x2x32xf32> to vector<2x32xf32>
    %605 = vector.shape_cast %599 : vector<2x32xf32> to vector<1x2x32xf32>
    tpu.vector_store %arg7[%c7_182, %c0_183, %c0_184], %605 {strides = array<i32>} : memref<20x2x32xf32, #tpu.memory_space<vmem>>, vector<1x2x32xf32>,
    %c13_185 = arith.constant 13 : index
    %c0_186 = arith.constant 0 : index
    %c0_187 = arith.constant 0 : index
    %606 = vector.load %arg1[%c13_185, %c0_186, %c0_187] : memref<20x2x128xf32, #tpu.memory_space<vmem>>, vector<1x2x128xf32>
    %607 = vector.shape_cast %606 : vector<1x2x128xf32> to vector<2x128xf32>
    %c6_188 = arith.constant 6 : index
    %c0_189 = arith.constant 0 : index
    %c0_190 = arith.constant 0 : index
    %608 = vector.load %arg2[%c6_188, %c0_189, %c0_190] : memref<20x2x128xf32, #tpu.memory_space<vmem>>, vector<1x2x128xf32>
    %609 = vector.shape_cast %608 : vector<1x2x128xf32> to vector<2x128xf32>
    %610 = tpu.concatenate %607, %609 in 1 : vector<2x128xf32>, vector<2x128xf32> -> vector<2x256xf32>
    %611 = tpu.concatenate %583, %599 in 1 : vector<2x32xf32>, vector<2x32xf32> -> vector<2x64xf32>
    %cst_191 = arith.constant dense<0.000000e+00> : vector<2x256xf32>
    %612 = tpu.matmul %611, %3, %cst_191 {dimension_numbers = #tpu.dot_dimension_numbers<[1], [0], [0], [1], [0, 0, 1, 1], [], []>} : vector<2x64xf32>, vector<64x256xf32>, vector<2x256xf32> -> vector<2x256xf32>
    %613 = arith.addf %610, %612 : vector<2x256xf32>
    %614 = vector.extract_strided_slice %613 {offsets = [0, 0], sizes = [2, 128], strides = [1, 1]} : vector<2x256xf32> to vector<2x128xf32>
    %615 = arith.negf %614 : vector<2x128xf32>
    %616 = math.exp %615 : vector<2x128xf32>
    %cst_192 = arith.constant 1.000000e+00 : f32
    %617 = vector.broadcast %cst_192 : f32 to vector<2x128xf32>
    %618 = arith.addf %617, %616 : vector<2x128xf32>
    %619 = arith.divf %617, %618 : vector<2x128xf32>
    %620 = math.tanh %614 : vector<2x128xf32>
    %621 = vector.extract_strided_slice %619 {offsets = [0, 0], sizes = [2, 32], strides = [1, 1]} : vector<2x128xf32> to vector<2x32xf32>
    %622 = vector.extract_strided_slice %619 {offsets = [0, 32], sizes = [2, 32], strides = [1, 1]} : vector<2x128xf32> to vector<2x32xf32>
    %623 = vector.extract_strided_slice %619 {offsets = [0, 96], sizes = [2, 32], strides = [1, 1]} : vector<2x128xf32> to vector<2x32xf32>
    %624 = vector.extract_strided_slice %620 {offsets = [0, 64], sizes = [2, 32], strides = [1, 1]} : vector<2x128xf32> to vector<2x32xf32>
    %625 = arith.mulf %622, %581 : vector<2x32xf32>
    %626 = arith.mulf %621, %624 : vector<2x32xf32>
    %627 = arith.addf %625, %626 : vector<2x32xf32>
    %628 = math.tanh %627 : vector<2x32xf32>
    %629 = arith.mulf %623, %628 : vector<2x32xf32>
    %630 = vector.extract_strided_slice %613 {offsets = [0, 128], sizes = [2, 128], strides = [1, 1]} : vector<2x256xf32> to vector<2x128xf32>
    %631 = arith.negf %630 : vector<2x128xf32>
    %632 = math.exp %631 : vector<2x128xf32>
    %cst_193 = arith.constant 1.000000e+00 : f32
    %633 = vector.broadcast %cst_193 : f32 to vector<2x128xf32>
    %634 = arith.addf %633, %632 : vector<2x128xf32>
    %635 = arith.divf %633, %634 : vector<2x128xf32>
    %636 = math.tanh %630 : vector<2x128xf32>
    %637 = vector.extract_strided_slice %635 {offsets = [0, 0], sizes = [2, 32], strides = [1, 1]} : vector<2x128xf32> to vector<2x32xf32>
    %638 = vector.extract_strided_slice %635 {offsets = [0, 32], sizes = [2, 32], strides = [1, 1]} : vector<2x128xf32> to vector<2x32xf32>
    %639 = vector.extract_strided_slice %635 {offsets = [0, 96], sizes = [2, 32], strides = [1, 1]} : vector<2x128xf32> to vector<2x32xf32>
    %640 = vector.extract_strided_slice %636 {offsets = [0, 64], sizes = [2, 32], strides = [1, 1]} : vector<2x128xf32> to vector<2x32xf32>
    %641 = arith.mulf %638, %597 : vector<2x32xf32>
    %642 = arith.mulf %637, %640 : vector<2x32xf32>
    %643 = arith.addf %641, %642 : vector<2x32xf32>
    %644 = math.tanh %643 : vector<2x32xf32>
    %645 = arith.mulf %639, %644 : vector<2x32xf32>
    %c13_194 = arith.constant 13 : index
    %c0_195 = arith.constant 0 : index
    %c0_196 = arith.constant 0 : index
    %646 = vector.load %arg6[%c13_194, %c0_195, %c0_196] : memref<20x2x32xf32, #tpu.memory_space<vmem>>, vector<1x2x32xf32>
    %647 = vector.shape_cast %646 : vector<1x2x32xf32> to vector<2x32xf32>
    %648 = vector.shape_cast %629 : vector<2x32xf32> to vector<1x2x32xf32>
    tpu.vector_store %arg6[%c13_194, %c0_195, %c0_196], %648 {strides = array<i32>} : memref<20x2x32xf32, #tpu.memory_space<vmem>>, vector<1x2x32xf32>,
    %c6_197 = arith.constant 6 : index
    %c0_198 = arith.constant 0 : index
    %c0_199 = arith.constant 0 : index
    %649 = vector.load %arg7[%c6_197, %c0_198, %c0_199] : memref<20x2x32xf32, #tpu.memory_space<vmem>>, vector<1x2x32xf32>
    %650 = vector.shape_cast %649 : vector<1x2x32xf32> to vector<2x32xf32>
    %651 = vector.shape_cast %645 : vector<2x32xf32> to vector<1x2x32xf32>
    tpu.vector_store %arg7[%c6_197, %c0_198, %c0_199], %651 {strides = array<i32>} : memref<20x2x32xf32, #tpu.memory_space<vmem>>, vector<1x2x32xf32>,
    %c14_200 = arith.constant 14 : index
    %c0_201 = arith.constant 0 : index
    %c0_202 = arith.constant 0 : index
    %652 = vector.load %arg1[%c14_200, %c0_201, %c0_202] : memref<20x2x128xf32, #tpu.memory_space<vmem>>, vector<1x2x128xf32>
    %653 = vector.shape_cast %652 : vector<1x2x128xf32> to vector<2x128xf32>
    %c5_203 = arith.constant 5 : index
    %c0_204 = arith.constant 0 : index
    %c0_205 = arith.constant 0 : index
    %654 = vector.load %arg2[%c5_203, %c0_204, %c0_205] : memref<20x2x128xf32, #tpu.memory_space<vmem>>, vector<1x2x128xf32>
    %655 = vector.shape_cast %654 : vector<1x2x128xf32> to vector<2x128xf32>
    %656 = tpu.concatenate %653, %655 in 1 : vector<2x128xf32>, vector<2x128xf32> -> vector<2x256xf32>
    %657 = tpu.concatenate %629, %645 in 1 : vector<2x32xf32>, vector<2x32xf32> -> vector<2x64xf32>
    %cst_206 = arith.constant dense<0.000000e+00> : vector<2x256xf32>
    %658 = tpu.matmul %657, %3, %cst_206 {dimension_numbers = #tpu.dot_dimension_numbers<[1], [0], [0], [1], [0, 0, 1, 1], [], []>} : vector<2x64xf32>, vector<64x256xf32>, vector<2x256xf32> -> vector<2x256xf32>
    %659 = arith.addf %656, %658 : vector<2x256xf32>
    %660 = vector.extract_strided_slice %659 {offsets = [0, 0], sizes = [2, 128], strides = [1, 1]} : vector<2x256xf32> to vector<2x128xf32>
    %661 = arith.negf %660 : vector<2x128xf32>
    %662 = math.exp %661 : vector<2x128xf32>
    %cst_207 = arith.constant 1.000000e+00 : f32
    %663 = vector.broadcast %cst_207 : f32 to vector<2x128xf32>
    %664 = arith.addf %663, %662 : vector<2x128xf32>
    %665 = arith.divf %663, %664 : vector<2x128xf32>
    %666 = math.tanh %660 : vector<2x128xf32>
    %667 = vector.extract_strided_slice %665 {offsets = [0, 0], sizes = [2, 32], strides = [1, 1]} : vector<2x128xf32> to vector<2x32xf32>
    %668 = vector.extract_strided_slice %665 {offsets = [0, 32], sizes = [2, 32], strides = [1, 1]} : vector<2x128xf32> to vector<2x32xf32>
    %669 = vector.extract_strided_slice %665 {offsets = [0, 96], sizes = [2, 32], strides = [1, 1]} : vector<2x128xf32> to vector<2x32xf32>
    %670 = vector.extract_strided_slice %666 {offsets = [0, 64], sizes = [2, 32], strides = [1, 1]} : vector<2x128xf32> to vector<2x32xf32>
    %671 = arith.mulf %668, %627 : vector<2x32xf32>
    %672 = arith.mulf %667, %670 : vector<2x32xf32>
    %673 = arith.addf %671, %672 : vector<2x32xf32>
    %674 = math.tanh %673 : vector<2x32xf32>
    %675 = arith.mulf %669, %674 : vector<2x32xf32>
    %676 = vector.extract_strided_slice %659 {offsets = [0, 128], sizes = [2, 128], strides = [1, 1]} : vector<2x256xf32> to vector<2x128xf32>
    %677 = arith.negf %676 : vector<2x128xf32>
    %678 = math.exp %677 : vector<2x128xf32>
    %cst_208 = arith.constant 1.000000e+00 : f32
    %679 = vector.broadcast %cst_208 : f32 to vector<2x128xf32>
    %680 = arith.addf %679, %678 : vector<2x128xf32>
    %681 = arith.divf %679, %680 : vector<2x128xf32>
    %682 = math.tanh %676 : vector<2x128xf32>
    %683 = vector.extract_strided_slice %681 {offsets = [0, 0], sizes = [2, 32], strides = [1, 1]} : vector<2x128xf32> to vector<2x32xf32>
    %684 = vector.extract_strided_slice %681 {offsets = [0, 32], sizes = [2, 32], strides = [1, 1]} : vector<2x128xf32> to vector<2x32xf32>
    %685 = vector.extract_strided_slice %681 {offsets = [0, 96], sizes = [2, 32], strides = [1, 1]} : vector<2x128xf32> to vector<2x32xf32>
    %686 = vector.extract_strided_slice %682 {offsets = [0, 64], sizes = [2, 32], strides = [1, 1]} : vector<2x128xf32> to vector<2x32xf32>
    %687 = arith.mulf %684, %643 : vector<2x32xf32>
    %688 = arith.mulf %683, %686 : vector<2x32xf32>
    %689 = arith.addf %687, %688 : vector<2x32xf32>
    %690 = math.tanh %689 : vector<2x32xf32>
    %691 = arith.mulf %685, %690 : vector<2x32xf32>
    %c14_209 = arith.constant 14 : index
    %c0_210 = arith.constant 0 : index
    %c0_211 = arith.constant 0 : index
    %692 = vector.load %arg6[%c14_209, %c0_210, %c0_211] : memref<20x2x32xf32, #tpu.memory_space<vmem>>, vector<1x2x32xf32>
    %693 = vector.shape_cast %692 : vector<1x2x32xf32> to vector<2x32xf32>
    %694 = vector.shape_cast %675 : vector<2x32xf32> to vector<1x2x32xf32>
    tpu.vector_store %arg6[%c14_209, %c0_210, %c0_211], %694 {strides = array<i32>} : memref<20x2x32xf32, #tpu.memory_space<vmem>>, vector<1x2x32xf32>,
    %c5_212 = arith.constant 5 : index
    %c0_213 = arith.constant 0 : index
    %c0_214 = arith.constant 0 : index
    %695 = vector.load %arg7[%c5_212, %c0_213, %c0_214] : memref<20x2x32xf32, #tpu.memory_space<vmem>>, vector<1x2x32xf32>
    %696 = vector.shape_cast %695 : vector<1x2x32xf32> to vector<2x32xf32>
    %697 = vector.shape_cast %691 : vector<2x32xf32> to vector<1x2x32xf32>
    tpu.vector_store %arg7[%c5_212, %c0_213, %c0_214], %697 {strides = array<i32>} : memref<20x2x32xf32, #tpu.memory_space<vmem>>, vector<1x2x32xf32>,
    %c15_215 = arith.constant 15 : index
    %c0_216 = arith.constant 0 : index
    %c0_217 = arith.constant 0 : index
    %698 = vector.load %arg1[%c15_215, %c0_216, %c0_217] : memref<20x2x128xf32, #tpu.memory_space<vmem>>, vector<1x2x128xf32>
    %699 = vector.shape_cast %698 : vector<1x2x128xf32> to vector<2x128xf32>
    %c4_218 = arith.constant 4 : index
    %c0_219 = arith.constant 0 : index
    %c0_220 = arith.constant 0 : index
    %700 = vector.load %arg2[%c4_218, %c0_219, %c0_220] : memref<20x2x128xf32, #tpu.memory_space<vmem>>, vector<1x2x128xf32>
    %701 = vector.shape_cast %700 : vector<1x2x128xf32> to vector<2x128xf32>
    %702 = tpu.concatenate %699, %701 in 1 : vector<2x128xf32>, vector<2x128xf32> -> vector<2x256xf32>
    %703 = tpu.concatenate %675, %691 in 1 : vector<2x32xf32>, vector<2x32xf32> -> vector<2x64xf32>
    %cst_221 = arith.constant dense<0.000000e+00> : vector<2x256xf32>
    %704 = tpu.matmul %703, %3, %cst_221 {dimension_numbers = #tpu.dot_dimension_numbers<[1], [0], [0], [1], [0, 0, 1, 1], [], []>} : vector<2x64xf32>, vector<64x256xf32>, vector<2x256xf32> -> vector<2x256xf32>
    %705 = arith.addf %702, %704 : vector<2x256xf32>
    %706 = vector.extract_strided_slice %705 {offsets = [0, 0], sizes = [2, 128], strides = [1, 1]} : vector<2x256xf32> to vector<2x128xf32>
    %707 = arith.negf %706 : vector<2x128xf32>
    %708 = math.exp %707 : vector<2x128xf32>
    %cst_222 = arith.constant 1.000000e+00 : f32
    %709 = vector.broadcast %cst_222 : f32 to vector<2x128xf32>
    %710 = arith.addf %709, %708 : vector<2x128xf32>
    %711 = arith.divf %709, %710 : vector<2x128xf32>
    %712 = math.tanh %706 : vector<2x128xf32>
    %713 = vector.extract_strided_slice %711 {offsets = [0, 0], sizes = [2, 32], strides = [1, 1]} : vector<2x128xf32> to vector<2x32xf32>
    %714 = vector.extract_strided_slice %711 {offsets = [0, 32], sizes = [2, 32], strides = [1, 1]} : vector<2x128xf32> to vector<2x32xf32>
    %715 = vector.extract_strided_slice %711 {offsets = [0, 96], sizes = [2, 32], strides = [1, 1]} : vector<2x128xf32> to vector<2x32xf32>
    %716 = vector.extract_strided_slice %712 {offsets = [0, 64], sizes = [2, 32], strides = [1, 1]} : vector<2x128xf32> to vector<2x32xf32>
    %717 = arith.mulf %714, %673 : vector<2x32xf32>
    %718 = arith.mulf %713, %716 : vector<2x32xf32>
    %719 = arith.addf %717, %718 : vector<2x32xf32>
    %720 = math.tanh %719 : vector<2x32xf32>
    %721 = arith.mulf %715, %720 : vector<2x32xf32>
    %722 = vector.extract_strided_slice %705 {offsets = [0, 128], sizes = [2, 128], strides = [1, 1]} : vector<2x256xf32> to vector<2x128xf32>
    %723 = arith.negf %722 : vector<2x128xf32>
    %724 = math.exp %723 : vector<2x128xf32>
    %cst_223 = arith.constant 1.000000e+00 : f32
    %725 = vector.broadcast %cst_223 : f32 to vector<2x128xf32>
    %726 = arith.addf %725, %724 : vector<2x128xf32>
    %727 = arith.divf %725, %726 : vector<2x128xf32>
    %728 = math.tanh %722 : vector<2x128xf32>
    %729 = vector.extract_strided_slice %727 {offsets = [0, 0], sizes = [2, 32], strides = [1, 1]} : vector<2x128xf32> to vector<2x32xf32>
    %730 = vector.extract_strided_slice %727 {offsets = [0, 32], sizes = [2, 32], strides = [1, 1]} : vector<2x128xf32> to vector<2x32xf32>
    %731 = vector.extract_strided_slice %727 {offsets = [0, 96], sizes = [2, 32], strides = [1, 1]} : vector<2x128xf32> to vector<2x32xf32>
    %732 = vector.extract_strided_slice %728 {offsets = [0, 64], sizes = [2, 32], strides = [1, 1]} : vector<2x128xf32> to vector<2x32xf32>
    %733 = arith.mulf %730, %689 : vector<2x32xf32>
    %734 = arith.mulf %729, %732 : vector<2x32xf32>
    %735 = arith.addf %733, %734 : vector<2x32xf32>
    %736 = math.tanh %735 : vector<2x32xf32>
    %737 = arith.mulf %731, %736 : vector<2x32xf32>
    %c15_224 = arith.constant 15 : index
    %c0_225 = arith.constant 0 : index
    %c0_226 = arith.constant 0 : index
    %738 = vector.load %arg6[%c15_224, %c0_225, %c0_226] : memref<20x2x32xf32, #tpu.memory_space<vmem>>, vector<1x2x32xf32>
    %739 = vector.shape_cast %738 : vector<1x2x32xf32> to vector<2x32xf32>
    %740 = vector.shape_cast %721 : vector<2x32xf32> to vector<1x2x32xf32>
    tpu.vector_store %arg6[%c15_224, %c0_225, %c0_226], %740 {strides = array<i32>} : memref<20x2x32xf32, #tpu.memory_space<vmem>>, vector<1x2x32xf32>,
    %c4_227 = arith.constant 4 : index
    %c0_228 = arith.constant 0 : index
    %c0_229 = arith.constant 0 : index
    %741 = vector.load %arg7[%c4_227, %c0_228, %c0_229] : memref<20x2x32xf32, #tpu.memory_space<vmem>>, vector<1x2x32xf32>
    %742 = vector.shape_cast %741 : vector<1x2x32xf32> to vector<2x32xf32>
    %743 = vector.shape_cast %737 : vector<2x32xf32> to vector<1x2x32xf32>
    tpu.vector_store %arg7[%c4_227, %c0_228, %c0_229], %743 {strides = array<i32>} : memref<20x2x32xf32, #tpu.memory_space<vmem>>, vector<1x2x32xf32>,
    %c16_230 = arith.constant 16 : index
    %c0_231 = arith.constant 0 : index
    %c0_232 = arith.constant 0 : index
    %744 = vector.load %arg1[%c16_230, %c0_231, %c0_232] : memref<20x2x128xf32, #tpu.memory_space<vmem>>, vector<1x2x128xf32>
    %745 = vector.shape_cast %744 : vector<1x2x128xf32> to vector<2x128xf32>
    %c3_233 = arith.constant 3 : index
    %c0_234 = arith.constant 0 : index
    %c0_235 = arith.constant 0 : index
    %746 = vector.load %arg2[%c3_233, %c0_234, %c0_235] : memref<20x2x128xf32, #tpu.memory_space<vmem>>, vector<1x2x128xf32>
    %747 = vector.shape_cast %746 : vector<1x2x128xf32> to vector<2x128xf32>
    %748 = tpu.concatenate %745, %747 in 1 : vector<2x128xf32>, vector<2x128xf32> -> vector<2x256xf32>
    %749 = tpu.concatenate %721, %737 in 1 : vector<2x32xf32>, vector<2x32xf32> -> vector<2x64xf32>
    %cst_236 = arith.constant dense<0.000000e+00> : vector<2x256xf32>
    %750 = tpu.matmul %749, %3, %cst_236 {dimension_numbers = #tpu.dot_dimension_numbers<[1], [0], [0], [1], [0, 0, 1, 1], [], []>} : vector<2x64xf32>, vector<64x256xf32>, vector<2x256xf32> -> vector<2x256xf32>
    %751 = arith.addf %748, %750 : vector<2x256xf32>
    %752 = vector.extract_strided_slice %751 {offsets = [0, 0], sizes = [2, 128], strides = [1, 1]} : vector<2x256xf32> to vector<2x128xf32>
    %753 = arith.negf %752 : vector<2x128xf32>
    %754 = math.exp %753 : vector<2x128xf32>
    %cst_237 = arith.constant 1.000000e+00 : f32
    %755 = vector.broadcast %cst_237 : f32 to vector<2x128xf32>
    %756 = arith.addf %755, %754 : vector<2x128xf32>
    %757 = arith.divf %755, %756 : vector<2x128xf32>
    %758 = math.tanh %752 : vector<2x128xf32>
    %759 = vector.extract_strided_slice %757 {offsets = [0, 0], sizes = [2, 32], strides = [1, 1]} : vector<2x128xf32> to vector<2x32xf32>
    %760 = vector.extract_strided_slice %757 {offsets = [0, 32], sizes = [2, 32], strides = [1, 1]} : vector<2x128xf32> to vector<2x32xf32>
    %761 = vector.extract_strided_slice %757 {offsets = [0, 96], sizes = [2, 32], strides = [1, 1]} : vector<2x128xf32> to vector<2x32xf32>
    %762 = vector.extract_strided_slice %758 {offsets = [0, 64], sizes = [2, 32], strides = [1, 1]} : vector<2x128xf32> to vector<2x32xf32>
    %763 = arith.mulf %760, %719 : vector<2x32xf32>
    %764 = arith.mulf %759, %762 : vector<2x32xf32>
    %765 = arith.addf %763, %764 : vector<2x32xf32>
    %766 = math.tanh %765 : vector<2x32xf32>
    %767 = arith.mulf %761, %766 : vector<2x32xf32>
    %768 = vector.extract_strided_slice %751 {offsets = [0, 128], sizes = [2, 128], strides = [1, 1]} : vector<2x256xf32> to vector<2x128xf32>
    %769 = arith.negf %768 : vector<2x128xf32>
    %770 = math.exp %769 : vector<2x128xf32>
    %cst_238 = arith.constant 1.000000e+00 : f32
    %771 = vector.broadcast %cst_238 : f32 to vector<2x128xf32>
    %772 = arith.addf %771, %770 : vector<2x128xf32>
    %773 = arith.divf %771, %772 : vector<2x128xf32>
    %774 = math.tanh %768 : vector<2x128xf32>
    %775 = vector.extract_strided_slice %773 {offsets = [0, 0], sizes = [2, 32], strides = [1, 1]} : vector<2x128xf32> to vector<2x32xf32>
    %776 = vector.extract_strided_slice %773 {offsets = [0, 32], sizes = [2, 32], strides = [1, 1]} : vector<2x128xf32> to vector<2x32xf32>
    %777 = vector.extract_strided_slice %773 {offsets = [0, 96], sizes = [2, 32], strides = [1, 1]} : vector<2x128xf32> to vector<2x32xf32>
    %778 = vector.extract_strided_slice %774 {offsets = [0, 64], sizes = [2, 32], strides = [1, 1]} : vector<2x128xf32> to vector<2x32xf32>
    %779 = arith.mulf %776, %735 : vector<2x32xf32>
    %780 = arith.mulf %775, %778 : vector<2x32xf32>
    %781 = arith.addf %779, %780 : vector<2x32xf32>
    %782 = math.tanh %781 : vector<2x32xf32>
    %783 = arith.mulf %777, %782 : vector<2x32xf32>
    %c16_239 = arith.constant 16 : index
    %c0_240 = arith.constant 0 : index
    %c0_241 = arith.constant 0 : index
    %784 = vector.load %arg6[%c16_239, %c0_240, %c0_241] : memref<20x2x32xf32, #tpu.memory_space<vmem>>, vector<1x2x32xf32>
    %785 = vector.shape_cast %784 : vector<1x2x32xf32> to vector<2x32xf32>
    %786 = vector.shape_cast %767 : vector<2x32xf32> to vector<1x2x32xf32>
    tpu.vector_store %arg6[%c16_239, %c0_240, %c0_241], %786 {strides = array<i32>} : memref<20x2x32xf32, #tpu.memory_space<vmem>>, vector<1x2x32xf32>,
    %c3_242 = arith.constant 3 : index
    %c0_243 = arith.constant 0 : index
    %c0_244 = arith.constant 0 : index
    %787 = vector.load %arg7[%c3_242, %c0_243, %c0_244] : memref<20x2x32xf32, #tpu.memory_space<vmem>>, vector<1x2x32xf32>
    %788 = vector.shape_cast %787 : vector<1x2x32xf32> to vector<2x32xf32>
    %789 = vector.shape_cast %783 : vector<2x32xf32> to vector<1x2x32xf32>
    tpu.vector_store %arg7[%c3_242, %c0_243, %c0_244], %789 {strides = array<i32>} : memref<20x2x32xf32, #tpu.memory_space<vmem>>, vector<1x2x32xf32>,
    %c17_245 = arith.constant 17 : index
    %c0_246 = arith.constant 0 : index
    %c0_247 = arith.constant 0 : index
    %790 = vector.load %arg1[%c17_245, %c0_246, %c0_247] : memref<20x2x128xf32, #tpu.memory_space<vmem>>, vector<1x2x128xf32>
    %791 = vector.shape_cast %790 : vector<1x2x128xf32> to vector<2x128xf32>
    %c2_248 = arith.constant 2 : index
    %c0_249 = arith.constant 0 : index
    %c0_250 = arith.constant 0 : index
    %792 = vector.load %arg2[%c2_248, %c0_249, %c0_250] : memref<20x2x128xf32, #tpu.memory_space<vmem>>, vector<1x2x128xf32>
    %793 = vector.shape_cast %792 : vector<1x2x128xf32> to vector<2x128xf32>
    %794 = tpu.concatenate %791, %793 in 1 : vector<2x128xf32>, vector<2x128xf32> -> vector<2x256xf32>
    %795 = tpu.concatenate %767, %783 in 1 : vector<2x32xf32>, vector<2x32xf32> -> vector<2x64xf32>
    %cst_251 = arith.constant dense<0.000000e+00> : vector<2x256xf32>
    %796 = tpu.matmul %795, %3, %cst_251 {dimension_numbers = #tpu.dot_dimension_numbers<[1], [0], [0], [1], [0, 0, 1, 1], [], []>} : vector<2x64xf32>, vector<64x256xf32>, vector<2x256xf32> -> vector<2x256xf32>
    %797 = arith.addf %794, %796 : vector<2x256xf32>
    %798 = vector.extract_strided_slice %797 {offsets = [0, 0], sizes = [2, 128], strides = [1, 1]} : vector<2x256xf32> to vector<2x128xf32>
    %799 = arith.negf %798 : vector<2x128xf32>
    %800 = math.exp %799 : vector<2x128xf32>
    %cst_252 = arith.constant 1.000000e+00 : f32
    %801 = vector.broadcast %cst_252 : f32 to vector<2x128xf32>
    %802 = arith.addf %801, %800 : vector<2x128xf32>
    %803 = arith.divf %801, %802 : vector<2x128xf32>
    %804 = math.tanh %798 : vector<2x128xf32>
    %805 = vector.extract_strided_slice %803 {offsets = [0, 0], sizes = [2, 32], strides = [1, 1]} : vector<2x128xf32> to vector<2x32xf32>
    %806 = vector.extract_strided_slice %803 {offsets = [0, 32], sizes = [2, 32], strides = [1, 1]} : vector<2x128xf32> to vector<2x32xf32>
    %807 = vector.extract_strided_slice %803 {offsets = [0, 96], sizes = [2, 32], strides = [1, 1]} : vector<2x128xf32> to vector<2x32xf32>
    %808 = vector.extract_strided_slice %804 {offsets = [0, 64], sizes = [2, 32], strides = [1, 1]} : vector<2x128xf32> to vector<2x32xf32>
    %809 = arith.mulf %806, %765 : vector<2x32xf32>
    %810 = arith.mulf %805, %808 : vector<2x32xf32>
    %811 = arith.addf %809, %810 : vector<2x32xf32>
    %812 = math.tanh %811 : vector<2x32xf32>
    %813 = arith.mulf %807, %812 : vector<2x32xf32>
    %814 = vector.extract_strided_slice %797 {offsets = [0, 128], sizes = [2, 128], strides = [1, 1]} : vector<2x256xf32> to vector<2x128xf32>
    %815 = arith.negf %814 : vector<2x128xf32>
    %816 = math.exp %815 : vector<2x128xf32>
    %cst_253 = arith.constant 1.000000e+00 : f32
    %817 = vector.broadcast %cst_253 : f32 to vector<2x128xf32>
    %818 = arith.addf %817, %816 : vector<2x128xf32>
    %819 = arith.divf %817, %818 : vector<2x128xf32>
    %820 = math.tanh %814 : vector<2x128xf32>
    %821 = vector.extract_strided_slice %819 {offsets = [0, 0], sizes = [2, 32], strides = [1, 1]} : vector<2x128xf32> to vector<2x32xf32>
    %822 = vector.extract_strided_slice %819 {offsets = [0, 32], sizes = [2, 32], strides = [1, 1]} : vector<2x128xf32> to vector<2x32xf32>
    %823 = vector.extract_strided_slice %819 {offsets = [0, 96], sizes = [2, 32], strides = [1, 1]} : vector<2x128xf32> to vector<2x32xf32>
    %824 = vector.extract_strided_slice %820 {offsets = [0, 64], sizes = [2, 32], strides = [1, 1]} : vector<2x128xf32> to vector<2x32xf32>
    %825 = arith.mulf %822, %781 : vector<2x32xf32>
    %826 = arith.mulf %821, %824 : vector<2x32xf32>
    %827 = arith.addf %825, %826 : vector<2x32xf32>
    %828 = math.tanh %827 : vector<2x32xf32>
    %829 = arith.mulf %823, %828 : vector<2x32xf32>
    %c17_254 = arith.constant 17 : index
    %c0_255 = arith.constant 0 : index
    %c0_256 = arith.constant 0 : index
    %830 = vector.load %arg6[%c17_254, %c0_255, %c0_256] : memref<20x2x32xf32, #tpu.memory_space<vmem>>, vector<1x2x32xf32>
    %831 = vector.shape_cast %830 : vector<1x2x32xf32> to vector<2x32xf32>
    %832 = vector.shape_cast %813 : vector<2x32xf32> to vector<1x2x32xf32>
    tpu.vector_store %arg6[%c17_254, %c0_255, %c0_256], %832 {strides = array<i32>} : memref<20x2x32xf32, #tpu.memory_space<vmem>>, vector<1x2x32xf32>,
    %c2_257 = arith.constant 2 : index
    %c0_258 = arith.constant 0 : index
    %c0_259 = arith.constant 0 : index
    %833 = vector.load %arg7[%c2_257, %c0_258, %c0_259] : memref<20x2x32xf32, #tpu.memory_space<vmem>>, vector<1x2x32xf32>
    %834 = vector.shape_cast %833 : vector<1x2x32xf32> to vector<2x32xf32>
    %835 = vector.shape_cast %829 : vector<2x32xf32> to vector<1x2x32xf32>
    tpu.vector_store %arg7[%c2_257, %c0_258, %c0_259], %835 {strides = array<i32>} : memref<20x2x32xf32, #tpu.memory_space<vmem>>, vector<1x2x32xf32>,
    %c18_260 = arith.constant 18 : index
    %c0_261 = arith.constant 0 : index
    %c0_262 = arith.constant 0 : index
    %836 = vector.load %arg1[%c18_260, %c0_261, %c0_262] : memref<20x2x128xf32, #tpu.memory_space<vmem>>, vector<1x2x128xf32>
    %837 = vector.shape_cast %836 : vector<1x2x128xf32> to vector<2x128xf32>
    %c1_263 = arith.constant 1 : index
    %c0_264 = arith.constant 0 : index
    %c0_265 = arith.constant 0 : index
    %838 = vector.load %arg2[%c1_263, %c0_264, %c0_265] : memref<20x2x128xf32, #tpu.memory_space<vmem>>, vector<1x2x128xf32>
    %839 = vector.shape_cast %838 : vector<1x2x128xf32> to vector<2x128xf32>
    %840 = tpu.concatenate %837, %839 in 1 : vector<2x128xf32>, vector<2x128xf32> -> vector<2x256xf32>
    %841 = tpu.concatenate %813, %829 in 1 : vector<2x32xf32>, vector<2x32xf32> -> vector<2x64xf32>
    %cst_266 = arith.constant dense<0.000000e+00> : vector<2x256xf32>
    %842 = tpu.matmul %841, %3, %cst_266 {dimension_numbers = #tpu.dot_dimension_numbers<[1], [0], [0], [1], [0, 0, 1, 1], [], []>} : vector<2x64xf32>, vector<64x256xf32>, vector<2x256xf32> -> vector<2x256xf32>
    %843 = arith.addf %840, %842 : vector<2x256xf32>
    %844 = vector.extract_strided_slice %843 {offsets = [0, 0], sizes = [2, 128], strides = [1, 1]} : vector<2x256xf32> to vector<2x128xf32>
    %845 = arith.negf %844 : vector<2x128xf32>
    %846 = math.exp %845 : vector<2x128xf32>
    %cst_267 = arith.constant 1.000000e+00 : f32
    %847 = vector.broadcast %cst_267 : f32 to vector<2x128xf32>
    %848 = arith.addf %847, %846 : vector<2x128xf32>
    %849 = arith.divf %847, %848 : vector<2x128xf32>
    %850 = math.tanh %844 : vector<2x128xf32>
    %851 = vector.extract_strided_slice %849 {offsets = [0, 0], sizes = [2, 32], strides = [1, 1]} : vector<2x128xf32> to vector<2x32xf32>
    %852 = vector.extract_strided_slice %849 {offsets = [0, 32], sizes = [2, 32], strides = [1, 1]} : vector<2x128xf32> to vector<2x32xf32>
    %853 = vector.extract_strided_slice %849 {offsets = [0, 96], sizes = [2, 32], strides = [1, 1]} : vector<2x128xf32> to vector<2x32xf32>
    %854 = vector.extract_strided_slice %850 {offsets = [0, 64], sizes = [2, 32], strides = [1, 1]} : vector<2x128xf32> to vector<2x32xf32>
    %855 = arith.mulf %852, %811 : vector<2x32xf32>
    %856 = arith.mulf %851, %854 : vector<2x32xf32>
    %857 = arith.addf %855, %856 : vector<2x32xf32>
    %858 = math.tanh %857 : vector<2x32xf32>
    %859 = arith.mulf %853, %858 : vector<2x32xf32>
    %860 = vector.extract_strided_slice %843 {offsets = [0, 128], sizes = [2, 128], strides = [1, 1]} : vector<2x256xf32> to vector<2x128xf32>
    %861 = arith.negf %860 : vector<2x128xf32>
    %862 = math.exp %861 : vector<2x128xf32>
    %cst_268 = arith.constant 1.000000e+00 : f32
    %863 = vector.broadcast %cst_268 : f32 to vector<2x128xf32>
    %864 = arith.addf %863, %862 : vector<2x128xf32>
    %865 = arith.divf %863, %864 : vector<2x128xf32>
    %866 = math.tanh %860 : vector<2x128xf32>
    %867 = vector.extract_strided_slice %865 {offsets = [0, 0], sizes = [2, 32], strides = [1, 1]} : vector<2x128xf32> to vector<2x32xf32>
    %868 = vector.extract_strided_slice %865 {offsets = [0, 32], sizes = [2, 32], strides = [1, 1]} : vector<2x128xf32> to vector<2x32xf32>
    %869 = vector.extract_strided_slice %865 {offsets = [0, 96], sizes = [2, 32], strides = [1, 1]} : vector<2x128xf32> to vector<2x32xf32>
    %870 = vector.extract_strided_slice %866 {offsets = [0, 64], sizes = [2, 32], strides = [1, 1]} : vector<2x128xf32> to vector<2x32xf32>
    %871 = arith.mulf %868, %827 : vector<2x32xf32>
    %872 = arith.mulf %867, %870 : vector<2x32xf32>
    %873 = arith.addf %871, %872 : vector<2x32xf32>
    %874 = math.tanh %873 : vector<2x32xf32>
    %875 = arith.mulf %869, %874 : vector<2x32xf32>
    %c18_269 = arith.constant 18 : index
    %c0_270 = arith.constant 0 : index
    %c0_271 = arith.constant 0 : index
    %876 = vector.load %arg6[%c18_269, %c0_270, %c0_271] : memref<20x2x32xf32, #tpu.memory_space<vmem>>, vector<1x2x32xf32>
    %877 = vector.shape_cast %876 : vector<1x2x32xf32> to vector<2x32xf32>
    %878 = vector.shape_cast %859 : vector<2x32xf32> to vector<1x2x32xf32>
    tpu.vector_store %arg6[%c18_269, %c0_270, %c0_271], %878 {strides = array<i32>} : memref<20x2x32xf32, #tpu.memory_space<vmem>>, vector<1x2x32xf32>,
    %c1_272 = arith.constant 1 : index
    %c0_273 = arith.constant 0 : index
    %c0_274 = arith.constant 0 : index
    %879 = vector.load %arg7[%c1_272, %c0_273, %c0_274] : memref<20x2x32xf32, #tpu.memory_space<vmem>>, vector<1x2x32xf32>
    %880 = vector.shape_cast %879 : vector<1x2x32xf32> to vector<2x32xf32>
    %881 = vector.shape_cast %875 : vector<2x32xf32> to vector<1x2x32xf32>
    tpu.vector_store %arg7[%c1_272, %c0_273, %c0_274], %881 {strides = array<i32>} : memref<20x2x32xf32, #tpu.memory_space<vmem>>, vector<1x2x32xf32>,
    %c19_275 = arith.constant 19 : index
    %c0_276 = arith.constant 0 : index
    %c0_277 = arith.constant 0 : index
    %882 = vector.load %arg1[%c19_275, %c0_276, %c0_277] : memref<20x2x128xf32, #tpu.memory_space<vmem>>, vector<1x2x128xf32>
    %883 = vector.shape_cast %882 : vector<1x2x128xf32> to vector<2x128xf32>
    %c0_278 = arith.constant 0 : index
    %c0_279 = arith.constant 0 : index
    %c0_280 = arith.constant 0 : index
    %884 = vector.load %arg2[%c0_278, %c0_279, %c0_280] : memref<20x2x128xf32, #tpu.memory_space<vmem>>, vector<1x2x128xf32>
    %885 = vector.shape_cast %884 : vector<1x2x128xf32> to vector<2x128xf32>
    %886 = tpu.concatenate %883, %885 in 1 : vector<2x128xf32>, vector<2x128xf32> -> vector<2x256xf32>
    %887 = tpu.concatenate %859, %875 in 1 : vector<2x32xf32>, vector<2x32xf32> -> vector<2x64xf32>
    %cst_281 = arith.constant dense<0.000000e+00> : vector<2x256xf32>
    %888 = tpu.matmul %887, %3, %cst_281 {dimension_numbers = #tpu.dot_dimension_numbers<[1], [0], [0], [1], [0, 0, 1, 1], [], []>} : vector<2x64xf32>, vector<64x256xf32>, vector<2x256xf32> -> vector<2x256xf32>
    %889 = arith.addf %886, %888 : vector<2x256xf32>
    %890 = vector.extract_strided_slice %889 {offsets = [0, 0], sizes = [2, 128], strides = [1, 1]} : vector<2x256xf32> to vector<2x128xf32>
    %891 = arith.negf %890 : vector<2x128xf32>
    %892 = math.exp %891 : vector<2x128xf32>
    %cst_282 = arith.constant 1.000000e+00 : f32
    %893 = vector.broadcast %cst_282 : f32 to vector<2x128xf32>
    %894 = arith.addf %893, %892 : vector<2x128xf32>
    %895 = arith.divf %893, %894 : vector<2x128xf32>
    %896 = math.tanh %890 : vector<2x128xf32>
    %897 = vector.extract_strided_slice %895 {offsets = [0, 0], sizes = [2, 32], strides = [1, 1]} : vector<2x128xf32> to vector<2x32xf32>
    %898 = vector.extract_strided_slice %895 {offsets = [0, 32], sizes = [2, 32], strides = [1, 1]} : vector<2x128xf32> to vector<2x32xf32>
    %899 = vector.extract_strided_slice %895 {offsets = [0, 96], sizes = [2, 32], strides = [1, 1]} : vector<2x128xf32> to vector<2x32xf32>
    %900 = vector.extract_strided_slice %896 {offsets = [0, 64], sizes = [2, 32], strides = [1, 1]} : vector<2x128xf32> to vector<2x32xf32>
    %901 = arith.mulf %898, %857 : vector<2x32xf32>
    %902 = arith.mulf %897, %900 : vector<2x32xf32>
    %903 = arith.addf %901, %902 : vector<2x32xf32>
    %904 = math.tanh %903 : vector<2x32xf32>
    %905 = arith.mulf %899, %904 : vector<2x32xf32>
    %906 = vector.extract_strided_slice %889 {offsets = [0, 128], sizes = [2, 128], strides = [1, 1]} : vector<2x256xf32> to vector<2x128xf32>
    %907 = arith.negf %906 : vector<2x128xf32>
    %908 = math.exp %907 : vector<2x128xf32>
    %cst_283 = arith.constant 1.000000e+00 : f32
    %909 = vector.broadcast %cst_283 : f32 to vector<2x128xf32>
    %910 = arith.addf %909, %908 : vector<2x128xf32>
    %911 = arith.divf %909, %910 : vector<2x128xf32>
    %912 = math.tanh %906 : vector<2x128xf32>
    %913 = vector.extract_strided_slice %911 {offsets = [0, 0], sizes = [2, 32], strides = [1, 1]} : vector<2x128xf32> to vector<2x32xf32>
    %914 = vector.extract_strided_slice %911 {offsets = [0, 32], sizes = [2, 32], strides = [1, 1]} : vector<2x128xf32> to vector<2x32xf32>
    %915 = vector.extract_strided_slice %911 {offsets = [0, 96], sizes = [2, 32], strides = [1, 1]} : vector<2x128xf32> to vector<2x32xf32>
    %916 = vector.extract_strided_slice %912 {offsets = [0, 64], sizes = [2, 32], strides = [1, 1]} : vector<2x128xf32> to vector<2x32xf32>
    %917 = arith.mulf %914, %873 : vector<2x32xf32>
    %918 = arith.mulf %913, %916 : vector<2x32xf32>
    %919 = arith.addf %917, %918 : vector<2x32xf32>
    %920 = math.tanh %919 : vector<2x32xf32>
    %921 = arith.mulf %915, %920 : vector<2x32xf32>
    %c19_284 = arith.constant 19 : index
    %c0_285 = arith.constant 0 : index
    %c0_286 = arith.constant 0 : index
    %922 = vector.load %arg6[%c19_284, %c0_285, %c0_286] : memref<20x2x32xf32, #tpu.memory_space<vmem>>, vector<1x2x32xf32>
    %923 = vector.shape_cast %922 : vector<1x2x32xf32> to vector<2x32xf32>
    %924 = vector.shape_cast %905 : vector<2x32xf32> to vector<1x2x32xf32>
    tpu.vector_store %arg6[%c19_284, %c0_285, %c0_286], %924 {strides = array<i32>} : memref<20x2x32xf32, #tpu.memory_space<vmem>>, vector<1x2x32xf32>,
    %c0_287 = arith.constant 0 : index
    %c0_288 = arith.constant 0 : index
    %c0_289 = arith.constant 0 : index
    %925 = vector.load %arg7[%c0_287, %c0_288, %c0_289] : memref<20x2x32xf32, #tpu.memory_space<vmem>>, vector<1x2x32xf32>
    %926 = vector.shape_cast %925 : vector<1x2x32xf32> to vector<2x32xf32>
    %927 = vector.shape_cast %921 : vector<2x32xf32> to vector<1x2x32xf32>
    tpu.vector_store %arg7[%c0_287, %c0_288, %c0_289], %927 {strides = array<i32>} : memref<20x2x32xf32, #tpu.memory_space<vmem>>, vector<1x2x32xf32>,
    %c0_i32_290 = arith.constant 0 : i32
    %928 = arith.cmpi eq, %arg0, %c0_i32_290 : i32
    %929 = arith.extui %928 : i1 to i32
    %c0_i32_291 = arith.constant 0 : i32
    %930 = arith.cmpi ne, %929, %c0_i32_291 : i32
    scf.if %930 {
      %c0_292 = arith.constant 0 : index
      %c0_293 = arith.constant 0 : index
      %c0_294 = arith.constant 0 : index
      %931 = vector.load %arg8[%c0_292, %c0_293, %c0_294] : memref<2x2x32xf32, #tpu.memory_space<vmem>>, vector<1x2x32xf32>
      %932 = vector.shape_cast %931 : vector<1x2x32xf32> to vector<2x32xf32>
      %933 = vector.shape_cast %905 : vector<2x32xf32> to vector<1x2x32xf32>
      tpu.vector_store %arg8[%c0_292, %c0_293, %c0_294], %933 {strides = array<i32>} : memref<2x2x32xf32, #tpu.memory_space<vmem>>, vector<1x2x32xf32>,
      %c1_295 = arith.constant 1 : index
      %c0_296 = arith.constant 0 : index
      %c0_297 = arith.constant 0 : index
      %934 = vector.load %arg8[%c1_295, %c0_296, %c0_297] : memref<2x2x32xf32, #tpu.memory_space<vmem>>, vector<1x2x32xf32>
      %935 = vector.shape_cast %934 : vector<1x2x32xf32> to vector<2x32xf32>
      %936 = vector.shape_cast %921 : vector<2x32xf32> to vector<1x2x32xf32>
      tpu.vector_store %arg8[%c1_295, %c0_296, %c0_297], %936 {strides = array<i32>} : memref<2x2x32xf32, #tpu.memory_space<vmem>>, vector<1x2x32xf32>,
      %c0_298 = arith.constant 0 : index
      %c0_299 = arith.constant 0 : index
      %c0_300 = arith.constant 0 : index
      %937 = vector.load %arg9[%c0_298, %c0_299, %c0_300] : memref<2x2x32xf32, #tpu.memory_space<vmem>>, vector<1x2x32xf32>
      %938 = vector.shape_cast %937 : vector<1x2x32xf32> to vector<2x32xf32>
      %939 = vector.shape_cast %903 : vector<2x32xf32> to vector<1x2x32xf32>
      tpu.vector_store %arg9[%c0_298, %c0_299, %c0_300], %939 {strides = array<i32>} : memref<2x2x32xf32, #tpu.memory_space<vmem>>, vector<1x2x32xf32>,
      %c1_301 = arith.constant 1 : index
      %c0_302 = arith.constant 0 : index
      %c0_303 = arith.constant 0 : index
      %940 = vector.load %arg9[%c1_301, %c0_302, %c0_303] : memref<2x2x32xf32, #tpu.memory_space<vmem>>, vector<1x2x32xf32>
      %941 = vector.shape_cast %940 : vector<1x2x32xf32> to vector<2x32xf32>
      %942 = vector.shape_cast %919 : vector<2x32xf32> to vector<1x2x32xf32>
      tpu.vector_store %arg9[%c1_301, %c0_302, %c0_303], %942 {strides = array<i32>} : memref<2x2x32xf32, #tpu.memory_space<vmem>>, vector<1x2x32xf32>,
    } else {
    }
    return
  }
  func.func @transform_0(%arg0: i32) -> (i32, i32, i32) {
    %c0_i32 = arith.constant 0 : i32
    %c0_i32_0 = arith.constant 0 : i32
    %c0_i32_1 = arith.constant 0 : i32
    return %arg0, %c0_i32, %c0_i32_0 : i32, i32, i32
  }
  func.func @transform_1(%arg0: i32) -> (i32, i32, i32) {
    %c0_i32 = arith.constant 0 : i32
    %0 = arith.subi %c0_i32, %arg0 : i32
    %c0_i32_0 = arith.constant 0 : i32
    %c0_i32_1 = arith.constant 0 : i32
    %c0_i32_2 = arith.constant 0 : i32
    return %0, %c0_i32_0, %c0_i32_1 : i32, i32, i32
  }
  func.func @transform_2(%arg0: i32) -> (i32, i32, i32) {
    %c0_i32 = arith.constant 0 : i32
    %c0_i32_0 = arith.constant 0 : i32
    %c0_i32_1 = arith.constant 0 : i32
    %c0_i32_2 = arith.constant 0 : i32
    return %c0_i32, %c0_i32_0, %c0_i32_1 : i32, i32, i32
  }
  func.func @transform_3(%arg0: i32) -> (i32, i32, i32) {
    %c0_i32 = arith.constant 0 : i32
    %c0_i32_0 = arith.constant 0 : i32
    %c0_i32_1 = arith.constant 0 : i32
    %c0_i32_2 = arith.constant 0 : i32
    return %c0_i32, %c0_i32_0, %c0_i32_1 : i32, i32, i32
  }
  func.func @transform_4(%arg0: i32) -> (i32, i32) {
    %c0_i32 = arith.constant 0 : i32
    %c0_i32_0 = arith.constant 0 : i32
    %c0_i32_1 = arith.constant 0 : i32
    return %c0_i32, %c0_i32_0 : i32, i32
  }
  func.func @transform_5(%arg0: i32) -> (i32, i32, i32) {
    %c0_i32 = arith.constant 0 : i32
    %c0_i32_0 = arith.constant 0 : i32
    %c0_i32_1 = arith.constant 0 : i32
    return %arg0, %c0_i32, %c0_i32_0 : i32, i32, i32
  }
  func.func @transform_6(%arg0: i32) -> (i32, i32, i32) {
    %c0_i32 = arith.constant 0 : i32
    %0 = arith.subi %c0_i32, %arg0 : i32
    %c0_i32_0 = arith.constant 0 : i32
    %c0_i32_1 = arith.constant 0 : i32
    %c0_i32_2 = arith.constant 0 : i32
    return %0, %c0_i32_0, %c0_i32_1 : i32, i32, i32
  }
  func.func @transform_7(%arg0: i32) -> (i32, i32, i32) {
    %c0_i32 = arith.constant 0 : i32
    %c0_i32_0 = arith.constant 0 : i32
    %c0_i32_1 = arith.constant 0 : i32
    %c0_i32_2 = arith.constant 0 : i32
    return %c0_i32, %c0_i32_0, %c0_i32_1 : i32, i32, i32
  }
  func.func @transform_8(%arg0: i32) -> (i32, i32, i32) {
    %c0_i32 = arith.constant 0 : i32
    %c0_i32_0 = arith.constant 0 : i32
    %c0_i32_1 = arith.constant 0 : i32
    %c0_i32_2 = arith.constant 0 : i32
    return %c0_i32, %c0_i32_0, %c0_i32_1 : i32, i32, i32
  }
}

</mosaic_0001>

<bundles_post_ra>
// kernel: single_lstm_forward.3
= control target key start
LH: loop header
LB: loop body
LE: loop exit
PB: predicated region body
PF: predicated region fallthrough
CT: control target
= control target key end

     0   :  { %vm31_vm0 = vcmask 130048   ;;  %s238_s1 = inlined_call_operand.vmem [shape: f32[16,256], index: 1, kind: input, shape index: {}]   ;;  %s239_s0 = inlined_call_operand.vmem [shape: f32[40,16], index: 0, kind: input, shape index: {}]   ;;  %s240_s2 = inlined_call_operand.vmem [shape: f32[1,256], index: 2, kind: input, shape index: {}]   ;;  %s241_s3 = inlined_call_operand.vmem [shape: f32[40,128], index: 3, kind: output, shape index: {0}]   ;;  %s242_s4 = inlined_call_operand.vmem [shape: f32[40,128], index: 4, kind: output, shape index: {1}]  }
   0x1   :  { %v23_v0 = vld [vmem:[%s238_s1 + $0x10] sm:$0xff]  ;;  %v24_v1 = vld [vmem:[%s238_s1 + $0x18] sm:$0xff]  ;;  %v21_v2 = vld [vmem:[%s238_s1] sm:$0xff] }
   0x2   :  { %61 = vmatpush.msra.mxu0 %v23_v0  ;;  %93 = vmatpush.msra.mxu1 %v24_v1  ;;  %v22_v3 = vld [vmem:[%s238_s1 + $0x8] sm:$0xff]  ;;  %v16_v4 = vld [vmem:[%s239_s0] sm:$0xff]  ;;  %v19_v5 = vld [vmem:[%s239_s0 + $0x18] sm:$0xff] }
   0x3   :  { %139 = vmatpush.msra.mxu2 %v23_v0  ;;  %141 = vmatpush.msra.mxu3 %v24_v1  ;;  %v17_v6 = vld [vmem:[%s239_s0 + $0x8] sm:$0xff]  ;;  %v20_v7 = vld [vmem:[%s239_s0 + $0x20] sm:$0xff]  ;;  %v18_v8 = vld [vmem:[%s239_s0 + $0x10] sm:$0xff] }
   0x4   :  { %62 = vmatpush.msra.mxu0 %v21_v2  ;;  %94 = vmatpush.msra.mxu1 %v22_v3  ;;  %v25_v9 = vld [vmem:[%s240_s2] sm:$0x3] }
   0x5   :  { %129 = vmatmul.msk.f32.vlgmr.msra.gmra.mxu0 %vm31_vm0, %v16_v4  ;;  %134 = vmatmul.msk.f32.vlgmr.msra.gmra.mxu1 %vm31_vm0, %v16_v4  ;;  %v27_v10 = vperm.slane %v25_v9, 0  ;;  %v28_v11 = vperm.slane %v25_v9, 1 }
   0x6   :  { %140 = vmatpush.msra.mxu2 %v21_v2  ;;  %142 = vmatpush.msra.mxu3 %v22_v3 }
   0x7   :  { %132 = vmatmul.msk.f32.vlgmr.msra.gmra.mxu2 %vm31_vm0, %v19_v5  ;;  %137 = vmatmul.msk.f32.vlgmr.msra.gmra.mxu3 %vm31_vm0, %v19_v5 }
   0xd   :  { %130 = vmatmul.msk.f32.gmra.mxu0 %vm31_vm0, %v17_v6  ;;  %135 = vmatmul.msk.f32.gmra.mxu1 %vm31_vm0, %v17_v6 }
   0xf   :  { %133 = vmatmul.msk.f32.gmra.mxu2 %vm31_vm0, %v20_v7  ;;  %138 = vmatmul.msk.f32.gmra.mxu3 %vm31_vm0, %v20_v7 }
  0x15   :  { %131 = vmatmul.msk.f32.gmra.mxu0 %vm31_vm0, %v18_v8  ;;  %136 = vmatmul.msk.f32.gmra.mxu1 %vm31_vm0, %v18_v8 }
  0x82   :  { %v64_v12 = vpop.f32.mrf.mxu0  ;;  %v96_v13 = vpop.f32.mrf.mxu1 }
  0x83   :  { %v65_v14 = vadd.f32 %v64_v12, %v27_v10  ;;  %v97_v15 = vadd.f32 %v96_v13, %v28_v11 }
  0x85   :  { %111 = vst [vmem:[%s241_s3] sm:$0xff] %v65_v14 }
  0x86   :  { %116 = vst [vmem:[%s242_s4] sm:$0xff] %v97_v15 }
  0x8a   :  { %v67_v16 = vpop.f32.mrf.mxu0  ;;  %v73_v17 = vpop.f32.mrf.mxu2 }
  0x8b   :  { %v68_v18 = vadd.f32 %v67_v16, %v27_v10  ;;  %v74_v19 = vadd.f32 %v73_v17, %v27_v10  ;;  %v99_v20 = vpop.f32.mrf.mxu1  ;;  %v105_v21 = vpop.f32.mrf.mxu3 }
  0x8c   :  { %v100_v22 = vadd.f32 %v99_v20, %v28_v11  ;;  %v106_v23 = vadd.f32 %v105_v21, %v28_v11 }
  0x8d   :  { %112 = vst [vmem:[%s241_s3 + $0x8] sm:$0xff] %v68_v18 }
  0x8e   :  { %114 = vst [vmem:[%s241_s3 + $0x18] sm:$0xff] %v74_v19 }
  0x8f   :  { %117 = vst [vmem:[%s242_s4 + $0x8] sm:$0xff] %v100_v22 }
  0x90   :  { %119 = vst [vmem:[%s242_s4 + $0x18] sm:$0xff] %v106_v23 }
  0x92   :  { %v70_v24 = vpop.f32.mrf.mxu0  ;;  %v76_v25 = vpop.f32.mrf.mxu2 }
  0x93   :  { %v71_v26 = vadd.f32 %v70_v24, %v27_v10  ;;  %v77_v27 = vadd.f32 %v76_v25, %v27_v10  ;;  %v102_v28 = vpop.f32.mrf.mxu1  ;;  %v108_v29 = vpop.f32.mrf.mxu3 }
  0x94   :  { %v103_v30 = vadd.f32 %v102_v28, %v28_v11  ;;  %v109_v31 = vadd.f32 %v108_v29, %v28_v11 }
  0x95   :  { %113 = vst [vmem:[%s241_s3 + $0x10] sm:$0xff] %v71_v26 }
  0x96   :  { %115 = vst [vmem:[%s241_s3 + $0x20] sm:$0xff] %v77_v27 }
  0x97   :  { %118 = vst [vmem:[%s242_s4 + $0x10] sm:$0xff] %v103_v30 }
  0x98   :  { %120 = vst [vmem:[%s242_s4 + $0x20] sm:$0xff] %v109_v31 }

// kernel: single_lstm_forward.5
= control target key start
LH: loop header
LB: loop body
LE: loop exit
PB: predicated region body
PF: predicated region fallthrough
CT: control target
= control target key end

     0   :  { %vm38_vm0 = vcmask 261120   ;;  %vm142_vm1 = vcmask 130048   ;;  %s288_s3 = inlined_call_operand.vmem [shape: f32[32,16], index: 3, kind: input, shape index: {}]   ;;  %s289_s2 = inlined_call_operand.vmem [shape: f32[32,16], index: 2, kind: input, shape index: {}]   ;;  %s290_s1 = inlined_call_operand.vmem [shape: f32[40,32], index: 1, kind: input, shape index: {}]   ;;  %s291_s0 = inlined_call_operand.vmem [shape: f32[40,32], index: 0, kind: input, shape index: {}]   ;;  %s292_s4 = inlined_call_operand.vmem [shape: f32[1,16], index: 4, kind: input, shape index: {}]   ;;  %s293_s5 = inlined_call_operand.vmem [shape: f32[40,16], index: 5, kind: output, shape index: {}]  }
   0x1   :  { %v37_v0 = vld [vmem:[%s288_s3 + $0x18] sm:$0xff]  ;;  %v36_v2 = vld [vmem:[%s288_s3 + $0x10] sm:$0xff]  ;;  %v35_v4 = vld [vmem:[%s288_s3 + $0x8] sm:$0xff] }
   0x2   :  { %v28_v1 = vld [vmem:[%s289_s2 + $0x18] sm:$0xff]  ;;  %66 = vmatpush.msra.mxu0 %v37_v0  ;;  %v27_v3 = vld [vmem:[%s289_s2 + $0x10] sm:$0xff]  ;;  %162 = vmatpush.msra.mxu2 %v37_v0  ;;  %v26_v5 = vld [vmem:[%s289_s2 + $0x8] sm:$0xff] }
   0x3   :  { %113 = vmatpush.msra.mxu1 %v28_v1  ;;  %166 = vmatpush.msra.mxu3 %v28_v1  ;;  %v34_v6 = vld [vmem:[%s288_s3] sm:$0xff]  ;;  %v32_v10 = vld [vmem:[%s290_s1 + $0x18] sm:$0xff]  ;;  %v30_v12 = vld [vmem:[%s290_s1 + $0x8] sm:$0xff] }
   0x4   :  { %67 = vmatpush.msra.mxu0 %v36_v2  ;;  %163 = vmatpush.msra.mxu2 %v36_v2  ;;  %v25_v7 = vld [vmem:[%s289_s2] sm:$0xff]  ;;  %v23_v11 = vld [vmem:[%s291_s0 + $0x18] sm:$0xff]  ;;  %v21_v13 = vld [vmem:[%s291_s0 + $0x8] sm:$0xff] }
   0x5   :  { %114 = vmatpush.msra.mxu1 %v27_v3  ;;  %167 = vmatpush.msra.mxu3 %v27_v3  ;;  %v29_v8 = vld [vmem:[%s290_s1] sm:$0xff]  ;;  %v31_v16 = vld [vmem:[%s290_s1 + $0x10] sm:$0xff] }
   0x6   :  { %68 = vmatpush.msra.mxu0 %v35_v4  ;;  %v20_v9 = vld [vmem:[%s291_s0] sm:$0xff]  ;;  %164 = vmatpush.msra.mxu2 %v35_v4  ;;  %v22_v17 = vld [vmem:[%s291_s0 + $0x10] sm:$0xff] }
   0x7   :  { %115 = vmatpush.msra.mxu1 %v26_v5  ;;  %168 = vmatpush.msra.mxu3 %v26_v5  ;;  %v33_v14 = vld [vmem:[%s290_s1 + $0x20] sm:$0xff] }
   0x8   :  { %69 = vmatpush.msra.mxu0 %v34_v6  ;;  %165 = vmatpush.msra.mxu2 %v34_v6  ;;  %v24_v15 = vld [vmem:[%s291_s0 + $0x20] sm:$0xff] }
   0x9   :  { %116 = vmatpush.msra.mxu1 %v25_v7  ;;  %152 = vmatmul.msk.f32.vlgmr.msra.gmra.mxu0 %vm38_vm0, %v29_v8  ;;  %v170_v18 = vld [vmem:[%s292_s4] ss:$0 sm:$0xff] }
   0xa   :  { %157 = vmatmul.msk.f32.vlgmr.msra.gmra.mxu1 %vm38_vm0, %v20_v9  ;;  %169 = vmatpush.msra.mxu3 %v25_v7 }
   0xb   :  { %155 = vmatmul.msk.f32.vlgmr.msra.gmra.mxu2 %vm38_vm0, %v32_v10  ;;  %160 = vmatmul.msk.f32.vlgmr.msra.gmra.mxu3 %vm38_vm0, %v23_v11 }
  0x11   :  { %153 = vmatmul.msk.f32.gmra.mxu0 %vm38_vm0, %v30_v12 }
  0x12   :  { %158 = vmatmul.msk.f32.gmra.mxu1 %vm38_vm0, %v21_v13 }
  0x13   :  { %156 = vmatmul.msk.f32.gmra.mxu2 %vm38_vm0, %v33_v14  ;;  %161 = vmatmul.msk.f32.gmra.mxu3 %vm38_vm0, %v24_v15 }
  0x19   :  { %154 = vmatmul.msk.f32.gmra.mxu0 %vm38_vm0, %v31_v16 }
  0x1a   :  { %159 = vmatmul.msk.f32.gmra.mxu1 %vm38_vm0, %v22_v17 }
  0x86   :  { %v71_v19 = vpop.f32.mrf.mxu0 }
  0x87   :  { %v118_v20 = vpop.f32.mrf.mxu1 }
  0x88   :  { %v119_v21 = vadd.f32 %v118_v20, %v71_v19 }
  0x8a   :  { %v137_v22 = vadd.f32 %v170_v18, %v119_v21 }
  0x8c   :  { %143 = vst.msk [vmem:[%s293_s5] sm:$0xff] %vm142_vm1, %v137_v22 }
  0x8e   :  { %v74_v23 = vpop.f32.mrf.mxu0  ;;  %v80_v24 = vpop.f32.mrf.mxu2 }
  0x8f   :  { %v121_v25 = vpop.f32.mrf.mxu1  ;;  %v127_v26 = vpop.f32.mrf.mxu3 }
  0x90   :  { %v122_v27 = vadd.f32 %v121_v25, %v74_v23  ;;  %v128_v28 = vadd.f32 %v127_v26, %v80_v24 }
  0x92   :  { %v138_v29 = vadd.f32 %v170_v18, %v122_v27  ;;  %v140_v30 = vadd.f32 %v170_v18, %v128_v28 }
  0x94   :  { %144 = vst.msk [vmem:[%s293_s5 + $0x8] sm:$0xff] %vm142_vm1, %v138_v29 }
  0x95   :  { %146 = vst.msk [vmem:[%s293_s5 + $0x18] sm:$0xff] %vm142_vm1, %v140_v30 }
  0x96   :  { %v77_v31 = vpop.f32.mrf.mxu0  ;;  %v83_v32 = vpop.f32.mrf.mxu2 }
  0x97   :  { %v124_v33 = vpop.f32.mrf.mxu1  ;;  %v130_v34 = vpop.f32.mrf.mxu3 }
  0x98   :  { %v125_v35 = vadd.f32 %v124_v33, %v77_v31  ;;  %v131_v36 = vadd.f32 %v130_v34, %v83_v32 }
  0x9a   :  { %v139_v37 = vadd.f32 %v170_v18, %v125_v35  ;;  %v141_v38 = vadd.f32 %v170_v18, %v131_v36 }
  0x9c   :  { %145 = vst.msk [vmem:[%s293_s5 + $0x10] sm:$0xff] %vm142_vm1, %v139_v37 }
  0x9d   :  { %147 = vst.msk [vmem:[%s293_s5 + $0x20] sm:$0xff] %vm142_vm1, %v141_v38 }

// kernel: single_lstm_forward.4
= control target key start
LH: loop header
LB: loop body
LE: loop exit
PB: predicated region body
PF: predicated region fallthrough
CT: control target
= control target key end

     0   :  { %14 = vsyncpa [#allocation7], 0  ;;  %vm67_vm0 = vcmask 254976   ;;  %s4938_s0 = inlined_call_operand.vmem [shape: f32[20,2,128], index: 0, kind: input, shape index: {}]   ;;  %s4939_s1 = inlined_call_operand.vmem [shape: f32[20,2,128], index: 1, kind: input, shape index: {}]   ;;  %s4940_s2 = inlined_call_operand.vmem [shape: f32[2,2,32], index: 2, kind: input, shape index: {}, may-alias: {2,3}]   ;;  %s4941_s3 = inlined_call_operand.vmem [shape: f32[2,2,32], index: 3, kind: input, shape index: {}, may-alias: {2,3}]   ;;  %s4942_s4 = inlined_call_operand.vmem [shape: f32[64,256], index: 4, kind: input, shape index: {}]   ;;  %s4943_s5 = inlined_call_operand.vmem [shape: f32[20,2,32], index: 5, kind: output, shape index: {0}]   ;;  %s4944_s6 = inlined_call_operand.vmem [shape: f32[20,2,32], index: 6, kind: output, shape index: {1}]   ;;  %s4945_s7 = inlined_call_operand.hbm [shape: f32[2,2,32], index: 7, kind: output, shape index: {2}]   ;;  %s4946_s8 = inlined_call_operand.hbm [shape: f32[2,2,32], index: 8, kind: output, shape index: {3}]  }
   0x1   :  { %v2974_v0 = vld [vmem:[%s4940_s2 + $0x2] sm:$0x3]  ;;  %v3599_v1 = vld [vmem:[%s4942_s4 + $0x70] sm:$0xff]  ;;  %v3604_v2 = vld [vmem:[%s4942_s4 + $0x78] sm:$0xff] }
   0x2   :  { %73 = vst.msk [vmem:[#allocation4] sm:$0x3] %vm67_vm0, %v2974_v0  ;;  %118 = vmatpush.msra.mxu0 %v3599_v1  ;;  %138 = vmatpush.msra.mxu1 %v3604_v2  ;;  %v3612_v3 = vld [vmem:[%s4942_s4 + $0x60] sm:$0xff]  ;;  %v3617_v4 = vld [vmem:[%s4942_s4 + $0x68] sm:$0xff]  ;;  %v3622_v5 = vld [vmem:[%s4942_s4 + $0x50] sm:$0xff] }
   0x3   :  { %v3627_v6 = vld [vmem:[%s4942_s4 + $0x58] sm:$0xff]  ;;  %265 = vmatpush.msra.mxu2 %v3599_v1  ;;  %285 = vmatpush.msra.mxu3 %v3604_v2  ;;  %v3636_v7 = vld [vmem:[%s4942_s4 + $0x40] sm:$0xff]  ;;  %v3641_v8 = vld [vmem:[%s4942_s4 + $0x48] sm:$0xff] }
   0x4   :  { %119 = vmatpush.msra.mxu0 %v3612_v3  ;;  %139 = vmatpush.msra.mxu1 %v3617_v4 }
   0x5   :  { %266 = vmatpush.msra.mxu2 %v3612_v3  ;;  %286 = vmatpush.msra.mxu3 %v3617_v4 }
   0x6   :  { %120 = vmatpush.msra.mxu0 %v3622_v5  ;;  %140 = vmatpush.msra.mxu1 %v3627_v6 }
   0x7   :  { %15 = vsyncpa [#allocation9], 0  ;;  %v3650_v9 = vld [vmem:[%s4942_s4 + $0x30] sm:$0xff]  ;;  %267 = vmatpush.msra.mxu2 %v3622_v5  ;;  %287 = vmatpush.msra.mxu3 %v3627_v6  ;;  %v3659_v10 = vld [vmem:[%s4942_s4 + $0x38] sm:$0xff]  ;;  %s3542_s29 = smov 32   ;;  %vm104_vm1 = vcmask 261120  }
   0x8   :  { %121 = vmatpush.msra.mxu0 %v3636_v7  ;;  %141 = vmatpush.msra.mxu1 %v3641_v8  ;;  %v3664_v12 = vld [vmem:[%s4942_s4 + $0x20] sm:$0xff]  ;;  %v3673_v13 = vld [vmem:[%s4942_s4 + $0x28] sm:$0xff]  ;;  %v3679_v14 = vld [vmem:[%s4942_s4 + $0x10] sm:$0xff]  ;;  %vm106_vm2 = vcmask 523264   ;;  %s3543_s27 = smov 64   ;;  %s3544_s28 = smov 96  }
   0x9   :  { %v95_v11 = vld [vmem:[#allocation4] sm:$0x3]  ;;  %268 = vmatpush.msra.mxu2 %v3636_v7  ;;  %288 = vmatpush.msra.mxu3 %v3641_v8  ;;  %v3686_v15 = vld [vmem:[%s4942_s4 + $0x18] sm:$0xff]  ;;  %v66_v16 = vld [vmem:[%s4940_s2] sm:$0x3]  ;;  %s3545_s25 = smov [#allocation8]  }
   0xa   :  { %101 = vrot.lane.b32.xlu0 %v95_v11, %s3542_s29  ;;  %122 = vmatpush.msra.mxu0 %v3650_v9  ;;  %68 = vst.msk [vmem:[#allocation2] sm:$0x3] %vm67_vm0, %v66_v16  ;;  %v3703_v17 = vld [vmem:[%s4942_s4] sm:$0xff]  ;;  %v3708_v18 = vld [vmem:[%s4942_s4 + $0x8] sm:$0xff]  ;;  %s3546_s9 = smov 2   ;;  %s3547_s16 = smov [#allocation6]  }
   0xb   :  { %142 = vmatpush.msra.mxu1 %v3659_v10  ;;  %269 = vmatpush.msra.mxu2 %v3650_v9  ;;  %v2975_v19 = vld [vmem:[%s4941_s3 + $0x2] sm:$0x3]  ;;  %v69_v24 = vld [vmem:[%s4941_s3] sm:$0x3]  ;;  %v2976_v26 = vld [vmem:[%s4939_s1 + $0x26] sm:$0x3] }
   0xc   :  { %123 = vmatpush.msra.mxu0 %v3664_v12  ;;  %289 = vmatpush.msra.mxu3 %v3659_v10  ;;  %76 = vst.msk [vmem:[#allocation5] sm:$0x3] %vm67_vm0, %v2975_v19  ;;  %v97_v25 = vld [vmem:[%s4938_s0] sm:$0x3]  ;;  %s2933_s3 = sshll.u32 %s4946_s8, 4  ;;  %s2918_s17 = sshll.u32 %s3547_s16, 4  ;;  %s2934_s3 = int_to_ptr.hbm [resolvable:$true] %s2933_s3  ;;  %s2919_s17 = int_to_ptr.vmem [resolvable:$true] %s2918_s17 }
   0xd   :  { %143 = vmatpush.msra.mxu1 %v3673_v13  ;;  %270 = vmatpush.msra.mxu2 %v3664_v12  ;;  %70 = vst.msk [vmem:[#allocation3] sm:$0x3] %vm67_vm0, %v69_v24  ;;  %s2920_s20 = sshll.u32 %s4945_s7, 4  ;;  %s2921_s20 = int_to_ptr.hbm [resolvable:$true] %s2920_s20 }
   0xe   :  { %124 = vmatpush.msra.mxu0 %v3679_v14  ;;  %290 = vmatpush.msra.mxu3 %v3673_v13 }
   0xf   :  { %144 = vmatpush.msra.mxu1 %v3686_v15  ;;  %271 = vmatpush.msra.mxu2 %v3679_v14 }
  0x10   :  { %291 = vmatpush.msra.mxu3 %v3686_v15  ;;  %125 = vmatpush.msra.mxu0 %v3703_v17 }
  0x11   :  { %145 = vmatpush.msra.mxu1 %v3708_v18  ;;  %272 = vmatpush.msra.mxu2 %v3703_v17  ;;  %v93_v21 = vld [vmem:[#allocation2] sm:$0x3] }
  0x12   :  { %292 = vmatpush.msra.mxu3 %v3708_v18  ;;  %404 = vmatpush.msrb.mxu0 %v3599_v1 }
  0x13   :  { %424 = vmatpush.msrb.mxu1 %v3604_v2  ;;  %543 = vmatpush.msrb.mxu2 %v3599_v1  ;;  %v96_v20 = vld [vmem:[#allocation5] sm:$0x3] }
  0x14   :  { %563 = vmatpush.msrb.mxu3 %v3604_v2  ;;  %405 = vmatpush.msrb.mxu0 %v3612_v3  ;;  %v94_v33 = vld [vmem:[#allocation3] sm:$0x3] }
  0x15   :  { %425 = vmatpush.msrb.mxu1 %v3617_v4  ;;  %544 = vmatpush.msrb.mxu2 %v3612_v3 }
  0x16   :  { %564 = vmatpush.msrb.mxu3 %v3617_v4  ;;  %406 = vmatpush.msrb.mxu0 %v3622_v5 }
  0x17   :  { %426 = vmatpush.msrb.mxu1 %v3627_v6  ;;  %545 = vmatpush.msrb.mxu2 %v3622_v5 }
  0x18   :  { %565 = vmatpush.msrb.mxu3 %v3627_v6  ;;  %407 = vmatpush.msrb.mxu0 %v3636_v7 }
  0x19   :  { %427 = vmatpush.msrb.mxu1 %v3641_v8  ;;  %546 = vmatpush.msrb.mxu2 %v3636_v7 }
  0x1a   :  { %566 = vmatpush.msrb.mxu3 %v3641_v8  ;;  %214 = vrot.lane.b32.xlu2 %v96_v20, %s3542_s29 }
  0x1b   :  { %408 = vmatpush.msrb.mxu0 %v3650_v9  ;;  %428 = vmatpush.msrb.mxu1 %v3659_v10 }
  0x1c   :  { %547 = vmatpush.msrb.mxu2 %v3650_v9  ;;  %567 = vmatpush.msrb.mxu3 %v3659_v10 }
  0x1d   :  { %409 = vmatpush.msrb.mxu0 %v3664_v12  ;;  %429 = vmatpush.msrb.mxu1 %v3673_v13 }
  0x1e   :  { %548 = vmatpush.msrb.mxu2 %v3664_v12  ;;  %568 = vmatpush.msrb.mxu3 %v3673_v13 }
  0x1f   :  { %410 = vmatpush.msrb.mxu0 %v3679_v14  ;;  %430 = vmatpush.msrb.mxu1 %v3686_v15 }
  0x20   :  { %549 = vmatpush.msrb.mxu2 %v3679_v14  ;;  %569 = vmatpush.msrb.mxu3 %v3686_v15 }
  0x21   :  { %411 = vmatpush.msrb.mxu0 %v3703_v17  ;;  %431 = vmatpush.msrb.mxu1 %v3708_v18 }
  0x22   :  { %550 = vmatpush.msrb.mxu2 %v3703_v17  ;;  %570 = vmatpush.msrb.mxu3 %v3708_v18 }
  0x74   :  { %v215_v0 = vpop.permute.xlu2 %214 }
  0x7c   :  { %v102_v22 = vpop.permute.xlu0 %101 }
  0x7d   :  { %v105_v23 = vsel %vm104_vm1, %v93_v21, %v102_v22 }
  0x7e   :  { %2977 = vmatmul.msk.f32.vlgmr.msra.gmra.mxu0 %vm106_vm2, %v105_v23  ;;  %2978 = vmatmul.msk.f32.vlgmr.msra.gmra.mxu1 %vm106_vm2, %v105_v23 }
  0x7f   :  { %682 = vmatpush.msra.mxu0 %v3599_v1  ;;  %702 = vmatpush.msra.mxu1 %v3604_v2 }
  0x81   :  { %683 = vmatpush.msra.mxu0 %v3612_v3  ;;  %703 = vmatpush.msra.mxu1 %v3617_v4 }
  0x83   :  { %684 = vmatpush.msra.mxu0 %v3622_v5  ;;  %704 = vmatpush.msra.mxu1 %v3627_v6 }
  0x85   :  { %685 = vmatpush.msra.mxu0 %v3636_v7  ;;  %705 = vmatpush.msra.mxu1 %v3641_v8 }
  0x87   :  { %686 = vmatpush.msra.mxu0 %v3650_v9  ;;  %706 = vmatpush.msra.mxu1 %v3659_v10 }
  0x89   :  { %687 = vmatpush.msra.mxu0 %v3664_v12  ;;  %707 = vmatpush.msra.mxu1 %v3673_v13 }
  0x8b   :  { %688 = vmatpush.msra.mxu0 %v3679_v14  ;;  %708 = vmatpush.msra.mxu1 %v3686_v15 }
  0x8d   :  { %689 = vmatpush.msra.mxu0 %v3703_v17  ;;  %709 = vmatpush.msra.mxu1 %v3708_v18 }
  0xfb   :  { %v127_v27 = vpop.f32.mrf.mxu0  ;;  %v147_v28 = vpop.f32.mrf.mxu1 }
  0xfc   :  { %v150_v29 = vadd.f32 %v127_v27, %v97_v25  ;;  %v151_v30 = vadd.f32 %v2976_v26, %v147_v28 }
  0xfe   :  { %3138 = vtanh.f32 %v150_v29  ;;  %v2979_v34 = vmul.f32 -1.442695, %v150_v29  ;;  %v2980_v35 = vmul.f32 -1.442695, %v151_v30 }
  0xff   :  { %3140 = vtanh.f32 %v151_v30 }
 0x100   :  { %3142 = vpow2.f32 %v2979_v34  ;;  %v2983_v34 = vld [vmem:[%s4939_s1 + $0x24] sm:$0x3] }
 0x101   :  { %3144 = vpow2.f32 %v2980_v35 }
 0x104   :  { %v3139_v31 = vpop.eup %3138 }
 0x105   :  { %v3141_v32 = vpop.eup %3140  ;;  %178 = vrot.lane.b32.xlu0 %v3139_v31, %s3543_s27 }
 0x106   :  { %219 = vrot.lane.b32.xlu1 %v3141_v32, %s3543_s27  ;;  %v3143_v36 = vpop.eup %3142 }
 0x107   :  { %v3145_v37 = vpop.eup %3144  ;;  %v155_v38 = vadd.f32 1.0, %v3143_v36 }
 0x108   :  { %v196_v39 = vadd.f32 1.0, %v3145_v37 }
 0x109   :  { %3146 = vrcp.f32 %v155_v38  ;;  %v167_v50 = vand.u32 2147483648, %v155_v38  ;;  %vm161_vm5 = vweird.f32 %v155_v38  ;;  %v165_v52 = vand.u32 2147483647, %v155_v38 }
 0x10a   :  { %3148 = vrcp.f32 %v196_v39  ;;  %v208_v51 = vand.u32 2147483648, %v196_v39  ;;  %vm202_vm6 = vweird.f32 %v196_v39  ;;  %v206_v53 = vand.u32 2147483647, %v196_v39 }
 0x10b   :  { %v168_v56 = vor.u32 1.1754944e-38, %v167_v50  ;;  %vm166_vm9 = vcmp.eq.f32.partialorder %v165_v52, 8.507059e+37 }
 0x10c   :  { %v209_v57 = vor.u32 1.1754944e-38, %v208_v51  ;;  %vm207_vm10 = vcmp.eq.f32.partialorder %v206_v53, 8.507059e+37 }
 0x10e   :  { %173 = vrot.lane.b32.xlu1 %v94_v33, %s3542_s29  ;;  %v2982_v33 = vld [vmem:[%s4938_s0 + $0x2] sm:$0x3] }
 0x10f   :  { %v3147_v40 = vpop.eup %3146 }
 0x110   :  { %v3149_v41 = vpop.eup %3148  ;;  %v157_v42 = vmul.f32 %v3147_v40, %v155_v38  ;;  %vm162_vm3 = vweird.f32 %v3147_v40 }
 0x111   :  { %v198_v43 = vmul.f32 %v3149_v41, %v196_v39  ;;  %vm203_vm4 = vweird.f32 %v3149_v41  ;;  %vm163_vm7 = vmor %vm161_vm5, %vm162_vm3 }
 0x112   :  { %v158_v44 = vsub.f32 1.0, %v157_v42  ;;  %vm204_vm8 = vmor %vm202_vm6, %vm203_vm4 }
 0x113   :  { %v199_v45 = vsub.f32 1.0, %v198_v43 }
 0x114   :  { %v159_v46 = vmul.f32 %v3147_v40, %v158_v44 }
 0x115   :  { %v200_v47 = vmul.f32 %v3149_v41, %v199_v45 }
 0x116   :  { %v160_v48 = vadd.f32 %v3147_v40, %v159_v46 }
 0x117   :  { %v201_v49 = vadd.f32 %v3149_v41, %v200_v47 }
 0x118   :  { %v164_v54 = vsel %vm163_vm7, %v3147_v40, %v160_v48 }
 0x119   :  { %v205_v55 = vsel %vm204_vm8, %v3149_v41, %v201_v49  ;;  %v169_v59 = vsel %vm166_vm9, %v168_v56, %v164_v54 }
 0x11a   :  { %v210_v60 = vsel %vm207_vm10, %v209_v57, %v205_v55 }
 0x11b   :  { %v217_v22 = vmul.f32 %v215_v0, %v210_v60 }
 0x177   :  { %v179_v58 = vpop.permute.xlu0 %178 }
 0x178   :  { %v220_v61 = vpop.permute.xlu1 %219  ;;  %v181_v62 = vmul.f32 %v179_v58, %v169_v59 }
 0x179   :  { %v222_v63 = vmul.f32 %v220_v61, %v210_v60 }
 0x17a   :  { %183 = vrot.lane.b32.xlu2 %v181_v62, %s3542_s29 }
 0x17b   :  { %224 = vrot.lane.b32.xlu0 %v222_v63, %s3542_s29 }
 0x180   :  { %v174_v11 = vpop.permute.xlu1 %173 }
 0x181   :  { %v176_v16 = vmul.f32 %v174_v11, %v169_v59 }
 0x1d4   :  { %v184_v19 = vpop.permute.xlu2 %183 }
 0x1d5   :  { %v3785_v20 = vadd.f32 %v184_v19, %v176_v16 }
 0x1d7   :  { %3150 = vtanh.f32 %v3785_v20 }
 0x1dd   :  { %v3151_v21 = vpop.eup %3150 }
 0x1de   :  { %189 = vrot.lane.b32.xlu1 %v3151_v21, %s3543_s27 }
 0x1ed   :  { %v225_v23 = vpop.permute.xlu0 %224 }
 0x1ee   :  { %v3789_v24 = vadd.f32 %v225_v23, %v217_v22 }
 0x1f0   :  { %3152 = vtanh.f32 %v3789_v24 }
 0x1f6   :  { %v3153_v25 = vpop.eup %3152 }
 0x1f7   :  { %230 = vrot.lane.b32.xlu2 %v3153_v25, %s3543_s27 }
 0x250   :  { %v190_v26 = vpop.permute.xlu1 %189 }
 0x251   :  { %v231_v27 = vpop.permute.xlu2 %230  ;;  %v192_v28 = vmul.f32 %v190_v26, %v169_v59 }
 0x252   :  { %v3793_v29 = vmul.f32 %v231_v27, %v210_v60 }
 0x253   :  { %235 = vrot.lane.b32.xlu0 %v192_v28, %s3542_s29 }
 0x254   :  { %250 = vrot.lane.b32.xlu1 %v3793_v29, %s3543_s27 }
 0x2c5   :  { %v236_v30 = vpop.permute.xlu0 %235 }
 0x2c6   :  { %239 = vst.msk [vmem:[%s4943_s5] sm:$0x3] %vm67_vm0, %v236_v30  ;;  %v251_v31 = vpop.permute.xlu1 %250 }
 0x2c7   :  { %v253_v32 = vsel %vm104_vm1, %v236_v30, %v251_v31 }
 0x2c8   :  { %2984 = vmatmul.msk.f32.vlgmr.msra.gmra.mxu2 %vm106_vm2, %v253_v32  ;;  %2985 = vmatmul.msk.f32.vlgmr.msra.gmra.mxu3 %vm106_vm2, %v253_v32 }
 0x2c9   :  { %821 = vmatpush.msra.mxu2 %v3599_v1  ;;  %841 = vmatpush.msra.mxu3 %v3604_v2 }
 0x2cb   :  { %822 = vmatpush.msra.mxu2 %v3612_v3  ;;  %842 = vmatpush.msra.mxu3 %v3617_v4 }
 0x2cd   :  { %823 = vmatpush.msra.mxu2 %v3622_v5  ;;  %843 = vmatpush.msra.mxu3 %v3627_v6 }
 0x2cf   :  { %824 = vmatpush.msra.mxu2 %v3636_v7  ;;  %844 = vmatpush.msra.mxu3 %v3641_v8 }
 0x2d1   :  { %825 = vmatpush.msra.mxu2 %v3650_v9  ;;  %845 = vmatpush.msra.mxu3 %v3659_v10 }
 0x2d3   :  { %826 = vmatpush.msra.mxu2 %v3664_v12  ;;  %846 = vmatpush.msra.mxu3 %v3673_v13 }
 0x2d5   :  { %827 = vmatpush.msra.mxu2 %v3679_v14  ;;  %847 = vmatpush.msra.mxu3 %v3686_v15 }
 0x2d7   :  { %828 = vmatpush.msra.mxu2 %v3703_v17  ;;  %848 = vmatpush.msra.mxu3 %v3708_v18 }
 0x34b   :  { %v274_v35 = vpop.f32.mrf.mxu2  ;;  %v294_v36 = vpop.f32.mrf.mxu3 }
 0x34c   :  { %v297_v37 = vadd.f32 %v2982_v33, %v274_v35  ;;  %v298_v38 = vadd.f32 %v2983_v34, %v294_v36 }
 0x34e   :  { %3154 = vtanh.f32 %v297_v37  ;;  %v2986_v41 = vmul.f32 -1.442695, %v297_v37  ;;  %v2987_v45 = vmul.f32 -1.442695, %v298_v38 }
 0x34f   :  { %3156 = vtanh.f32 %v298_v38 }
 0x350   :  { %3158 = vpow2.f32 %v2986_v41 }
 0x354   :  { %v3155_v39 = vpop.eup %3154 }
 0x355   :  { %v3157_v40 = vpop.eup %3156  ;;  %321 = vrot.lane.b32.xlu2 %v3155_v39, %s3543_s27  ;;  %v2990_v39 = vld [vmem:[%s4938_s0 + $0x4] sm:$0x3] }
 0x356   :  { %358 = vrot.lane.b32.xlu0 %v3157_v40, %s3543_s27  ;;  %v3159_v42 = vpop.eup %3158  ;;  %v2991_v40 = vld [vmem:[%s4939_s1 + $0x22] sm:$0x3] }
 0x357   :  { %v302_v43 = vadd.f32 1.0, %v3159_v42 }
 0x359   :  { %3160 = vrcp.f32 %v302_v43  ;;  %v314_v52 = vand.u32 2147483648, %v302_v43  ;;  %vm308_vm12 = vweird.f32 %v302_v43  ;;  %v312_v53 = vand.u32 2147483647, %v302_v43 }
 0x35a   :  { %3162 = vpow2.f32 %v2987_v45 }
 0x35b   :  { %v315_v55 = vor.u32 1.1754944e-38, %v314_v52  ;;  %vm313_vm14 = vcmp.eq.f32.partialorder %v312_v53, 8.507059e+37 }
 0x35f   :  { %v3161_v44 = vpop.eup %3160 }
 0x360   :  { %v304_v46 = vmul.f32 %v3161_v44, %v302_v43  ;;  %v3163_v49 = vpop.eup %3162  ;;  %vm309_vm11 = vweird.f32 %v3161_v44 }
 0x361   :  { %v339_v50 = vadd.f32 1.0, %v3163_v49  ;;  %vm310_vm13 = vmor %vm308_vm12, %vm309_vm11 }
 0x362   :  { %v305_v47 = vsub.f32 1.0, %v304_v46 }
 0x363   :  { %3164 = vrcp.f32 %v339_v50  ;;  %v351_v0 = vand.u32 2147483648, %v339_v50  ;;  %vm345_vm3 = vweird.f32 %v339_v50  ;;  %v349_v11 = vand.u32 2147483647, %v339_v50 }
 0x364   :  { %v306_v48 = vmul.f32 %v3161_v44, %v305_v47 }
 0x365   :  { %v352_v19 = vor.u32 1.1754944e-38, %v351_v0  ;;  %vm350_vm5 = vcmp.eq.f32.partialorder %v349_v11, 8.507059e+37 }
 0x366   :  { %v307_v51 = vadd.f32 %v3161_v44, %v306_v48 }
 0x368   :  { %v311_v54 = vsel %vm310_vm13, %v3161_v44, %v307_v51 }
 0x369   :  { %v316_v57 = vsel %vm313_vm14, %v315_v55, %v311_v54  ;;  %v3165_v59 = vpop.eup %3164 }
 0x36a   :  { %v341_v60 = vmul.f32 %v3165_v59, %v339_v50  ;;  %vm346_vm15 = vweird.f32 %v3165_v59  ;;  %v319_v25 = vmul.f32 %v316_v57, %v3785_v20 }
 0x36b   :  { %vm347_vm4 = vmor %vm345_vm3, %vm346_vm15 }
 0x36c   :  { %v342_v61 = vsub.f32 1.0, %v341_v60 }
 0x36e   :  { %v343_v62 = vmul.f32 %v3165_v59, %v342_v61 }
 0x370   :  { %v344_v63 = vadd.f32 %v3165_v59, %v343_v62 }
 0x372   :  { %v348_v16 = vsel %vm347_vm4, %v3165_v59, %v344_v63 }
 0x373   :  { %v353_v22 = vsel %vm350_vm5, %v352_v19, %v348_v16 }
 0x374   :  { %v356_v26 = vmul.f32 %v353_v22, %v3789_v24 }
 0x3af   :  { %v322_v56 = vpop.permute.xlu2 %321 }
 0x3b0   :  { %v324_v58 = vmul.f32 %v322_v56, %v316_v57 }
 0x3b2   :  { %326 = vrot.lane.b32.xlu1 %v324_v58, %s3542_s29 }
 0x3c8   :  { %v359_v21 = vpop.permute.xlu0 %358 }
 0x3c9   :  { %v361_v23 = vmul.f32 %v359_v21, %v353_v22 }
 0x3cb   :  { %363 = vrot.lane.b32.xlu2 %v361_v23, %s3542_s29 }
 0x424   :  { %v327_v27 = vpop.permute.xlu1 %326 }
 0x425   :  { %v364_v28 = vpop.permute.xlu2 %363  ;;  %v3833_v30 = vadd.f32 %v327_v27, %v319_v25 }
 0x426   :  { %v3835_v31 = vadd.f32 %v364_v28, %v356_v26 }
 0x427   :  { %3166 = vtanh.f32 %v3833_v30 }
 0x428   :  { %3168 = vtanh.f32 %v3835_v31 }
 0x42d   :  { %v3167_v32 = vpop.eup %3166 }
 0x42e   :  { %v3169_v33 = vpop.eup %3168  ;;  %332 = vrot.lane.b32.xlu0 %v3167_v32, %s3543_s27 }
 0x42f   :  { %369 = vrot.lane.b32.xlu1 %v3169_v33, %s3543_s27 }
 0x4a0   :  { %v333_v34 = vpop.permute.xlu0 %332 }
 0x4a1   :  { %v370_v20 = vpop.permute.xlu1 %369  ;;  %v335_v35 = vmul.f32 %v333_v34, %v316_v57 }
 0x4a2   :  { %v3841_v24 = vmul.f32 %v370_v20, %v353_v22 }
 0x4a3   :  { %374 = vrot.lane.b32.xlu2 %v335_v35, %s3542_s29 }
 0x4a4   :  { %389 = vrot.lane.b32.xlu0 %v3841_v24, %s3543_s27 }
 0x4fd   :  { %v375_v36 = vpop.permute.xlu2 %374 }
 0x4fe   :  { %2988 = vst.msk [vmem:[%s4943_s5 + $0x2] sm:$0x3] %vm67_vm0, %v375_v36 }
 0x516   :  { %v390_v37 = vpop.permute.xlu0 %389 }
 0x517   :  { %v392_v38 = vsel %vm104_vm1, %v375_v36, %v390_v37 }
 0x518   :  { %2992 = vmatmul.msk.f32.vlgmr.msrb.gmra.mxu0 %vm106_vm2, %v392_v38  ;;  %2993 = vmatmul.msk.f32.vlgmr.msrb.gmra.mxu1 %vm106_vm2, %v392_v38 }
 0x519   :  { %960 = vmatpush.msrb.mxu0 %v3599_v1  ;;  %980 = vmatpush.msrb.mxu1 %v3604_v2 }
 0x51b   :  { %961 = vmatpush.msrb.mxu0 %v3612_v3  ;;  %981 = vmatpush.msrb.mxu1 %v3617_v4 }
 0x51d   :  { %962 = vmatpush.msrb.mxu0 %v3622_v5  ;;  %982 = vmatpush.msrb.mxu1 %v3627_v6 }
 0x51f   :  { %963 = vmatpush.msrb.mxu0 %v3636_v7  ;;  %983 = vmatpush.msrb.mxu1 %v3641_v8 }
 0x521   :  { %964 = vmatpush.msrb.mxu0 %v3650_v9  ;;  %984 = vmatpush.msrb.mxu1 %v3659_v10 }
 0x523   :  { %965 = vmatpush.msrb.mxu0 %v3664_v12  ;;  %985 = vmatpush.msrb.mxu1 %v3673_v13 }
 0x525   :  { %966 = vmatpush.msrb.mxu0 %v3679_v14  ;;  %986 = vmatpush.msrb.mxu1 %v3686_v15 }
 0x527   :  { %967 = vmatpush.msrb.mxu0 %v3703_v17  ;;  %987 = vmatpush.msrb.mxu1 %v3708_v18 }
 0x595   :  { %v413_v41 = vpop.f32.mrf.mxu0  ;;  %v433_v42 = vpop.f32.mrf.mxu1 }
 0x596   :  { %v436_v43 = vadd.f32 %v2990_v39, %v413_v41  ;;  %v437_v44 = vadd.f32 %v2991_v40, %v433_v42 }
 0x598   :  { %3170 = vtanh.f32 %v436_v43  ;;  %v2995_v47 = vmul.f32 -1.442695, %v437_v44  ;;  %v2994_v51 = vmul.f32 -1.442695, %v436_v43 }
 0x599   :  { %3172 = vtanh.f32 %v437_v44 }
 0x59a   :  { %3174 = vpow2.f32 %v2995_v47  ;;  %v2999_v47 = vld [vmem:[%s4939_s1 + $0x20] sm:$0x3] }
 0x59e   :  { %v3171_v45 = vpop.eup %3170 }
 0x59f   :  { %v3173_v46 = vpop.eup %3172  ;;  %460 = vrot.lane.b32.xlu1 %v3171_v45, %s3543_s27 }
 0x5a0   :  { %497 = vrot.lane.b32.xlu2 %v3173_v46, %s3543_s27  ;;  %v3175_v48 = vpop.eup %3174  ;;  %v2998_v46 = vld [vmem:[%s4938_s0 + $0x6] sm:$0x3] }
 0x5a1   :  { %v478_v49 = vadd.f32 1.0, %v3175_v48 }
 0x5a3   :  { %3176 = vrcp.f32 %v478_v49  ;;  %v490_v58 = vand.u32 2147483648, %v478_v49  ;;  %vm484_vm7 = vweird.f32 %v478_v49  ;;  %v488_v59 = vand.u32 2147483647, %v478_v49 }
 0x5a4   :  { %3178 = vpow2.f32 %v2994_v51 }
 0x5a5   :  { %v491_v61 = vor.u32 1.1754944e-38, %v490_v58  ;;  %vm489_vm9 = vcmp.eq.f32.partialorder %v488_v59, 8.507059e+37 }
 0x5a9   :  { %v3177_v50 = vpop.eup %3176 }
 0x5aa   :  { %v480_v52 = vmul.f32 %v3177_v50, %v478_v49  ;;  %v3179_v54 = vpop.eup %3178  ;;  %vm485_vm6 = vweird.f32 %v3177_v50 }
 0x5ab   :  { %v441_v56 = vadd.f32 1.0, %v3179_v54  ;;  %vm486_vm8 = vmor %vm484_vm7, %vm485_vm6 }
 0x5ac   :  { %v481_v53 = vsub.f32 1.0, %v480_v52 }
 0x5ad   :  { %3180 = vrcp.f32 %v441_v56  ;;  %v453_v23 = vand.u32 2147483648, %v441_v56  ;;  %vm447_vm11 = vweird.f32 %v441_v56  ;;  %v451_v25 = vand.u32 2147483647, %v441_v56 }
 0x5ae   :  { %v482_v55 = vmul.f32 %v3177_v50, %v481_v53 }
 0x5af   :  { %v454_v27 = vor.u32 1.1754944e-38, %v453_v23  ;;  %vm452_vm13 = vcmp.eq.f32.partialorder %v451_v25, 8.507059e+37 }
 0x5b0   :  { %v483_v57 = vadd.f32 %v3177_v50, %v482_v55 }
 0x5b2   :  { %v487_v60 = vsel %vm486_vm8, %v3177_v50, %v483_v57 }
 0x5b3   :  { %v492_v63 = vsel %vm489_vm9, %v491_v61, %v487_v60  ;;  %v3181_v0 = vpop.eup %3180 }
 0x5b4   :  { %v443_v16 = vmul.f32 %v3181_v0, %v441_v56  ;;  %vm448_vm10 = vweird.f32 %v3181_v0  ;;  %v495_v34 = vmul.f32 %v492_v63, %v3835_v31 }
 0x5b5   :  { %vm449_vm12 = vmor %vm447_vm11, %vm448_vm10 }
 0x5b6   :  { %v444_v19 = vsub.f32 1.0, %v443_v16 }
 0x5b8   :  { %v445_v21 = vmul.f32 %v3181_v0, %v444_v19 }
 0x5ba   :  { %v446_v22 = vadd.f32 %v3181_v0, %v445_v21 }
 0x5bc   :  { %v450_v26 = vsel %vm449_vm12, %v3181_v0, %v446_v22 }
 0x5bd   :  { %v455_v32 = vsel %vm452_vm13, %v454_v27, %v450_v26 }
 0x5be   :  { %v458_v37 = vmul.f32 %v455_v32, %v3833_v30 }
 0x5fa   :  { %v498_v62 = vpop.permute.xlu2 %497 }
 0x5fb   :  { %v500_v11 = vmul.f32 %v498_v62, %v492_v63 }
 0x5fd   :  { %502 = vrot.lane.b32.xlu1 %v500_v11, %s3542_s29 }
 0x611   :  { %v461_v28 = vpop.permute.xlu1 %460 }
 0x612   :  { %v463_v33 = vmul.f32 %v461_v28, %v455_v32 }
 0x614   :  { %465 = vrot.lane.b32.xlu0 %v463_v33, %s3542_s29 }
 0x66f   :  { %v503_v20 = vpop.permute.xlu1 %502 }
 0x670   :  { %v3880_v35 = vadd.f32 %v503_v20, %v495_v34 }
 0x672   :  { %3182 = vtanh.f32 %v3880_v35 }
 0x678   :  { %v3183_v36 = vpop.eup %3182 }
 0x679   :  { %508 = vrot.lane.b32.xlu0 %v3183_v36, %s3543_s27 }
 0x686   :  { %v466_v38 = vpop.permute.xlu0 %465 }
 0x687   :  { %v3885_v39 = vadd.f32 %v466_v38, %v458_v37 }
 0x689   :  { %3184 = vtanh.f32 %v3885_v39 }
 0x68f   :  { %v3185_v40 = vpop.eup %3184 }
 0x690   :  { %471 = vrot.lane.b32.xlu2 %v3185_v40, %s3543_s27 }
 0x6ea   :  { %v472_v41 = vpop.permute.xlu2 %471 }
 0x6eb   :  { %v509_v31 = vpop.permute.xlu0 %508  ;;  %v474_v42 = vmul.f32 %v472_v41, %v455_v32 }
 0x6ec   :  { %v3889_v43 = vmul.f32 %v509_v31, %v492_v63 }
 0x6ed   :  { %513 = vrot.lane.b32.xlu1 %v474_v42, %s3542_s29 }
 0x6ee   :  { %528 = vrot.lane.b32.xlu2 %v3889_v43, %s3543_s27 }
 0x748   :  { %v529_v44 = vpop.permute.xlu2 %528 }
 0x75f   :  { %v514_v30 = vpop.permute.xlu1 %513 }
 0x760   :  { %2996 = vst.msk [vmem:[%s4943_s5 + $0x4] sm:$0x3] %vm67_vm0, %v514_v30  ;;  %v531_v45 = vsel %vm104_vm1, %v514_v30, %v529_v44 }
 0x761   :  { %3000 = vmatmul.msk.f32.vlgmr.msrb.gmra.mxu2 %vm106_vm2, %v531_v45  ;;  %3001 = vmatmul.msk.f32.vlgmr.msrb.gmra.mxu3 %vm106_vm2, %v531_v45 }
 0x762   :  { %1099 = vmatpush.msrb.mxu2 %v3599_v1  ;;  %1119 = vmatpush.msrb.mxu3 %v3604_v2 }
 0x764   :  { %1100 = vmatpush.msrb.mxu2 %v3612_v3  ;;  %1120 = vmatpush.msrb.mxu3 %v3617_v4 }
 0x766   :  { %1101 = vmatpush.msrb.mxu2 %v3622_v5  ;;  %1121 = vmatpush.msrb.mxu3 %v3627_v6 }
 0x768   :  { %1102 = vmatpush.msrb.mxu2 %v3636_v7  ;;  %1122 = vmatpush.msrb.mxu3 %v3641_v8 }
 0x76a   :  { %1103 = vmatpush.msrb.mxu2 %v3650_v9  ;;  %1123 = vmatpush.msrb.mxu3 %v3659_v10 }
 0x76c   :  { %1104 = vmatpush.msrb.mxu2 %v3664_v12  ;;  %1124 = vmatpush.msrb.mxu3 %v3673_v13 }
 0x76e   :  { %1105 = vmatpush.msrb.mxu2 %v3679_v14  ;;  %1125 = vmatpush.msrb.mxu3 %v3686_v15 }
 0x770   :  { %1106 = vmatpush.msrb.mxu2 %v3703_v17  ;;  %1126 = vmatpush.msrb.mxu3 %v3708_v18 }
 0x7e4   :  { %v552_v48 = vpop.f32.mrf.mxu2  ;;  %v572_v49 = vpop.f32.mrf.mxu3 }
 0x7e5   :  { %v575_v50 = vadd.f32 %v2998_v46, %v552_v48  ;;  %v576_v51 = vadd.f32 %v2999_v47, %v572_v49 }
 0x7e7   :  { %3186 = vtanh.f32 %v575_v50  ;;  %v3002_v54 = vmul.f32 -1.442695, %v575_v50  ;;  %v3003_v55 = vmul.f32 -1.442695, %v576_v51 }
 0x7e8   :  { %3188 = vtanh.f32 %v576_v51 }
 0x7e9   :  { %3190 = vpow2.f32 %v3002_v54 }
 0x7ea   :  { %3192 = vpow2.f32 %v3003_v55 }
 0x7ed   :  { %v3187_v52 = vpop.eup %3186 }
 0x7ee   :  { %v3189_v53 = vpop.eup %3188  ;;  %599 = vrot.lane.b32.xlu0 %v3187_v52, %s3543_s27 }
 0x7ef   :  { %636 = vrot.lane.b32.xlu1 %v3189_v53, %s3543_s27  ;;  %v3191_v56 = vpop.eup %3190 }
 0x7f0   :  { %v3193_v57 = vpop.eup %3192  ;;  %v580_v58 = vadd.f32 1.0, %v3191_v56 }
 0x7f1   :  { %v617_v59 = vadd.f32 1.0, %v3193_v57 }
 0x7f2   :  { %3194 = vrcp.f32 %v580_v58  ;;  %v592_v23 = vand.u32 2147483648, %v580_v58  ;;  %vm586_vm3 = vweird.f32 %v580_v58  ;;  %v590_v26 = vand.u32 2147483647, %v580_v58 }
 0x7f3   :  { %3196 = vrcp.f32 %v617_v59  ;;  %v629_v25 = vand.u32 2147483648, %v617_v59  ;;  %vm623_vm4 = vweird.f32 %v617_v59  ;;  %v627_v27 = vand.u32 2147483647, %v617_v59 }
 0x7f4   :  { %v593_v33 = vor.u32 1.1754944e-38, %v592_v23  ;;  %vm591_vm7 = vcmp.eq.f32.partialorder %v590_v26, 8.507059e+37 }
 0x7f5   :  { %v630_v34 = vor.u32 1.1754944e-38, %v629_v25  ;;  %vm628_vm8 = vcmp.eq.f32.partialorder %v627_v27, 8.507059e+37 }
 0x7f8   :  { %v3195_v60 = vpop.eup %3194 }
 0x7f9   :  { %v3197_v61 = vpop.eup %3196  ;;  %v582_v62 = vmul.f32 %v3195_v60, %v580_v58  ;;  %vm587_vm14 = vweird.f32 %v3195_v60 }
 0x7fa   :  { %v619_v63 = vmul.f32 %v3197_v61, %v617_v59  ;;  %vm624_vm15 = vweird.f32 %v3197_v61  ;;  %vm588_vm5 = vmor %vm586_vm3, %vm587_vm14 }
 0x7fb   :  { %v583_v0 = vsub.f32 1.0, %v582_v62  ;;  %vm625_vm6 = vmor %vm623_vm4, %vm624_vm15 }
 0x7fc   :  { %v620_v11 = vsub.f32 1.0, %v619_v63 }
 0x7fd   :  { %v584_v16 = vmul.f32 %v3195_v60, %v583_v0 }
 0x7fe   :  { %v621_v19 = vmul.f32 %v3197_v61, %v620_v11 }
 0x7ff   :  { %v585_v21 = vadd.f32 %v3195_v60, %v584_v16 }
 0x800   :  { %v622_v22 = vadd.f32 %v3197_v61, %v621_v19 }
 0x801   :  { %v589_v28 = vsel %vm588_vm5, %v3195_v60, %v585_v21 }
 0x802   :  { %v626_v32 = vsel %vm625_vm6, %v3197_v61, %v622_v22  ;;  %v594_v36 = vsel %vm591_vm7, %v593_v33, %v589_v28 }
 0x803   :  { %v631_v38 = vsel %vm628_vm8, %v630_v34, %v626_v32  ;;  %v597_v31 = vmul.f32 %v594_v36, %v3885_v39 }
 0x804   :  { %v634_v45 = vmul.f32 %v631_v38, %v3880_v35 }
 0x860   :  { %v600_v20 = vpop.permute.xlu0 %599 }
 0x861   :  { %v637_v37 = vpop.permute.xlu1 %636  ;;  %v602_v40 = vmul.f32 %v600_v20, %v594_v36 }
 0x862   :  { %v639_v41 = vmul.f32 %v637_v37, %v631_v38 }
 0x863   :  { %604 = vrot.lane.b32.xlu2 %v602_v40, %s3542_s29 }
 0x864   :  { %641 = vrot.lane.b32.xlu0 %v639_v41, %s3542_s29 }
 0x8bd   :  { %v605_v42 = vpop.permute.xlu2 %604 }
 0x8be   :  { %v3928_v44 = vadd.f32 %v605_v42, %v597_v31 }
 0x8c0   :  { %3198 = vtanh.f32 %v3928_v44 }
 0x8c6   :  { %v3199_v30 = vpop.eup %3198 }
 0x8c7   :  { %610 = vrot.lane.b32.xlu1 %v3199_v30, %s3543_s27 }
 0x8d6   :  { %v642_v46 = vpop.permute.xlu0 %641 }
 0x8d7   :  { %v3933_v47 = vadd.f32 %v642_v46, %v634_v45 }
 0x8d9   :  { %3200 = vtanh.f32 %v3933_v47 }
 0x8df   :  { %v3201_v48 = vpop.eup %3200 }
 0x8e0   :  { %647 = vrot.lane.b32.xlu2 %v3201_v48, %s3543_s27  ;;  %v4000_v48 = vld [vmem:[%s4942_s4 + $0x70] sm:$0xff] }
 0x939   :  { %v611_v49 = vpop.permute.xlu1 %610 }
 0x93a   :  { %v648_v39 = vpop.permute.xlu2 %647  ;;  %v613_v50 = vmul.f32 %v611_v49, %v594_v36  ;;  %v4006_v49 = vld [vmem:[%s4942_s4 + $0x78] sm:$0xff] }
 0x93b   :  { %v3937_v51 = vmul.f32 %v648_v39, %v631_v38  ;;  %v4012_v39 = vld [vmem:[%s4942_s4 + $0x60] sm:$0xff] }
 0x93c   :  { %652 = vrot.lane.b32.xlu0 %v613_v50, %s3542_s29  ;;  %v4018_v50 = vld [vmem:[%s4942_s4 + $0x68] sm:$0xff] }
 0x93d   :  { %667 = vrot.lane.b32.xlu1 %v3937_v51, %s3543_s27 }
 0x9ae   :  { %v653_v52 = vpop.permute.xlu0 %652 }
 0x9af   :  { %3004 = vst.msk [vmem:[%s4943_s5 + $0x6] sm:$0x3] %vm67_vm0, %v653_v52  ;;  %v668_v35 = vpop.permute.xlu1 %667 }
 0x9b0   :  { %v670_v53 = vsel %vm104_vm1, %v653_v52, %v668_v35  ;;  %v4024_v52 = vld [vmem:[%s4942_s4 + $0x50] sm:$0xff]  ;;  %v4030_v35 = vld [vmem:[%s4942_s4 + $0x58] sm:$0xff] }
 0x9b1   :  { %3008 = vmatmul.msk.f32.vlgmr.msra.gmra.mxu0 %vm106_vm2, %v670_v53  ;;  %3009 = vmatmul.msk.f32.vlgmr.msra.gmra.mxu1 %vm106_vm2, %v670_v53  ;;  %v4036_v53 = vld [vmem:[%s4942_s4 + $0x40] sm:$0xff] }
 0x9b2   :  { %1238 = vmatpush.msra.mxu0 %v3599_v1  ;;  %1258 = vmatpush.msra.mxu1 %v3604_v2  ;;  %v3006_v1 = vld [vmem:[%s4938_s0 + $0x8] sm:$0x3]  ;;  %v3007_v2 = vld [vmem:[%s4939_s1 + $0x1e] sm:$0x3] }
 0x9b4   :  { %1239 = vmatpush.msra.mxu0 %v3612_v3  ;;  %1259 = vmatpush.msra.mxu1 %v3617_v4 }
 0x9b6   :  { %1240 = vmatpush.msra.mxu0 %v3622_v5  ;;  %1260 = vmatpush.msra.mxu1 %v3627_v6 }
 0x9b8   :  { %1241 = vmatpush.msra.mxu0 %v3636_v7  ;;  %1261 = vmatpush.msra.mxu1 %v3641_v8 }
 0x9ba   :  { %1242 = vmatpush.msra.mxu0 %v3650_v9  ;;  %1262 = vmatpush.msra.mxu1 %v3659_v10 }
 0x9bc   :  { %1243 = vmatpush.msra.mxu0 %v3664_v12  ;;  %1263 = vmatpush.msra.mxu1 %v3673_v13 }
 0x9be   :  { %1244 = vmatpush.msra.mxu0 %v3679_v14  ;;  %1264 = vmatpush.msra.mxu1 %v3686_v15 }
 0x9c0   :  { %1245 = vmatpush.msra.mxu0 %v3703_v17  ;;  %1265 = vmatpush.msra.mxu1 %v3708_v18 }
 0xa2e   :  { %v691_v3 = vpop.f32.mrf.mxu0  ;;  %v711_v4 = vpop.f32.mrf.mxu1 }
 0xa2f   :  { %v714_v5 = vadd.f32 %v3006_v1, %v691_v3  ;;  %v715_v6 = vadd.f32 %v3007_v2, %v711_v4  ;;  %v4042_v1 = vld [vmem:[%s4942_s4 + $0x48] sm:$0xff]  ;;  %v4048_v2 = vld [vmem:[%s4942_s4 + $0x30] sm:$0xff]  ;;  %v4054_v3 = vld [vmem:[%s4942_s4 + $0x38] sm:$0xff] }
 0xa30   :  { %v4060_v4 = vld [vmem:[%s4942_s4 + $0x20] sm:$0xff] }
 0xa31   :  { %3202 = vtanh.f32 %v714_v5  ;;  %v3010_v9 = vmul.f32 -1.442695, %v714_v5  ;;  %v3011_v14 = vmul.f32 -1.442695, %v715_v6  ;;  %v4066_v5 = vld [vmem:[%s4942_s4 + $0x28] sm:$0xff] }
 0xa32   :  { %3204 = vtanh.f32 %v715_v6  ;;  %v4072_v6 = vld [vmem:[%s4942_s4 + $0x10] sm:$0xff] }
 0xa33   :  { %3206 = vpow2.f32 %v3010_v9  ;;  %v4090_v9 = vld [vmem:[%s4942_s4 + $0x8] sm:$0xff] }
 0xa37   :  { %v3203_v7 = vpop.eup %3202 }
 0xa38   :  { %v3205_v8 = vpop.eup %3204  ;;  %738 = vrot.lane.b32.xlu2 %v3203_v7, %s3543_s27  ;;  %v4078_v7 = vld [vmem:[%s4942_s4 + $0x18] sm:$0xff] }
 0xa39   :  { %775 = vrot.lane.b32.xlu0 %v3205_v8, %s3543_s27  ;;  %v3207_v10 = vpop.eup %3206  ;;  %v4084_v8 = vld [vmem:[%s4942_s4] sm:$0xff] }
 0xa3a   :  { %v719_v12 = vadd.f32 1.0, %v3207_v10  ;;  %v3014_v10 = vld [vmem:[%s4938_s0 + $0xa] sm:$0x3] }
 0xa3c   :  { %3208 = vrcp.f32 %v719_v12  ;;  %v731_v57 = vand.u32 2147483648, %v719_v12  ;;  %vm725_vm10 = vweird.f32 %v719_v12  ;;  %v729_v58 = vand.u32 2147483647, %v719_v12 }
 0xa3d   :  { %3210 = vpow2.f32 %v3011_v14 }
 0xa3e   :  { %v732_v60 = vor.u32 1.1754944e-38, %v731_v57  ;;  %vm730_vm12 = vcmp.eq.f32.partialorder %v729_v58, 8.507059e+37 }
 0xa42   :  { %v3209_v13 = vpop.eup %3208 }
 0xa43   :  { %v721_v15 = vmul.f32 %v3209_v13, %v719_v12  ;;  %v3211_v54 = vpop.eup %3210  ;;  %vm726_vm9 = vweird.f32 %v3209_v13  ;;  %v3015_v12 = vld [vmem:[%s4939_s1 + $0x1c] sm:$0x3] }
 0xa44   :  { %v756_v55 = vadd.f32 1.0, %v3211_v54  ;;  %vm727_vm11 = vmor %vm725_vm10, %vm726_vm9 }
 0xa45   :  { %v722_v17 = vsub.f32 1.0, %v721_v15 }
 0xa46   :  { %3212 = vrcp.f32 %v756_v55  ;;  %v768_v22 = vand.u32 2147483648, %v756_v55  ;;  %vm762_vm14 = vweird.f32 %v756_v55  ;;  %v766_v23 = vand.u32 2147483647, %v756_v55 }
 0xa47   :  { %v723_v18 = vmul.f32 %v3209_v13, %v722_v17 }
 0xa48   :  { %v769_v26 = vor.u32 1.1754944e-38, %v768_v22  ;;  %vm767_vm3 = vcmp.eq.f32.partialorder %v766_v23, 8.507059e+37 }
 0xa49   :  { %v724_v56 = vadd.f32 %v3209_v13, %v723_v18 }
 0xa4b   :  { %v728_v59 = vsel %vm727_vm11, %v3209_v13, %v724_v56 }
 0xa4c   :  { %v733_v62 = vsel %vm730_vm12, %v732_v60, %v728_v59  ;;  %v3213_v0 = vpop.eup %3212 }
 0xa4d   :  { %v758_v11 = vmul.f32 %v3213_v0, %v756_v55  ;;  %vm763_vm13 = vweird.f32 %v3213_v0  ;;  %v736_v33 = vmul.f32 %v733_v62, %v3928_v44 }
 0xa4e   :  { %vm764_vm15 = vmor %vm762_vm14, %vm763_vm13 }
 0xa4f   :  { %v759_v16 = vsub.f32 1.0, %v758_v11 }
 0xa51   :  { %v760_v19 = vmul.f32 %v3213_v0, %v759_v16 }
 0xa53   :  { %v761_v21 = vadd.f32 %v3213_v0, %v760_v19 }
 0xa55   :  { %v765_v25 = vsel %vm764_vm15, %v3213_v0, %v761_v21 }
 0xa56   :  { %v770_v28 = vsel %vm767_vm3, %v769_v26, %v765_v25 }
 0xa57   :  { %v773_v34 = vmul.f32 %v770_v28, %v3933_v47 }
 0xa92   :  { %v739_v61 = vpop.permute.xlu2 %738 }
 0xa93   :  { %v741_v63 = vmul.f32 %v739_v61, %v733_v62 }
 0xa95   :  { %743 = vrot.lane.b32.xlu1 %v741_v63, %s3542_s29 }
 0xaab   :  { %v776_v27 = vpop.permute.xlu0 %775 }
 0xaac   :  { %v778_v32 = vmul.f32 %v776_v27, %v770_v28 }
 0xaae   :  { %780 = vrot.lane.b32.xlu2 %v778_v32, %s3542_s29 }
 0xb07   :  { %v744_v20 = vpop.permute.xlu1 %743 }
 0xb08   :  { %v781_v36 = vpop.permute.xlu2 %780  ;;  %v3977_v37 = vadd.f32 %v744_v20, %v736_v33 }
 0xb09   :  { %v3979_v38 = vadd.f32 %v781_v36, %v773_v34 }
 0xb0a   :  { %3214 = vtanh.f32 %v3977_v37 }
 0xb0b   :  { %3216 = vtanh.f32 %v3979_v38 }
 0xb10   :  { %v3215_v40 = vpop.eup %3214 }
 0xb11   :  { %v3217_v41 = vpop.eup %3216  ;;  %749 = vrot.lane.b32.xlu0 %v3215_v40, %s3543_s27 }
 0xb12   :  { %786 = vrot.lane.b32.xlu1 %v3217_v41, %s3543_s27 }
 0xb83   :  { %v750_v31 = vpop.permute.xlu0 %749 }
 0xb84   :  { %v787_v42 = vpop.permute.xlu1 %786  ;;  %v752_v44 = vmul.f32 %v750_v31, %v733_v62 }
 0xb85   :  { %v3985_v30 = vmul.f32 %v787_v42, %v770_v28 }
 0xb86   :  { %791 = vrot.lane.b32.xlu2 %v752_v44, %s3542_s29 }
 0xb87   :  { %806 = vrot.lane.b32.xlu0 %v3985_v30, %s3543_s27 }
 0xbe0   :  { %v792_v45 = vpop.permute.xlu2 %791 }
 0xbe1   :  { %3012 = vst.msk [vmem:[%s4943_s5 + $0x8] sm:$0x3] %vm67_vm0, %v792_v45 }
 0xbf9   :  { %v807_v46 = vpop.permute.xlu0 %806 }
 0xbfa   :  { %v809_v47 = vsel %vm104_vm1, %v792_v45, %v807_v46 }
 0xbfb   :  { %3016 = vmatmul.msk.f32.vlgmr.msra.gmra.mxu2 %vm106_vm2, %v809_v47  ;;  %3017 = vmatmul.msk.f32.vlgmr.msra.gmra.mxu3 %vm106_vm2, %v809_v47 }
 0xbfc   :  { %1377 = vmatpush.msra.mxu2 %v4000_v48  ;;  %1397 = vmatpush.msra.mxu3 %v4006_v49 }
 0xbfe   :  { %1378 = vmatpush.msra.mxu2 %v4012_v39  ;;  %1398 = vmatpush.msra.mxu3 %v4018_v50 }
 0xc00   :  { %1379 = vmatpush.msra.mxu2 %v4024_v52  ;;  %1399 = vmatpush.msra.mxu3 %v4030_v35 }
 0xc02   :  { %1380 = vmatpush.msra.mxu2 %v4036_v53  ;;  %1400 = vmatpush.msra.mxu3 %v4042_v1 }
 0xc04   :  { %1381 = vmatpush.msra.mxu2 %v4048_v2  ;;  %1401 = vmatpush.msra.mxu3 %v4054_v3 }
 0xc06   :  { %1382 = vmatpush.msra.mxu2 %v4060_v4  ;;  %1402 = vmatpush.msra.mxu3 %v4066_v5 }
 0xc08   :  { %1383 = vmatpush.msra.mxu2 %v4072_v6  ;;  %1403 = vmatpush.msra.mxu3 %v4078_v7 }
 0xc0a   :  { %1384 = vmatpush.msra.mxu2 %v4084_v8  ;;  %1404 = vmatpush.msra.mxu3 %v4090_v9 }
 0xc7e   :  { %v830_v13 = vpop.f32.mrf.mxu2  ;;  %v850_v14 = vpop.f32.mrf.mxu3 }
 0xc7f   :  { %v853_v15 = vadd.f32 %v3014_v10, %v830_v13  ;;  %v854_v17 = vadd.f32 %v3015_v12, %v850_v14 }
 0xc81   :  { %3218 = vtanh.f32 %v853_v15  ;;  %v3019_v55 = vmul.f32 -1.442695, %v854_v17  ;;  %v3018_v59 = vmul.f32 -1.442695, %v853_v15 }
 0xc82   :  { %3220 = vtanh.f32 %v854_v17 }
 0xc83   :  { %3222 = vpow2.f32 %v3019_v55 }
 0xc87   :  { %v3219_v18 = vpop.eup %3218 }
 0xc88   :  { %v3221_v54 = vpop.eup %3220  ;;  %877 = vrot.lane.b32.xlu1 %v3219_v18, %s3543_s27 }
 0xc89   :  { %914 = vrot.lane.b32.xlu2 %v3221_v54, %s3543_s27  ;;  %v3223_v56 = vpop.eup %3222 }
 0xc8a   :  { %v895_v57 = vadd.f32 1.0, %v3223_v56 }
 0xc8c   :  { %3224 = vrcp.f32 %v895_v57  ;;  %v907_v16 = vand.u32 2147483648, %v895_v57  ;;  %vm901_vm5 = vweird.f32 %v895_v57  ;;  %v905_v19 = vand.u32 2147483647, %v895_v57 }
 0xc8d   :  { %3226 = vpow2.f32 %v3018_v59 }
 0xc8e   :  { %v908_v22 = vor.u32 1.1754944e-38, %v907_v16  ;;  %vm906_vm7 = vcmp.eq.f32.partialorder %v905_v19, 8.507059e+37 }
 0xc92   :  { %v3225_v58 = vpop.eup %3224 }
 0xc93   :  { %v897_v60 = vmul.f32 %v3225_v58, %v895_v57  ;;  %v3227_v62 = vpop.eup %3226  ;;  %vm902_vm4 = vweird.f32 %v3225_v58  ;;  %v3022_v57 = vld [vmem:[%s4938_s0 + $0xc] sm:$0x3] }
 0xc94   :  { %v858_v0 = vadd.f32 1.0, %v3227_v62  ;;  %vm903_vm6 = vmor %vm901_vm5, %vm902_vm4 }
 0xc95   :  { %v898_v61 = vsub.f32 1.0, %v897_v60 }
 0xc96   :  { %3228 = vrcp.f32 %v858_v0  ;;  %v870_v20 = vand.u32 2147483648, %v858_v0  ;;  %vm864_vm9 = vweird.f32 %v858_v0  ;;  %v868_v36 = vand.u32 2147483647, %v858_v0 }
 0xc97   :  { %v899_v63 = vmul.f32 %v3225_v58, %v898_v61 }
 0xc98   :  { %v871_v41 = vor.u32 1.1754944e-38, %v870_v20  ;;  %vm869_vm11 = vcmp.eq.f32.partialorder %v868_v36, 8.507059e+37 }
 0xc99   :  { %v900_v11 = vadd.f32 %v3225_v58, %v899_v63 }
 0xc9b   :  { %v904_v21 = vsel %vm903_vm6, %v3225_v58, %v900_v11  ;;  %v3023_v58 = vld [vmem:[%s4939_s1 + $0x1a] sm:$0x3] }
 0xc9c   :  { %v909_v25 = vsel %vm906_vm7, %v908_v22, %v904_v21  ;;  %v3229_v26 = vpop.eup %3228 }
 0xc9d   :  { %v860_v28 = vmul.f32 %v3229_v26, %v858_v0  ;;  %vm865_vm8 = vweird.f32 %v3229_v26  ;;  %v912_v45 = vmul.f32 %v909_v25, %v3979_v38 }
 0xc9e   :  { %vm866_vm10 = vmor %vm864_vm9, %vm865_vm8 }
 0xc9f   :  { %v861_v32 = vsub.f32 1.0, %v860_v28 }
 0xca1   :  { %v862_v33 = vmul.f32 %v3229_v26, %v861_v32 }
 0xca3   :  { %v863_v34 = vadd.f32 %v3229_v26, %v862_v33 }
 0xca5   :  { %v867_v40 = vsel %vm866_vm10, %v3229_v26, %v863_v34 }
 0xca6   :  { %v872_v42 = vsel %vm869_vm11, %v871_v41, %v867_v40 }
 0xca7   :  { %v875_v12 = vmul.f32 %v872_v42, %v3977_v37 }
 0xce3   :  { %v915_v23 = vpop.permute.xlu2 %914 }
 0xce4   :  { %v917_v27 = vmul.f32 %v915_v23, %v909_v25 }
 0xce6   :  { %919 = vrot.lane.b32.xlu1 %v917_v27, %s3542_s29 }
 0xcfa   :  { %v878_v31 = vpop.permute.xlu1 %877 }
 0xcfb   :  { %v880_v44 = vmul.f32 %v878_v31, %v872_v42 }
 0xcfd   :  { %882 = vrot.lane.b32.xlu0 %v880_v44, %s3542_s29 }
 0xd58   :  { %v920_v46 = vpop.permute.xlu1 %919 }
 0xd59   :  { %v4104_v47 = vadd.f32 %v920_v46, %v912_v45 }
 0xd5b   :  { %3230 = vtanh.f32 %v4104_v47 }
 0xd61   :  { %v3231_v10 = vpop.eup %3230 }
 0xd62   :  { %925 = vrot.lane.b32.xlu0 %v3231_v10, %s3543_s27 }
 0xd6f   :  { %v883_v13 = vpop.permute.xlu0 %882 }
 0xd70   :  { %v4109_v14 = vadd.f32 %v883_v13, %v875_v12 }
 0xd72   :  { %3232 = vtanh.f32 %v4109_v14 }
 0xd78   :  { %v3233_v15 = vpop.eup %3232 }
 0xd79   :  { %888 = vrot.lane.b32.xlu2 %v3233_v15, %s3543_s27 }
 0xdd3   :  { %v889_v17 = vpop.permute.xlu2 %888 }
 0xdd4   :  { %v926_v38 = vpop.permute.xlu0 %925  ;;  %v891_v18 = vmul.f32 %v889_v17, %v872_v42 }
 0xdd5   :  { %v4113_v54 = vmul.f32 %v926_v38, %v909_v25 }
 0xdd6   :  { %930 = vrot.lane.b32.xlu1 %v891_v18, %s3542_s29 }
 0xdd7   :  { %945 = vrot.lane.b32.xlu2 %v4113_v54, %s3543_s27 }
 0xe31   :  { %v946_v55 = vpop.permute.xlu2 %945 }
 0xe48   :  { %v931_v37 = vpop.permute.xlu1 %930 }
 0xe49   :  { %3020 = vst.msk [vmem:[%s4943_s5 + $0xa] sm:$0x3] %vm67_vm0, %v931_v37  ;;  %v948_v56 = vsel %vm104_vm1, %v931_v37, %v946_v55 }
 0xe4a   :  { %3024 = vmatmul.msk.f32.vlgmr.msrb.gmra.mxu0 %vm106_vm2, %v948_v56  ;;  %3025 = vmatmul.msk.f32.vlgmr.msrb.gmra.mxu1 %vm106_vm2, %v948_v56 }
 0xe4b   :  { %1516 = vmatpush.msrb.mxu0 %v4000_v48  ;;  %1536 = vmatpush.msrb.mxu1 %v4006_v49 }
 0xe4d   :  { %1517 = vmatpush.msrb.mxu0 %v4012_v39  ;;  %1537 = vmatpush.msrb.mxu1 %v4018_v50 }
 0xe4f   :  { %1518 = vmatpush.msrb.mxu0 %v4024_v52  ;;  %1538 = vmatpush.msrb.mxu1 %v4030_v35 }
 0xe51   :  { %1519 = vmatpush.msrb.mxu0 %v4036_v53  ;;  %1539 = vmatpush.msrb.mxu1 %v4042_v1 }
 0xe53   :  { %1520 = vmatpush.msrb.mxu0 %v4048_v2  ;;  %1540 = vmatpush.msrb.mxu1 %v4054_v3 }
 0xe55   :  { %1521 = vmatpush.msrb.mxu0 %v4060_v4  ;;  %1541 = vmatpush.msrb.mxu1 %v4066_v5 }
 0xe57   :  { %1522 = vmatpush.msrb.mxu0 %v4072_v6  ;;  %1542 = vmatpush.msrb.mxu1 %v4078_v7 }
 0xe59   :  { %1523 = vmatpush.msrb.mxu0 %v4084_v8  ;;  %1543 = vmatpush.msrb.mxu1 %v4090_v9 }
 0xec7   :  { %v969_v59 = vpop.f32.mrf.mxu0  ;;  %v989_v60 = vpop.f32.mrf.mxu1 }
 0xec8   :  { %v992_v61 = vadd.f32 %v3022_v57, %v969_v59  ;;  %v993_v62 = vadd.f32 %v3023_v58, %v989_v60 }
 0xeca   :  { %3234 = vtanh.f32 %v992_v61  ;;  %v3026_v11 = vmul.f32 -1.442695, %v992_v61  ;;  %v3027_v16 = vmul.f32 -1.442695, %v993_v62 }
 0xecb   :  { %3236 = vtanh.f32 %v993_v62 }
 0xecc   :  { %3238 = vpow2.f32 %v3026_v11 }
 0xecd   :  { %3240 = vpow2.f32 %v3027_v16 }
 0xed0   :  { %v3235_v63 = vpop.eup %3234 }
 0xed1   :  { %v3237_v0 = vpop.eup %3236  ;;  %1016 = vrot.lane.b32.xlu0 %v3235_v63, %s3543_s27 }
 0xed2   :  { %1053 = vrot.lane.b32.xlu1 %v3237_v0, %s3543_s27  ;;  %v3239_v19 = vpop.eup %3238 }
 0xed3   :  { %v3241_v21 = vpop.eup %3240  ;;  %v997_v22 = vadd.f32 1.0, %v3239_v19 }
 0xed4   :  { %v1034_v23 = vadd.f32 1.0, %v3241_v21  ;;  %v3030_v21 = vld [vmem:[%s4938_s0 + $0xe] sm:$0x3] }
 0xed5   :  { %3242 = vrcp.f32 %v997_v22  ;;  %v1009_v41 = vand.u32 2147483648, %v997_v22  ;;  %vm1003_vm14 = vweird.f32 %v997_v22  ;;  %v1007_v42 = vand.u32 2147483647, %v997_v22 }
 0xed6   :  { %3244 = vrcp.f32 %v1034_v23  ;;  %v1046_v31 = vand.u32 2147483648, %v1034_v23  ;;  %vm1040_vm15 = vweird.f32 %v1034_v23  ;;  %v1044_v44 = vand.u32 2147483647, %v1034_v23 }
 0xed7   :  { %v1010_v10 = vor.u32 1.1754944e-38, %v1009_v41  ;;  %vm1008_vm5 = vcmp.eq.f32.partialorder %v1007_v42, 8.507059e+37 }
 0xed8   :  { %v1047_v12 = vor.u32 1.1754944e-38, %v1046_v31  ;;  %vm1045_vm6 = vcmp.eq.f32.partialorder %v1044_v44, 8.507059e+37 }
 0xedb   :  { %v3243_v25 = vpop.eup %3242 }
 0xedc   :  { %v3245_v26 = vpop.eup %3244  ;;  %v999_v27 = vmul.f32 %v3243_v25, %v997_v22  ;;  %vm1004_vm12 = vweird.f32 %v3243_v25  ;;  %v3031_v22 = vld [vmem:[%s4939_s1 + $0x18] sm:$0x3] }
 0xedd   :  { %v1036_v28 = vmul.f32 %v3245_v26, %v1034_v23  ;;  %vm1041_vm13 = vweird.f32 %v3245_v26  ;;  %vm1005_vm3 = vmor %vm1003_vm14, %vm1004_vm12 }
 0xede   :  { %v1000_v32 = vsub.f32 1.0, %v999_v27  ;;  %vm1042_vm4 = vmor %vm1040_vm15, %vm1041_vm13 }
 0xedf   :  { %v1037_v33 = vsub.f32 1.0, %v1036_v28 }
 0xee0   :  { %v1001_v34 = vmul.f32 %v3243_v25, %v1000_v32 }
 0xee1   :  { %v1038_v20 = vmul.f32 %v3245_v26, %v1037_v33 }
 0xee2   :  { %v1002_v36 = vadd.f32 %v3243_v25, %v1001_v34 }
 0xee3   :  { %v1039_v40 = vadd.f32 %v3245_v26, %v1038_v20 }
 0xee4   :  { %v1006_v45 = vsel %vm1005_vm3, %v3243_v25, %v1002_v36 }
 0xee5   :  { %v1043_v46 = vsel %vm1042_vm4, %v3245_v26, %v1039_v40  ;;  %v1011_v15 = vsel %vm1008_vm5, %v1010_v10, %v1006_v45 }
 0xee6   :  { %v1048_v38 = vsel %vm1045_vm6, %v1047_v12, %v1043_v46  ;;  %v1014_v37 = vmul.f32 %v1011_v15, %v4109_v14 }
 0xee7   :  { %v1051_v59 = vmul.f32 %v1048_v38, %v4104_v47 }
 0xf43   :  { %v1017_v13 = vpop.permute.xlu0 %1016 }
 0xf44   :  { %v1054_v17 = vpop.permute.xlu1 %1053  ;;  %v1019_v18 = vmul.f32 %v1017_v13, %v1011_v15 }
 0xf45   :  { %v1056_v55 = vmul.f32 %v1054_v17, %v1048_v38 }
 0xf46   :  { %1021 = vrot.lane.b32.xlu2 %v1019_v18, %s3542_s29 }
 0xf47   :  { %1058 = vrot.lane.b32.xlu0 %v1056_v55, %s3542_s29 }
 0xfa0   :  { %v1022_v56 = vpop.permute.xlu2 %1021 }
 0xfa1   :  { %v4152_v57 = vadd.f32 %v1022_v56, %v1014_v37 }
 0xfa3   :  { %3246 = vtanh.f32 %v4152_v57 }
 0xfa9   :  { %v3247_v58 = vpop.eup %3246 }
 0xfaa   :  { %1027 = vrot.lane.b32.xlu1 %v3247_v58, %s3543_s27 }
 0xfb9   :  { %v1059_v60 = vpop.permute.xlu0 %1058 }
 0xfba   :  { %v4157_v61 = vadd.f32 %v1059_v60, %v1051_v59 }
 0xfbc   :  { %3248 = vtanh.f32 %v4157_v61 }
 0xfc2   :  { %v3249_v62 = vpop.eup %3248 }
 0xfc3   :  { %1064 = vrot.lane.b32.xlu2 %v3249_v62, %s3543_s27 }
0x101c   :  { %v1028_v63 = vpop.permute.xlu1 %1027 }
0x101d   :  { %v1065_v14 = vpop.permute.xlu2 %1064  ;;  %v1030_v0 = vmul.f32 %v1028_v63, %v1011_v15 }
0x101e   :  { %v4161_v11 = vmul.f32 %v1065_v14, %v1048_v38 }
0x101f   :  { %1069 = vrot.lane.b32.xlu0 %v1030_v0, %s3542_s29 }
0x1020   :  { %1084 = vrot.lane.b32.xlu1 %v4161_v11, %s3543_s27 }
0x1091   :  { %v1070_v16 = vpop.permute.xlu0 %1069 }
0x1092   :  { %3028 = vst.msk [vmem:[%s4943_s5 + $0xc] sm:$0x3] %vm67_vm0, %v1070_v16  ;;  %v1085_v47 = vpop.permute.xlu1 %1084 }
0x1093   :  { %v1087_v19 = vsel %vm104_vm1, %v1070_v16, %v1085_v47 }
0x1094   :  { %3032 = vmatmul.msk.f32.vlgmr.msrb.gmra.mxu2 %vm106_vm2, %v1087_v19  ;;  %3033 = vmatmul.msk.f32.vlgmr.msrb.gmra.mxu3 %vm106_vm2, %v1087_v19 }
0x1095   :  { %1655 = vmatpush.msrb.mxu2 %v4000_v48  ;;  %1675 = vmatpush.msrb.mxu3 %v4006_v49 }
0x1097   :  { %1656 = vmatpush.msrb.mxu2 %v4012_v39  ;;  %1676 = vmatpush.msrb.mxu3 %v4018_v50 }
0x1099   :  { %1657 = vmatpush.msrb.mxu2 %v4024_v52  ;;  %1677 = vmatpush.msrb.mxu3 %v4030_v35 }
0x109b   :  { %1658 = vmatpush.msrb.mxu2 %v4036_v53  ;;  %1678 = vmatpush.msrb.mxu3 %v4042_v1 }
0x109d   :  { %1659 = vmatpush.msrb.mxu2 %v4048_v2  ;;  %1679 = vmatpush.msrb.mxu3 %v4054_v3 }
0x109f   :  { %1660 = vmatpush.msrb.mxu2 %v4060_v4  ;;  %1680 = vmatpush.msrb.mxu3 %v4066_v5 }
0x10a1   :  { %1661 = vmatpush.msrb.mxu2 %v4072_v6  ;;  %1681 = vmatpush.msrb.mxu3 %v4078_v7 }
0x10a3   :  { %1662 = vmatpush.msrb.mxu2 %v4084_v8  ;;  %1682 = vmatpush.msrb.mxu3 %v4090_v9 }
0x1117   :  { %v1108_v23 = vpop.f32.mrf.mxu2  ;;  %v1128_v25 = vpop.f32.mrf.mxu3 }
0x1118   :  { %v1131_v26 = vadd.f32 %v3030_v21, %v1108_v23  ;;  %v1132_v27 = vadd.f32 %v3031_v22, %v1128_v25 }
0x111a   :  { %3250 = vtanh.f32 %v1131_v26  ;;  %v3034_v33 = vmul.f32 -1.442695, %v1131_v26  ;;  %v3035_v40 = vmul.f32 -1.442695, %v1132_v27 }
0x111b   :  { %3252 = vtanh.f32 %v1132_v27 }
0x111c   :  { %3254 = vpow2.f32 %v3034_v33 }
0x1120   :  { %v3251_v28 = vpop.eup %3250 }
0x1121   :  { %v3253_v32 = vpop.eup %3252  ;;  %1155 = vrot.lane.b32.xlu2 %v3251_v28, %s3543_s27 }
0x1122   :  { %1192 = vrot.lane.b32.xlu0 %v3253_v32, %s3543_s27  ;;  %v3255_v34 = vpop.eup %3254 }
0x1123   :  { %v1136_v20 = vadd.f32 1.0, %v3255_v34 }
0x1125   :  { %3256 = vrcp.f32 %v1136_v20  ;;  %v1148_v10 = vand.u32 2147483648, %v1136_v20  ;;  %vm1142_vm8 = vweird.f32 %v1136_v20  ;;  %v1146_v12 = vand.u32 2147483647, %v1136_v20 }
0x1126   :  { %3258 = vpow2.f32 %v3035_v40  ;;  %v3038_v40 = vld [vmem:[%s4938_s0 + $0x10] sm:$0x3] }
0x1127   :  { %v1149_v15 = vor.u32 1.1754944e-38, %v1148_v10  ;;  %vm1147_vm10 = vcmp.eq.f32.partialorder %v1146_v12, 8.507059e+37 }
0x112b   :  { %v3257_v36 = vpop.eup %3256 }
0x112c   :  { %v1138_v41 = vmul.f32 %v3257_v36, %v1136_v20  ;;  %v3259_v44 = vpop.eup %3258  ;;  %vm1143_vm7 = vweird.f32 %v3257_v36 }
0x112d   :  { %v1173_v45 = vadd.f32 1.0, %v3259_v44  ;;  %vm1144_vm9 = vmor %vm1142_vm8, %vm1143_vm7 }
0x112e   :  { %v1139_v31 = vsub.f32 1.0, %v1138_v41  ;;  %v3039_v41 = vld [vmem:[%s4939_s1 + $0x16] sm:$0x3] }
0x112f   :  { %3260 = vrcp.f32 %v1173_v45  ;;  %v1185_v60 = vand.u32 2147483648, %v1173_v45  ;;  %vm1179_vm12 = vweird.f32 %v1173_v45  ;;  %v1183_v62 = vand.u32 2147483647, %v1173_v45 }
0x1130   :  { %v1140_v42 = vmul.f32 %v3257_v36, %v1139_v31 }
0x1131   :  { %v1186_v14 = vor.u32 1.1754944e-38, %v1185_v60  ;;  %vm1184_vm14 = vcmp.eq.f32.partialorder %v1183_v62, 8.507059e+37 }
0x1132   :  { %v1141_v46 = vadd.f32 %v3257_v36, %v1140_v42 }
0x1134   :  { %v1145_v13 = vsel %vm1144_vm9, %v3257_v36, %v1141_v46 }
0x1135   :  { %v1150_v38 = vsel %vm1147_vm10, %v1149_v15, %v1145_v13  ;;  %v3261_v55 = vpop.eup %3260 }
0x1136   :  { %v1175_v37 = vmul.f32 %v3261_v55, %v1173_v45  ;;  %vm1180_vm11 = vweird.f32 %v3261_v55  ;;  %v1153_v19 = vmul.f32 %v1150_v38, %v4152_v57 }
0x1137   :  { %vm1181_vm13 = vmor %vm1179_vm12, %vm1180_vm11 }
0x1138   :  { %v1176_v56 = vsub.f32 1.0, %v1175_v37 }
0x113a   :  { %v1177_v58 = vmul.f32 %v3261_v55, %v1176_v56 }
0x113c   :  { %v1178_v59 = vadd.f32 %v3261_v55, %v1177_v58 }
0x113e   :  { %v1182_v63 = vsel %vm1181_vm13, %v3261_v55, %v1178_v59 }
0x113f   :  { %v1187_v16 = vsel %vm1184_vm14, %v1186_v14, %v1182_v63 }
0x1140   :  { %v1190_v21 = vmul.f32 %v1187_v16, %v4157_v61 }
0x117b   :  { %v1156_v17 = vpop.permute.xlu2 %1155 }
0x117c   :  { %v1158_v18 = vmul.f32 %v1156_v17, %v1150_v38 }
0x117e   :  { %1160 = vrot.lane.b32.xlu1 %v1158_v18, %s3542_s29 }
0x1194   :  { %v1193_v0 = vpop.permute.xlu0 %1192 }
0x1195   :  { %v1195_v47 = vmul.f32 %v1193_v0, %v1187_v16 }
0x1197   :  { %1197 = vrot.lane.b32.xlu2 %v1195_v47, %s3542_s29 }
0x11f0   :  { %v1161_v22 = vpop.permute.xlu1 %1160 }
0x11f1   :  { %v1198_v23 = vpop.permute.xlu2 %1197  ;;  %v4201_v25 = vadd.f32 %v1161_v22, %v1153_v19 }
0x11f2   :  { %v4203_v26 = vadd.f32 %v1198_v23, %v1190_v21 }
0x11f3   :  { %3262 = vtanh.f32 %v4201_v25 }
0x11f4   :  { %3264 = vtanh.f32 %v4203_v26 }
0x11f9   :  { %v3263_v27 = vpop.eup %3262 }
0x11fa   :  { %v3265_v28 = vpop.eup %3264  ;;  %1166 = vrot.lane.b32.xlu0 %v3263_v27, %s3543_s27 }
0x11fb   :  { %1203 = vrot.lane.b32.xlu1 %v3265_v28, %s3543_s27 }
0x126c   :  { %v1167_v32 = vpop.permute.xlu0 %1166 }
0x126d   :  { %v1204_v57 = vpop.permute.xlu1 %1203  ;;  %v1169_v33 = vmul.f32 %v1167_v32, %v1150_v38 }
0x126e   :  { %v4209_v61 = vmul.f32 %v1204_v57, %v1187_v16 }
0x126f   :  { %1208 = vrot.lane.b32.xlu2 %v1169_v33, %s3542_s29 }
0x1270   :  { %1223 = vrot.lane.b32.xlu0 %v4209_v61, %s3543_s27 }
0x12c9   :  { %v1209_v34 = vpop.permute.xlu2 %1208 }
0x12ca   :  { %3036 = vst.msk [vmem:[%s4943_s5 + $0xe] sm:$0x3] %vm67_vm0, %v1209_v34 }
0x12e2   :  { %v1224_v20 = vpop.permute.xlu0 %1223 }
0x12e3   :  { %v1226_v36 = vsel %vm104_vm1, %v1209_v34, %v1224_v20 }
0x12e4   :  { %3040 = vmatmul.msk.f32.vlgmr.msra.gmra.mxu0 %vm106_vm2, %v1226_v36  ;;  %3041 = vmatmul.msk.f32.vlgmr.msra.gmra.mxu1 %vm106_vm2, %v1226_v36 }
0x12e5   :  { %1794 = vmatpush.msra.mxu0 %v4000_v48  ;;  %1814 = vmatpush.msra.mxu1 %v4006_v49 }
0x12e7   :  { %1795 = vmatpush.msra.mxu0 %v4012_v39  ;;  %1815 = vmatpush.msra.mxu1 %v4018_v50 }
0x12e9   :  { %1796 = vmatpush.msra.mxu0 %v4024_v52  ;;  %1816 = vmatpush.msra.mxu1 %v4030_v35 }
0x12eb   :  { %1797 = vmatpush.msra.mxu0 %v4036_v53  ;;  %1817 = vmatpush.msra.mxu1 %v4042_v1 }
0x12ed   :  { %1798 = vmatpush.msra.mxu0 %v4048_v2  ;;  %1818 = vmatpush.msra.mxu1 %v4054_v3 }
0x12ef   :  { %1799 = vmatpush.msra.mxu0 %v4060_v4  ;;  %1819 = vmatpush.msra.mxu1 %v4066_v5 }
0x12f1   :  { %1800 = vmatpush.msra.mxu0 %v4072_v6  ;;  %1820 = vmatpush.msra.mxu1 %v4078_v7 }
0x12f3   :  { %1801 = vmatpush.msra.mxu0 %v4084_v8  ;;  %1821 = vmatpush.msra.mxu1 %v4090_v9 }
0x1361   :  { %v1247_v31 = vpop.f32.mrf.mxu0  ;;  %v1267_v42 = vpop.f32.mrf.mxu1 }
0x1362   :  { %v1270_v44 = vadd.f32 %v3038_v40, %v1247_v31  ;;  %v1271_v45 = vadd.f32 %v3039_v41, %v1267_v42 }
0x1364   :  { %3266 = vtanh.f32 %v1270_v44  ;;  %v3043_v12 = vmul.f32 -1.442695, %v1271_v45  ;;  %v3042_v38 = vmul.f32 -1.442695, %v1270_v44 }
0x1365   :  { %3268 = vtanh.f32 %v1271_v45 }
0x1366   :  { %3270 = vpow2.f32 %v3043_v12 }
0x136a   :  { %v3267_v46 = vpop.eup %3266 }
0x136b   :  { %v3269_v10 = vpop.eup %3268  ;;  %1294 = vrot.lane.b32.xlu1 %v3267_v46, %s3543_s27 }
0x136c   :  { %1331 = vrot.lane.b32.xlu2 %v3269_v10, %s3543_s27  ;;  %v3271_v13 = vpop.eup %3270 }
0x136d   :  { %v1312_v15 = vadd.f32 1.0, %v3271_v13 }
0x136f   :  { %3272 = vrcp.f32 %v1312_v15  ;;  %v1324_v60 = vand.u32 2147483648, %v1312_v15  ;;  %vm1318_vm3 = vweird.f32 %v1312_v15  ;;  %v1322_v62 = vand.u32 2147483647, %v1312_v15 }
0x1370   :  { %3274 = vpow2.f32 %v3042_v38 }
0x1371   :  { %v1325_v14 = vor.u32 1.1754944e-38, %v1324_v60  ;;  %vm1323_vm5 = vcmp.eq.f32.partialorder %v1322_v62, 8.507059e+37 }
0x1375   :  { %v3273_v17 = vpop.eup %3272 }
0x1376   :  { %v1314_v18 = vmul.f32 %v3273_v17, %v1312_v15  ;;  %v3275_v37 = vpop.eup %3274  ;;  %vm1319_vm15 = vweird.f32 %v3273_v17 }
0x1377   :  { %v1275_v58 = vadd.f32 1.0, %v3275_v37  ;;  %vm1320_vm4 = vmor %vm1318_vm3, %vm1319_vm15 }
0x1378   :  { %v1315_v55 = vsub.f32 1.0, %v1314_v18  ;;  %v3046_v18 = vld [vmem:[%s4938_s0 + $0x12] sm:$0x3] }
0x1379   :  { %3276 = vrcp.f32 %v1275_v58  ;;  %v1287_v28 = vand.u32 2147483648, %v1275_v58  ;;  %vm1281_vm7 = vweird.f32 %v1275_v58  ;;  %v1285_v32 = vand.u32 2147483647, %v1275_v58 }
0x137a   :  { %v1316_v56 = vmul.f32 %v3273_v17, %v1315_v55  ;;  %v3047_v55 = vld [vmem:[%s4939_s1 + $0x14] sm:$0x3] }
0x137b   :  { %v1288_v33 = vor.u32 1.1754944e-38, %v1287_v28  ;;  %vm1286_vm9 = vcmp.eq.f32.partialorder %v1285_v32, 8.507059e+37 }
0x137c   :  { %v1317_v59 = vadd.f32 %v3273_v17, %v1316_v56 }
0x137e   :  { %v1321_v63 = vsel %vm1320_vm4, %v3273_v17, %v1317_v59 }
0x137f   :  { %v1326_v16 = vsel %vm1323_vm5, %v1325_v14, %v1321_v63  ;;  %v3277_v47 = vpop.eup %3276 }
0x1380   :  { %v1277_v21 = vmul.f32 %v3277_v47, %v1275_v58  ;;  %vm1282_vm6 = vweird.f32 %v3277_v47  ;;  %v1329_v40 = vmul.f32 %v1326_v16, %v4203_v26 }
0x1381   :  { %vm1283_vm8 = vmor %vm1281_vm7, %vm1282_vm6 }
0x1382   :  { %v1278_v22 = vsub.f32 1.0, %v1277_v21 }
0x1384   :  { %v1279_v23 = vmul.f32 %v3277_v47, %v1278_v22 }
0x1386   :  { %v1280_v27 = vadd.f32 %v3277_v47, %v1279_v23 }
0x1388   :  { %v1284_v57 = vsel %vm1283_vm8, %v3277_v47, %v1280_v27 }
0x1389   :  { %v1289_v20 = vsel %vm1286_vm9, %v1288_v33, %v1284_v57 }
0x138a   :  { %v1292_v44 = vmul.f32 %v1289_v20, %v4201_v25 }
0x13c6   :  { %v1332_v0 = vpop.permute.xlu2 %1331 }
0x13c7   :  { %v1334_v19 = vmul.f32 %v1332_v0, %v1326_v16 }
0x13c9   :  { %1336 = vrot.lane.b32.xlu1 %v1334_v19, %s3542_s29 }
0x13dd   :  { %v1295_v34 = vpop.permute.xlu1 %1294 }
0x13de   :  { %v1297_v36 = vmul.f32 %v1295_v34, %v1289_v20 }
0x13e0   :  { %1299 = vrot.lane.b32.xlu0 %v1297_v36, %s3542_s29 }
0x143b   :  { %v1337_v41 = vpop.permute.xlu1 %1336 }
0x143c   :  { %v4248_v31 = vadd.f32 %v1337_v41, %v1329_v40 }
0x143e   :  { %3278 = vtanh.f32 %v4248_v31 }
0x1444   :  { %v3279_v42 = vpop.eup %3278 }
0x1445   :  { %1342 = vrot.lane.b32.xlu0 %v3279_v42, %s3543_s27 }
0x1452   :  { %v1300_v45 = vpop.permute.xlu0 %1299 }
0x1453   :  { %v4253_v46 = vadd.f32 %v1300_v45, %v1292_v44 }
0x1455   :  { %3280 = vtanh.f32 %v4253_v46 }
0x145b   :  { %v3281_v10 = vpop.eup %3280 }
0x145c   :  { %1305 = vrot.lane.b32.xlu2 %v3281_v10, %s3543_s27 }
0x14b6   :  { %v1306_v12 = vpop.permute.xlu2 %1305 }
0x14b7   :  { %v1343_v26 = vpop.permute.xlu0 %1342  ;;  %v1308_v13 = vmul.f32 %v1306_v12, %v1289_v20 }
0x14b8   :  { %v4257_v15 = vmul.f32 %v1343_v26, %v1326_v16 }
0x14b9   :  { %1347 = vrot.lane.b32.xlu1 %v1308_v13, %s3542_s29 }
0x14ba   :  { %1362 = vrot.lane.b32.xlu2 %v4257_v15, %s3543_s27 }
0x1514   :  { %v1363_v17 = vpop.permute.xlu2 %1362 }
0x152b   :  { %v1348_v25 = vpop.permute.xlu1 %1347 }
0x152c   :  { %3044 = vst.msk [vmem:[%s4943_s5 + $0x10] sm:$0x3] %vm67_vm0, %v1348_v25  ;;  %v1365_v38 = vsel %vm104_vm1, %v1348_v25, %v1363_v17 }
0x152d   :  { %3048 = vmatmul.msk.f32.vlgmr.msra.gmra.mxu2 %vm106_vm2, %v1365_v38  ;;  %3049 = vmatmul.msk.f32.vlgmr.msra.gmra.mxu3 %vm106_vm2, %v1365_v38 }
0x152e   :  { %1933 = vmatpush.msra.mxu2 %v4000_v48  ;;  %1953 = vmatpush.msra.mxu3 %v4006_v49 }
0x1530   :  { %1934 = vmatpush.msra.mxu2 %v4012_v39  ;;  %1954 = vmatpush.msra.mxu3 %v4018_v50 }
0x1532   :  { %1935 = vmatpush.msra.mxu2 %v4024_v52  ;;  %1955 = vmatpush.msra.mxu3 %v4030_v35 }
0x1534   :  { %1936 = vmatpush.msra.mxu2 %v4036_v53  ;;  %1956 = vmatpush.msra.mxu3 %v4042_v1 }
0x1536   :  { %1937 = vmatpush.msra.mxu2 %v4048_v2  ;;  %1957 = vmatpush.msra.mxu3 %v4054_v3 }
0x1538   :  { %1938 = vmatpush.msra.mxu2 %v4060_v4  ;;  %1958 = vmatpush.msra.mxu3 %v4066_v5 }
0x153a   :  { %1939 = vmatpush.msra.mxu2 %v4072_v6  ;;  %1959 = vmatpush.msra.mxu3 %v4078_v7 }
0x153c   :  { %1940 = vmatpush.msra.mxu2 %v4084_v8  ;;  %1960 = vmatpush.msra.mxu3 %v4090_v9 }
0x15b0   :  { %v1386_v37 = vpop.f32.mrf.mxu2  ;;  %v1406_v56 = vpop.f32.mrf.mxu3 }
0x15b1   :  { %v1409_v58 = vadd.f32 %v3046_v18, %v1386_v37  ;;  %v1410_v59 = vadd.f32 %v3047_v55, %v1406_v56 }
0x15b3   :  { %3282 = vtanh.f32 %v1409_v58  ;;  %v3050_v63 = vmul.f32 -1.442695, %v1409_v58  ;;  %v3051_v14 = vmul.f32 -1.442695, %v1410_v59 }
0x15b4   :  { %3284 = vtanh.f32 %v1410_v59 }
0x15b5   :  { %3286 = vpow2.f32 %v3050_v63 }
0x15b6   :  { %3288 = vpow2.f32 %v3051_v14 }
0x15b9   :  { %v3283_v60 = vpop.eup %3282 }
0x15ba   :  { %v3285_v62 = vpop.eup %3284  ;;  %1433 = vrot.lane.b32.xlu0 %v3283_v60, %s3543_s27 }
0x15bb   :  { %1470 = vrot.lane.b32.xlu1 %v3285_v62, %s3543_s27  ;;  %v3287_v0 = vpop.eup %3286 }
0x15bc   :  { %v3289_v16 = vpop.eup %3288  ;;  %v1414_v47 = vadd.f32 1.0, %v3287_v0 }
0x15bd   :  { %v1451_v19 = vadd.f32 1.0, %v3289_v16 }
0x15be   :  { %3290 = vrcp.f32 %v1414_v47  ;;  %v1426_v36 = vand.u32 2147483648, %v1414_v47  ;;  %vm1420_vm12 = vweird.f32 %v1414_v47  ;;  %v1424_v41 = vand.u32 2147483647, %v1414_v47 }
0x15bf   :  { %3292 = vrcp.f32 %v1451_v19  ;;  %v1463_v40 = vand.u32 2147483648, %v1451_v19  ;;  %vm1457_vm13 = vweird.f32 %v1451_v19  ;;  %v1461_v42 = vand.u32 2147483647, %v1451_v19 }
0x15c0   :  { %v1427_v10 = vor.u32 1.1754944e-38, %v1426_v36  ;;  %vm1425_vm3 = vcmp.eq.f32.partialorder %v1424_v41, 8.507059e+37 }
0x15c1   :  { %v1464_v12 = vor.u32 1.1754944e-38, %v1463_v40  ;;  %vm1462_vm4 = vcmp.eq.f32.partialorder %v1461_v42, 8.507059e+37 }
0x15c4   :  { %v3291_v21 = vpop.eup %3290 }
0x15c5   :  { %v3293_v22 = vpop.eup %3292  ;;  %v1416_v23 = vmul.f32 %v3291_v21, %v1414_v47  ;;  %vm1421_vm10 = vweird.f32 %v3291_v21 }
0x15c6   :  { %v1453_v27 = vmul.f32 %v3293_v22, %v1451_v19  ;;  %vm1458_vm11 = vweird.f32 %v3293_v22  ;;  %vm1422_vm14 = vmor %vm1420_vm12, %vm1421_vm10 }
0x15c7   :  { %v1417_v28 = vsub.f32 1.0, %v1416_v23  ;;  %vm1459_vm15 = vmor %vm1457_vm13, %vm1458_vm11 }
0x15c8   :  { %v1454_v32 = vsub.f32 1.0, %v1453_v27 }
0x15c9   :  { %v1418_v57 = vmul.f32 %v3291_v21, %v1417_v28 }
0x15ca   :  { %v1455_v33 = vmul.f32 %v3293_v22, %v1454_v32 }
0x15cb   :  { %v1419_v34 = vadd.f32 %v3291_v21, %v1418_v57 }
0x15cc   :  { %v1456_v20 = vadd.f32 %v3293_v22, %v1455_v33 }
0x15cd   :  { %v1423_v44 = vsel %vm1422_vm14, %v3291_v21, %v1419_v34 }
0x15ce   :  { %v1460_v45 = vsel %vm1459_vm15, %v3293_v22, %v1456_v20  ;;  %v1428_v13 = vsel %vm1425_vm3, %v1427_v10, %v1423_v44 }
0x15cf   :  { %v1465_v25 = vsel %vm1462_vm4, %v1464_v12, %v1460_v45  ;;  %v1431_v55 = vmul.f32 %v1428_v13, %v4253_v46 }
0x15d0   :  { %v1468_v59 = vmul.f32 %v1465_v25, %v4248_v31 }
0x162c   :  { %v1434_v26 = vpop.permute.xlu0 %1433 }
0x162d   :  { %v1471_v17 = vpop.permute.xlu1 %1470  ;;  %v1436_v38 = vmul.f32 %v1434_v26, %v1428_v13 }
0x162e   :  { %v1473_v18 = vmul.f32 %v1471_v17, %v1465_v25 }
0x162f   :  { %1438 = vrot.lane.b32.xlu2 %v1436_v38, %s3542_s29 }
0x1630   :  { %1475 = vrot.lane.b32.xlu0 %v1473_v18, %s3542_s29 }
0x1689   :  { %v1439_v37 = vpop.permute.xlu2 %1438 }
0x168a   :  { %v4296_v56 = vadd.f32 %v1439_v37, %v1431_v55 }
0x168c   :  { %3294 = vtanh.f32 %v4296_v56 }
0x1692   :  { %v3295_v58 = vpop.eup %3294 }
0x1693   :  { %1444 = vrot.lane.b32.xlu1 %v3295_v58, %s3543_s27 }
0x16a2   :  { %v1476_v60 = vpop.permute.xlu0 %1475 }
0x16a3   :  { %v4301_v62 = vadd.f32 %v1476_v60, %v1468_v59 }
0x16a5   :  { %3296 = vtanh.f32 %v4301_v62 }
0x16ab   :  { %v3297_v63 = vpop.eup %3296 }
0x16ac   :  { %1481 = vrot.lane.b32.xlu2 %v3297_v63, %s3543_s27 }
0x1705   :  { %v1445_v14 = vpop.permute.xlu1 %1444 }
0x1706   :  { %v1482_v46 = vpop.permute.xlu2 %1481  ;;  %v1447_v0 = vmul.f32 %v1445_v14, %v1428_v13 }
0x1707   :  { %v4305_v16 = vmul.f32 %v1482_v46, %v1465_v25 }
0x1708   :  { %1486 = vrot.lane.b32.xlu0 %v1447_v0, %s3542_s29 }
0x1709   :  { %1501 = vrot.lane.b32.xlu1 %v4305_v16, %s3543_s27 }
0x177a   :  { %v1487_v47 = vpop.permute.xlu0 %1486 }
0x177b   :  { %3052 = vst.msk [vmem:[%s4943_s5 + $0x12] sm:$0x3] %vm67_vm0, %v1487_v47  ;;  %v1502_v31 = vpop.permute.xlu1 %1501 }
0x177c   :  { %v1504_v19 = vsel %vm104_vm1, %v1487_v47, %v1502_v31 }
0x177d   :  { %3056 = vmatmul.msk.f32.vlgmr.msrb.gmra.mxu0 %vm106_vm2, %v1504_v19  ;;  %3057 = vmatmul.msk.f32.vlgmr.msrb.gmra.mxu1 %vm106_vm2, %v1504_v19  ;;  %v4368_v19 = vld [vmem:[%s4942_s4 + $0x70] sm:$0xff] }
0x177e   :  { %2072 = vmatpush.msrb.mxu0 %v4000_v48  ;;  %2092 = vmatpush.msrb.mxu1 %v4006_v49  ;;  %v3054_v48 = vld [vmem:[%s4938_s0 + $0x14] sm:$0x3]  ;;  %v3055_v49 = vld [vmem:[%s4939_s1 + $0x12] sm:$0x3] }
0x1780   :  { %2073 = vmatpush.msrb.mxu0 %v4012_v39  ;;  %2093 = vmatpush.msrb.mxu1 %v4018_v50 }
0x1782   :  { %2074 = vmatpush.msrb.mxu0 %v4024_v52  ;;  %2094 = vmatpush.msrb.mxu1 %v4030_v35 }
0x1784   :  { %2075 = vmatpush.msrb.mxu0 %v4036_v53  ;;  %2095 = vmatpush.msrb.mxu1 %v4042_v1 }
0x1786   :  { %2076 = vmatpush.msrb.mxu0 %v4048_v2  ;;  %2096 = vmatpush.msrb.mxu1 %v4054_v3 }
0x1788   :  { %2077 = vmatpush.msrb.mxu0 %v4060_v4  ;;  %2097 = vmatpush.msrb.mxu1 %v4066_v5 }
0x178a   :  { %2078 = vmatpush.msrb.mxu0 %v4072_v6  ;;  %2098 = vmatpush.msrb.mxu1 %v4078_v7 }
0x178c   :  { %2079 = vmatpush.msrb.mxu0 %v4084_v8  ;;  %2099 = vmatpush.msrb.mxu1 %v4090_v9 }
0x17fa   :  { %v1525_v39 = vpop.f32.mrf.mxu0  ;;  %v1545_v50 = vpop.f32.mrf.mxu1 }
0x17fb   :  { %v1548_v52 = vadd.f32 %v3054_v48, %v1525_v39  ;;  %v1549_v35 = vadd.f32 %v3055_v49, %v1545_v50  ;;  %v4374_v48 = vld [vmem:[%s4942_s4 + $0x78] sm:$0xff]  ;;  %v4380_v49 = vld [vmem:[%s4942_s4 + $0x60] sm:$0xff]  ;;  %v4386_v39 = vld [vmem:[%s4942_s4 + $0x68] sm:$0xff] }
0x17fc   :  { %v4392_v50 = vld [vmem:[%s4942_s4 + $0x50] sm:$0xff] }
0x17fd   :  { %3298 = vtanh.f32 %v1548_v52  ;;  %v3058_v2 = vmul.f32 -1.442695, %v1548_v52  ;;  %v3059_v6 = vmul.f32 -1.442695, %v1549_v35  ;;  %v4398_v52 = vld [vmem:[%s4942_s4 + $0x58] sm:$0xff] }
0x17fe   :  { %3300 = vtanh.f32 %v1549_v35  ;;  %v4404_v35 = vld [vmem:[%s4942_s4 + $0x40] sm:$0xff] }
0x17ff   :  { %3302 = vpow2.f32 %v3058_v2  ;;  %v4422_v2 = vld [vmem:[%s4942_s4 + $0x38] sm:$0xff] }
0x1803   :  { %v3299_v53 = vpop.eup %3298 }
0x1804   :  { %v3301_v1 = vpop.eup %3300  ;;  %1572 = vrot.lane.b32.xlu2 %v3299_v53, %s3543_s27  ;;  %v4410_v53 = vld [vmem:[%s4942_s4 + $0x48] sm:$0xff] }
0x1805   :  { %1609 = vrot.lane.b32.xlu0 %v3301_v1, %s3543_s27  ;;  %v3303_v3 = vpop.eup %3302  ;;  %v4416_v1 = vld [vmem:[%s4942_s4 + $0x30] sm:$0xff] }
0x1806   :  { %v1553_v4 = vadd.f32 1.0, %v3303_v3  ;;  %v4428_v3 = vld [vmem:[%s4942_s4 + $0x20] sm:$0xff] }
0x1808   :  { %3304 = vrcp.f32 %v1553_v4  ;;  %v1565_v27 = vand.u32 2147483648, %v1553_v4  ;;  %vm1559_vm6 = vweird.f32 %v1553_v4  ;;  %v1563_v28 = vand.u32 2147483647, %v1553_v4 }
0x1809   :  { %3306 = vpow2.f32 %v3059_v6  ;;  %v4446_v6 = vld [vmem:[%s4942_s4 + $0x18] sm:$0xff] }
0x180a   :  { %v1566_v57 = vor.u32 1.1754944e-38, %v1565_v27  ;;  %vm1564_vm8 = vcmp.eq.f32.partialorder %v1563_v28, 8.507059e+37 }
0x180e   :  { %v3305_v5 = vpop.eup %3304 }
0x180f   :  { %v1555_v7 = vmul.f32 %v3305_v5, %v1553_v4  ;;  %v3307_v21 = vpop.eup %3306  ;;  %vm1560_vm5 = vweird.f32 %v3305_v5  ;;  %v4434_v4 = vld [vmem:[%s4942_s4 + $0x28] sm:$0xff] }
0x1810   :  { %v1590_v22 = vadd.f32 1.0, %v3307_v21  ;;  %vm1561_vm7 = vmor %vm1559_vm6, %vm1560_vm5  ;;  %v3063_v21 = vld [vmem:[%s4939_s1 + $0x10] sm:$0x3] }
0x1811   :  { %v1556_v8 = vsub.f32 1.0, %v1555_v7  ;;  %v4452_v7 = vld [vmem:[%s4942_s4] sm:$0xff] }
0x1812   :  { %3308 = vrcp.f32 %v1590_v22  ;;  %v1602_v45 = vand.u32 2147483648, %v1590_v22  ;;  %vm1596_vm10 = vweird.f32 %v1590_v22  ;;  %v1600_v10 = vand.u32 2147483647, %v1590_v22 }
0x1813   :  { %v1557_v9 = vmul.f32 %v3305_v5, %v1556_v8  ;;  %v4458_v8 = vld [vmem:[%s4942_s4 + $0x8] sm:$0xff] }
0x1814   :  { %v1603_v26 = vor.u32 1.1754944e-38, %v1602_v45  ;;  %vm1601_vm12 = vcmp.eq.f32.partialorder %v1600_v10, 8.507059e+37 }
0x1815   :  { %v1558_v23 = vadd.f32 %v3305_v5, %v1557_v9  ;;  %v3062_v9 = vld [vmem:[%s4938_s0 + $0x16] sm:$0x3] }
0x1817   :  { %v1562_v32 = vsel %vm1561_vm7, %v3305_v5, %v1558_v23  ;;  %v4440_v5 = vld [vmem:[%s4942_s4 + $0x10] sm:$0xff] }
0x1818   :  { %v1567_v34 = vsel %vm1564_vm8, %v1566_v57, %v1562_v32  ;;  %v3309_v36 = vpop.eup %3308 }
0x1819   :  { %v1592_v40 = vmul.f32 %v3309_v36, %v1590_v22  ;;  %vm1597_vm9 = vweird.f32 %v3309_v36  ;;  %v1570_v38 = vmul.f32 %v1567_v34, %v4296_v56 }
0x181a   :  { %vm1598_vm11 = vmor %vm1596_vm10, %vm1597_vm9 }
0x181b   :  { %v1593_v41 = vsub.f32 1.0, %v1592_v40 }
0x181d   :  { %v1594_v42 = vmul.f32 %v3309_v36, %v1593_v41 }
0x181f   :  { %v1595_v44 = vadd.f32 %v3309_v36, %v1594_v42 }
0x1821   :  { %v1599_v12 = vsel %vm1598_vm11, %v3309_v36, %v1595_v44 }
0x1822   :  { %v1604_v17 = vsel %vm1601_vm12, %v1603_v26, %v1599_v12 }
0x1823   :  { %v1607_v18 = vmul.f32 %v1604_v17, %v4301_v62 }
0x185e   :  { %v1573_v33 = vpop.permute.xlu2 %1572 }
0x185f   :  { %v1575_v20 = vmul.f32 %v1573_v33, %v1567_v34 }
0x1861   :  { %1577 = vrot.lane.b32.xlu1 %v1575_v20, %s3542_s29 }
0x1877   :  { %v1610_v13 = vpop.permute.xlu0 %1609 }
0x1878   :  { %v1612_v25 = vmul.f32 %v1610_v13, %v1604_v17 }
0x187a   :  { %1614 = vrot.lane.b32.xlu2 %v1612_v25, %s3542_s29 }
0x18d3   :  { %v1578_v55 = vpop.permute.xlu1 %1577 }
0x18d4   :  { %v1615_v37 = vpop.permute.xlu2 %1614  ;;  %v4345_v58 = vadd.f32 %v1578_v55, %v1570_v38 }
0x18d5   :  { %v4347_v59 = vadd.f32 %v1615_v37, %v1607_v18 }
0x18d6   :  { %3310 = vtanh.f32 %v4345_v58 }
0x18d7   :  { %3312 = vtanh.f32 %v4347_v59 }
0x18dc   :  { %v3311_v60 = vpop.eup %3310 }
0x18dd   :  { %v3313_v63 = vpop.eup %3312  ;;  %1583 = vrot.lane.b32.xlu0 %v3311_v60, %s3543_s27 }
0x18de   :  { %1620 = vrot.lane.b32.xlu1 %v3313_v63, %s3543_s27 }
0x194f   :  { %v1584_v14 = vpop.permute.xlu0 %1583 }
0x1950   :  { %v1621_v56 = vpop.permute.xlu1 %1620  ;;  %v1586_v46 = vmul.f32 %v1584_v14, %v1567_v34 }
0x1951   :  { %v4353_v62 = vmul.f32 %v1621_v56, %v1604_v17 }
0x1952   :  { %1625 = vrot.lane.b32.xlu2 %v1586_v46, %s3542_s29 }
0x1953   :  { %1640 = vrot.lane.b32.xlu0 %v4353_v62, %s3543_s27 }
0x19ac   :  { %v1626_v0 = vpop.permute.xlu2 %1625 }
0x19ad   :  { %3060 = vst.msk [vmem:[%s4943_s5 + $0x14] sm:$0x3] %vm67_vm0, %v1626_v0 }
0x19c5   :  { %v1641_v47 = vpop.permute.xlu0 %1640 }
0x19c6   :  { %v1643_v31 = vsel %vm104_vm1, %v1626_v0, %v1641_v47 }
0x19c7   :  { %3064 = vmatmul.msk.f32.vlgmr.msrb.gmra.mxu2 %vm106_vm2, %v1643_v31  ;;  %3065 = vmatmul.msk.f32.vlgmr.msrb.gmra.mxu3 %vm106_vm2, %v1643_v31 }
0x19c8   :  { %2211 = vmatpush.msrb.mxu2 %v4368_v19  ;;  %2231 = vmatpush.msrb.mxu3 %v4374_v48 }
0x19ca   :  { %2212 = vmatpush.msrb.mxu2 %v4380_v49  ;;  %2232 = vmatpush.msrb.mxu3 %v4386_v39 }
0x19cc   :  { %2213 = vmatpush.msrb.mxu2 %v4392_v50  ;;  %2233 = vmatpush.msrb.mxu3 %v4398_v52 }
0x19ce   :  { %2214 = vmatpush.msrb.mxu2 %v4404_v35  ;;  %2234 = vmatpush.msrb.mxu3 %v4410_v53 }
0x19d0   :  { %2215 = vmatpush.msrb.mxu2 %v4416_v1  ;;  %2235 = vmatpush.msrb.mxu3 %v4422_v2 }
0x19d2   :  { %2216 = vmatpush.msrb.mxu2 %v4428_v3  ;;  %2236 = vmatpush.msrb.mxu3 %v4434_v4 }
0x19d4   :  { %2217 = vmatpush.msrb.mxu2 %v4440_v5  ;;  %2237 = vmatpush.msrb.mxu3 %v4446_v6 }
0x19d6   :  { %2218 = vmatpush.msrb.mxu2 %v4452_v7  ;;  %2238 = vmatpush.msrb.mxu3 %v4458_v8 }
0x1a4a   :  { %v1664_v22 = vpop.f32.mrf.mxu2  ;;  %v1684_v23 = vpop.f32.mrf.mxu3 }
0x1a4b   :  { %v1687_v27 = vadd.f32 %v3062_v9, %v1664_v22  ;;  %v1688_v28 = vadd.f32 %v3063_v21, %v1684_v23 }
0x1a4d   :  { %3314 = vtanh.f32 %v1687_v27  ;;  %v3067_v33 = vmul.f32 -1.442695, %v1688_v28  ;;  %v3066_v40 = vmul.f32 -1.442695, %v1687_v27 }
0x1a4e   :  { %3316 = vtanh.f32 %v1688_v28 }
0x1a4f   :  { %3318 = vpow2.f32 %v3067_v33 }
0x1a53   :  { %v3315_v32 = vpop.eup %3314 }
0x1a54   :  { %v3317_v57 = vpop.eup %3316  ;;  %1711 = vrot.lane.b32.xlu1 %v3315_v32, %s3543_s27 }
0x1a55   :  { %1748 = vrot.lane.b32.xlu2 %v3317_v57, %s3543_s27  ;;  %v3319_v34 = vpop.eup %3318 }
0x1a56   :  { %v1729_v20 = vadd.f32 1.0, %v3319_v34 }
0x1a58   :  { %3320 = vrcp.f32 %v1729_v20  ;;  %v1741_v26 = vand.u32 2147483648, %v1729_v20  ;;  %vm1735_vm14 = vweird.f32 %v1729_v20  ;;  %v1739_v13 = vand.u32 2147483647, %v1729_v20 }
0x1a59   :  { %3322 = vpow2.f32 %v3066_v40 }
0x1a5a   :  { %v1742_v25 = vor.u32 1.1754944e-38, %v1741_v26  ;;  %vm1740_vm3 = vcmp.eq.f32.partialorder %v1739_v13, 8.507059e+37 }
0x1a5e   :  { %v3321_v36 = vpop.eup %3320 }
0x1a5f   :  { %v1731_v41 = vmul.f32 %v3321_v36, %v1729_v20  ;;  %v3323_v44 = vpop.eup %3322  ;;  %vm1736_vm13 = vweird.f32 %v3321_v36 }
0x1a60   :  { %v1692_v10 = vadd.f32 1.0, %v3323_v44  ;;  %vm1737_vm15 = vmor %vm1735_vm14, %vm1736_vm13 }
0x1a61   :  { %v1732_v42 = vsub.f32 1.0, %v1731_v41 }
0x1a62   :  { %3324 = vrcp.f32 %v1692_v10  ;;  %v1704_v46 = vand.u32 2147483648, %v1692_v10  ;;  %vm1698_vm5 = vweird.f32 %v1692_v10  ;;  %v1702_v0 = vand.u32 2147483647, %v1692_v10 }
0x1a63   :  { %v1733_v45 = vmul.f32 %v3321_v36, %v1732_v42 }
0x1a64   :  { %v1705_v31 = vor.u32 1.1754944e-38, %v1704_v46  ;;  %vm1703_vm7 = vcmp.eq.f32.partialorder %v1702_v0, 8.507059e+37 }
0x1a65   :  { %v1734_v12 = vadd.f32 %v3321_v36, %v1733_v45  ;;  %v3070_v45 = vld [vmem:[%s4938_s0 + $0x18] sm:$0x3] }
0x1a67   :  { %v1738_v17 = vsel %vm1737_vm15, %v3321_v36, %v1734_v12 }
0x1a68   :  { %v1743_v18 = vsel %vm1740_vm3, %v1742_v25, %v1738_v17  ;;  %v3325_v55 = vpop.eup %3324 }
0x1a69   :  { %v1694_v60 = vmul.f32 %v3325_v55, %v1692_v10  ;;  %vm1699_vm4 = vweird.f32 %v3325_v55  ;;  %v1746_v23 = vmul.f32 %v1743_v18, %v4347_v59  ;;  %v3071_v10 = vld [vmem:[%s4939_s1 + $0xe] sm:$0x3] }
0x1a6a   :  { %vm1700_vm6 = vmor %vm1698_vm5, %vm1699_vm4 }
0x1a6b   :  { %v1695_v63 = vsub.f32 1.0, %v1694_v60 }
0x1a6d   :  { %v1696_v14 = vmul.f32 %v3325_v55, %v1695_v63 }
0x1a6f   :  { %v1697_v56 = vadd.f32 %v3325_v55, %v1696_v14 }
0x1a71   :  { %v1701_v47 = vsel %vm1700_vm6, %v3325_v55, %v1697_v56 }
0x1a72   :  { %v1706_v21 = vsel %vm1703_vm7, %v1705_v31, %v1701_v47 }
0x1a73   :  { %v1709_v57 = vmul.f32 %v1706_v21, %v4345_v58 }
0x1aaf   :  { %v1749_v38 = vpop.permute.xlu2 %1748 }
0x1ab0   :  { %v1751_v37 = vmul.f32 %v1749_v38, %v1743_v18 }
0x1ab2   :  { %1753 = vrot.lane.b32.xlu1 %v1751_v37, %s3542_s29 }
0x1ac6   :  { %v1712_v9 = vpop.permute.xlu1 %1711 }
0x1ac7   :  { %v1714_v22 = vmul.f32 %v1712_v9, %v1706_v21 }
0x1ac9   :  { %1716 = vrot.lane.b32.xlu0 %v1714_v22, %s3542_s29 }
0x1b24   :  { %v1754_v27 = vpop.permute.xlu1 %1753 }
0x1b25   :  { %v4472_v28 = vadd.f32 %v1754_v27, %v1746_v23 }
0x1b27   :  { %3326 = vtanh.f32 %v4472_v28 }
0x1b2d   :  { %v3327_v32 = vpop.eup %3326 }
0x1b2e   :  { %1759 = vrot.lane.b32.xlu0 %v3327_v32, %s3543_s27 }
0x1b3b   :  { %v1717_v33 = vpop.permute.xlu0 %1716 }
0x1b3c   :  { %v4477_v34 = vadd.f32 %v1717_v33, %v1709_v57 }
0x1b3e   :  { %3328 = vtanh.f32 %v4477_v34 }
0x1b44   :  { %v3329_v20 = vpop.eup %3328 }
0x1b45   :  { %1722 = vrot.lane.b32.xlu2 %v3329_v20, %s3543_s27 }
0x1b9f   :  { %v1723_v36 = vpop.permute.xlu2 %1722 }
0x1ba0   :  { %v1760_v59 = vpop.permute.xlu0 %1759  ;;  %v1725_v40 = vmul.f32 %v1723_v36, %v1706_v21 }
0x1ba1   :  { %v4481_v41 = vmul.f32 %v1760_v59, %v1743_v18 }
0x1ba2   :  { %1764 = vrot.lane.b32.xlu1 %v1725_v40, %s3542_s29 }
0x1ba3   :  { %1779 = vrot.lane.b32.xlu2 %v4481_v41, %s3543_s27 }
0x1bfd   :  { %v1780_v42 = vpop.permute.xlu2 %1779 }
0x1c14   :  { %v1765_v58 = vpop.permute.xlu1 %1764 }
0x1c15   :  { %3068 = vst.msk [vmem:[%s4943_s5 + $0x16] sm:$0x3] %vm67_vm0, %v1765_v58  ;;  %v1782_v44 = vsel %vm104_vm1, %v1765_v58, %v1780_v42 }
0x1c16   :  { %3072 = vmatmul.msk.f32.vlgmr.msra.gmra.mxu0 %vm106_vm2, %v1782_v44  ;;  %3073 = vmatmul.msk.f32.vlgmr.msra.gmra.mxu1 %vm106_vm2, %v1782_v44 }
0x1c17   :  { %2350 = vmatpush.msra.mxu0 %v4368_v19  ;;  %2370 = vmatpush.msra.mxu1 %v4374_v48 }
0x1c19   :  { %2351 = vmatpush.msra.mxu0 %v4380_v49  ;;  %2371 = vmatpush.msra.mxu1 %v4386_v39 }
0x1c1b   :  { %2352 = vmatpush.msra.mxu0 %v4392_v50  ;;  %2372 = vmatpush.msra.mxu1 %v4398_v52 }
0x1c1d   :  { %2353 = vmatpush.msra.mxu0 %v4404_v35  ;;  %2373 = vmatpush.msra.mxu1 %v4410_v53 }
0x1c1f   :  { %2354 = vmatpush.msra.mxu0 %v4416_v1  ;;  %2374 = vmatpush.msra.mxu1 %v4422_v2 }
0x1c21   :  { %2355 = vmatpush.msra.mxu0 %v4428_v3  ;;  %2375 = vmatpush.msra.mxu1 %v4434_v4 }
0x1c23   :  { %2356 = vmatpush.msra.mxu0 %v4440_v5  ;;  %2376 = vmatpush.msra.mxu1 %v4446_v6 }
0x1c25   :  { %2357 = vmatpush.msra.mxu0 %v4452_v7  ;;  %2377 = vmatpush.msra.mxu1 %v4458_v8 }
0x1c93   :  { %v1803_v12 = vpop.f32.mrf.mxu0  ;;  %v1823_v26 = vpop.f32.mrf.mxu1 }
0x1c94   :  { %v1826_v13 = vadd.f32 %v3070_v45, %v1803_v12  ;;  %v1827_v17 = vadd.f32 %v3071_v10, %v1823_v26 }
0x1c96   :  { %3330 = vtanh.f32 %v1826_v13  ;;  %v3074_v18 = vmul.f32 -1.442695, %v1826_v13  ;;  %v3075_v55 = vmul.f32 -1.442695, %v1827_v17 }
0x1c97   :  { %3332 = vtanh.f32 %v1827_v17 }
0x1c98   :  { %3334 = vpow2.f32 %v3074_v18 }
0x1c99   :  { %3336 = vpow2.f32 %v3075_v55 }
0x1c9c   :  { %v3331_v25 = vpop.eup %3330 }
0x1c9d   :  { %v3333_v38 = vpop.eup %3332  ;;  %1850 = vrot.lane.b32.xlu0 %v3331_v25, %s3543_s27 }
0x1c9e   :  { %1887 = vrot.lane.b32.xlu1 %v3333_v38, %s3543_s27  ;;  %v3335_v37 = vpop.eup %3334 }
0x1c9f   :  { %v3337_v60 = vpop.eup %3336  ;;  %v1831_v63 = vadd.f32 1.0, %v3335_v37 }
0x1ca0   :  { %v1868_v14 = vadd.f32 1.0, %v3337_v60 }
0x1ca1   :  { %3338 = vrcp.f32 %v1831_v63  ;;  %v1843_v32 = vand.u32 2147483648, %v1831_v63  ;;  %vm1837_vm10 = vweird.f32 %v1831_v63  ;;  %v1841_v33 = vand.u32 2147483647, %v1831_v63 }
0x1ca2   :  { %3340 = vrcp.f32 %v1868_v14  ;;  %v1880_v57 = vand.u32 2147483648, %v1868_v14  ;;  %vm1874_vm11 = vweird.f32 %v1868_v14  ;;  %v1878_v20 = vand.u32 2147483647, %v1868_v14 }
0x1ca3   :  { %v1844_v40 = vor.u32 1.1754944e-38, %v1843_v32  ;;  %vm1842_vm14 = vcmp.eq.f32.partialorder %v1841_v33, 8.507059e+37 }
0x1ca4   :  { %v1881_v42 = vor.u32 1.1754944e-38, %v1880_v57  ;;  %vm1879_vm15 = vcmp.eq.f32.partialorder %v1878_v20, 8.507059e+37 }
0x1ca7   :  { %v3339_v56 = vpop.eup %3338 }
0x1ca8   :  { %v3341_v46 = vpop.eup %3340  ;;  %v1833_v0 = vmul.f32 %v3339_v56, %v1831_v63  ;;  %vm1838_vm8 = vweird.f32 %v3339_v56 }
0x1ca9   :  { %v1870_v47 = vmul.f32 %v3341_v46, %v1868_v14  ;;  %vm1875_vm9 = vweird.f32 %v3341_v46  ;;  %vm1839_vm12 = vmor %vm1837_vm10, %vm1838_vm8 }
0x1caa   :  { %v1834_v31 = vsub.f32 1.0, %v1833_v0  ;;  %vm1876_vm13 = vmor %vm1874_vm11, %vm1875_vm9 }
0x1cab   :  { %v1871_v9 = vsub.f32 1.0, %v1870_v47  ;;  %v3078_v47 = vld [vmem:[%s4938_s0 + $0x1a] sm:$0x3] }
0x1cac   :  { %v1835_v21 = vmul.f32 %v3339_v56, %v1834_v31  ;;  %v3079_v31 = vld [vmem:[%s4939_s1 + $0xc] sm:$0x3] }
0x1cad   :  { %v1872_v22 = vmul.f32 %v3341_v46, %v1871_v9 }
0x1cae   :  { %v1836_v23 = vadd.f32 %v3339_v56, %v1835_v21 }
0x1caf   :  { %v1873_v27 = vadd.f32 %v3341_v46, %v1872_v22 }
0x1cb0   :  { %v1840_v36 = vsel %vm1839_vm12, %v3339_v56, %v1836_v23 }
0x1cb1   :  { %v1877_v59 = vsel %vm1876_vm13, %v3341_v46, %v1873_v27  ;;  %v1845_v44 = vsel %vm1842_vm14, %v1844_v40, %v1840_v36 }
0x1cb2   :  { %v1882_v10 = vsel %vm1879_vm15, %v1881_v42, %v1877_v59  ;;  %v1848_v13 = vmul.f32 %v1845_v44, %v4477_v34 }
0x1cb3   :  { %v1885_v18 = vmul.f32 %v1882_v10, %v4472_v28 }
0x1d0f   :  { %v1851_v58 = vpop.permute.xlu0 %1850 }
0x1d10   :  { %v1888_v45 = vpop.permute.xlu1 %1887  ;;  %v1853_v12 = vmul.f32 %v1851_v58, %v1845_v44 }
0x1d11   :  { %v1890_v26 = vmul.f32 %v1888_v45, %v1882_v10 }
0x1d12   :  { %1855 = vrot.lane.b32.xlu2 %v1853_v12, %s3542_s29 }
0x1d13   :  { %1892 = vrot.lane.b32.xlu0 %v1890_v26, %s3542_s29 }
0x1d6c   :  { %v1856_v17 = vpop.permute.xlu2 %1855 }
0x1d6d   :  { %v4520_v25 = vadd.f32 %v1856_v17, %v1848_v13 }
0x1d6f   :  { %3342 = vtanh.f32 %v4520_v25 }
0x1d75   :  { %v3343_v38 = vpop.eup %3342 }
0x1d76   :  { %1861 = vrot.lane.b32.xlu1 %v3343_v38, %s3543_s27 }
0x1d85   :  { %v1893_v55 = vpop.permute.xlu0 %1892 }
0x1d86   :  { %v4525_v37 = vadd.f32 %v1893_v55, %v1885_v18 }
0x1d88   :  { %3344 = vtanh.f32 %v4525_v37 }
0x1d8e   :  { %v3345_v60 = vpop.eup %3344 }
0x1d8f   :  { %1898 = vrot.lane.b32.xlu2 %v3345_v60, %s3543_s27 }
0x1de8   :  { %v1862_v63 = vpop.permute.xlu1 %1861 }
0x1de9   :  { %v1899_v34 = vpop.permute.xlu2 %1898  ;;  %v1864_v14 = vmul.f32 %v1862_v63, %v1845_v44 }
0x1dea   :  { %v4529_v56 = vmul.f32 %v1899_v34, %v1882_v10 }
0x1deb   :  { %1903 = vrot.lane.b32.xlu0 %v1864_v14, %s3542_s29 }
0x1dec   :  { %1918 = vrot.lane.b32.xlu1 %v4529_v56, %s3543_s27 }
0x1e5d   :  { %v1904_v46 = vpop.permute.xlu0 %1903 }
0x1e5e   :  { %3076 = vst.msk [vmem:[%s4943_s5 + $0x18] sm:$0x3] %vm67_vm0, %v1904_v46  ;;  %v1919_v28 = vpop.permute.xlu1 %1918 }
0x1e5f   :  { %v1921_v0 = vsel %vm104_vm1, %v1904_v46, %v1919_v28 }
0x1e60   :  { %3080 = vmatmul.msk.f32.vlgmr.msra.gmra.mxu2 %vm106_vm2, %v1921_v0  ;;  %3081 = vmatmul.msk.f32.vlgmr.msra.gmra.mxu3 %vm106_vm2, %v1921_v0 }
0x1e61   :  { %2489 = vmatpush.msra.mxu2 %v4368_v19  ;;  %2509 = vmatpush.msra.mxu3 %v4374_v48 }
0x1e63   :  { %2490 = vmatpush.msra.mxu2 %v4380_v49  ;;  %2510 = vmatpush.msra.mxu3 %v4386_v39 }
0x1e65   :  { %2491 = vmatpush.msra.mxu2 %v4392_v50  ;;  %2511 = vmatpush.msra.mxu3 %v4398_v52 }
0x1e67   :  { %2492 = vmatpush.msra.mxu2 %v4404_v35  ;;  %2512 = vmatpush.msra.mxu3 %v4410_v53 }
0x1e69   :  { %2493 = vmatpush.msra.mxu2 %v4416_v1  ;;  %2513 = vmatpush.msra.mxu3 %v4422_v2 }
0x1e6b   :  { %2494 = vmatpush.msra.mxu2 %v4428_v3  ;;  %2514 = vmatpush.msra.mxu3 %v4434_v4 }
0x1e6d   :  { %2495 = vmatpush.msra.mxu2 %v4440_v5  ;;  %2515 = vmatpush.msra.mxu3 %v4446_v6 }
0x1e6f   :  { %2496 = vmatpush.msra.mxu2 %v4452_v7  ;;  %2516 = vmatpush.msra.mxu3 %v4458_v8 }
0x1ee3   :  { %v1942_v9 = vpop.f32.mrf.mxu2  ;;  %v1962_v21 = vpop.f32.mrf.mxu3 }
0x1ee4   :  { %v1965_v22 = vadd.f32 %v3078_v47, %v1942_v9  ;;  %v1966_v23 = vadd.f32 %v3079_v31, %v1962_v21 }
0x1ee6   :  { %3346 = vtanh.f32 %v1965_v22  ;;  %v3082_v57 = vmul.f32 -1.442695, %v1965_v22  ;;  %v3083_v59 = vmul.f32 -1.442695, %v1966_v23 }
0x1ee7   :  { %3348 = vtanh.f32 %v1966_v23 }
0x1ee8   :  { %3350 = vpow2.f32 %v3082_v57 }
0x1eec   :  { %v3347_v27 = vpop.eup %3346 }
0x1eed   :  { %v3349_v32 = vpop.eup %3348  ;;  %1989 = vrot.lane.b32.xlu2 %v3347_v27, %s3543_s27 }
0x1eee   :  { %2026 = vrot.lane.b32.xlu0 %v3349_v32, %s3543_s27  ;;  %v3351_v33 = vpop.eup %3350 }
0x1eef   :  { %v1970_v20 = vadd.f32 1.0, %v3351_v33 }
0x1ef1   :  { %3352 = vrcp.f32 %v1970_v20  ;;  %v1982_v12 = vand.u32 2147483648, %v1970_v20  ;;  %vm1976_vm4 = vweird.f32 %v1970_v20  ;;  %v1980_v26 = vand.u32 2147483647, %v1970_v20 }
0x1ef2   :  { %3354 = vpow2.f32 %v3083_v59 }
0x1ef3   :  { %v1983_v17 = vor.u32 1.1754944e-38, %v1982_v12  ;;  %vm1981_vm6 = vcmp.eq.f32.partialorder %v1980_v26, 8.507059e+37  ;;  %v3087_v12 = vld [vmem:[%s4939_s1 + $0xa] sm:$0x3] }
0x1ef7   :  { %v3353_v36 = vpop.eup %3352 }
0x1ef8   :  { %v1972_v40 = vmul.f32 %v3353_v36, %v1970_v20  ;;  %v3355_v44 = vpop.eup %3354  ;;  %vm1977_vm3 = vweird.f32 %v3353_v36 }
0x1ef9   :  { %v2007_v45 = vadd.f32 1.0, %v3355_v44  ;;  %vm1978_vm5 = vmor %vm1976_vm4, %vm1977_vm3 }
0x1efa   :  { %v1973_v42 = vsub.f32 1.0, %v1972_v40 }
0x1efb   :  { %3356 = vrcp.f32 %v2007_v45  ;;  %v2019_v28 = vand.u32 2147483648, %v2007_v45  ;;  %vm2013_vm8 = vweird.f32 %v2007_v45  ;;  %v2017_v0 = vand.u32 2147483647, %v2007_v45 }
0x1efc   :  { %v1974_v58 = vmul.f32 %v3353_v36, %v1973_v42 }
0x1efd   :  { %v2020_v31 = vor.u32 1.1754944e-38, %v2019_v28  ;;  %vm2018_vm10 = vcmp.eq.f32.partialorder %v2017_v0, 8.507059e+37 }
0x1efe   :  { %v1975_v10 = vadd.f32 %v3353_v36, %v1974_v58 }
0x1f00   :  { %v1979_v13 = vsel %vm1978_vm5, %v3353_v36, %v1975_v10  ;;  %v3086_v10 = vld [vmem:[%s4938_s0 + $0x1c] sm:$0x3] }
0x1f01   :  { %v1984_v18 = vsel %vm1981_vm6, %v1983_v17, %v1979_v13  ;;  %v3357_v60 = vpop.eup %3356 }
0x1f02   :  { %v2009_v63 = vmul.f32 %v3357_v60, %v2007_v45  ;;  %vm2014_vm7 = vweird.f32 %v3357_v60  ;;  %v1987_v23 = vmul.f32 %v1984_v18, %v4520_v25 }
0x1f03   :  { %vm2015_vm9 = vmor %vm2013_vm8, %vm2014_vm7 }
0x1f04   :  { %v2010_v34 = vsub.f32 1.0, %v2009_v63 }
0x1f06   :  { %v2011_v14 = vmul.f32 %v3357_v60, %v2010_v34 }
0x1f08   :  { %v2012_v46 = vadd.f32 %v3357_v60, %v2011_v14 }
0x1f0a   :  { %v2016_v47 = vsel %vm2015_vm9, %v3357_v60, %v2012_v46 }
0x1f0b   :  { %v2021_v21 = vsel %vm2018_vm10, %v2020_v31, %v2016_v47 }
0x1f0c   :  { %v2024_v27 = vmul.f32 %v2021_v21, %v4525_v37 }
0x1f47   :  { %v1990_v38 = vpop.permute.xlu2 %1989 }
0x1f48   :  { %v1992_v55 = vmul.f32 %v1990_v38, %v1984_v18 }
0x1f4a   :  { %1994 = vrot.lane.b32.xlu1 %v1992_v55, %s3542_s29 }
0x1f60   :  { %v2027_v9 = vpop.permute.xlu0 %2026 }
0x1f61   :  { %v2029_v22 = vmul.f32 %v2027_v9, %v2021_v21 }
0x1f63   :  { %2031 = vrot.lane.b32.xlu2 %v2029_v22, %s3542_s29 }
0x1fbc   :  { %v1995_v32 = vpop.permute.xlu1 %1994 }
0x1fbd   :  { %v2032_v57 = vpop.permute.xlu2 %2031  ;;  %v4569_v33 = vadd.f32 %v1995_v32, %v1987_v23 }
0x1fbe   :  { %v4571_v20 = vadd.f32 %v2032_v57, %v2024_v27 }
0x1fbf   :  { %3358 = vtanh.f32 %v4569_v33 }
0x1fc0   :  { %3360 = vtanh.f32 %v4571_v20 }
0x1fc5   :  { %v3359_v36 = vpop.eup %3358 }
0x1fc6   :  { %v3361_v59 = vpop.eup %3360  ;;  %2000 = vrot.lane.b32.xlu0 %v3359_v36, %s3543_s27 }
0x1fc7   :  { %2037 = vrot.lane.b32.xlu1 %v3361_v59, %s3543_s27 }
0x2038   :  { %v2001_v40 = vpop.permute.xlu0 %2000 }
0x2039   :  { %v2038_v25 = vpop.permute.xlu1 %2037  ;;  %v2003_v42 = vmul.f32 %v2001_v40, %v1984_v18 }
0x203a   :  { %v4577_v37 = vmul.f32 %v2038_v25, %v2021_v21 }
0x203b   :  { %2042 = vrot.lane.b32.xlu2 %v2003_v42, %s3542_s29 }
0x203c   :  { %2057 = vrot.lane.b32.xlu0 %v4577_v37, %s3543_s27 }
0x2095   :  { %v2043_v58 = vpop.permute.xlu2 %2042 }
0x2096   :  { %3084 = vst.msk [vmem:[%s4943_s5 + $0x1a] sm:$0x3] %vm67_vm0, %v2043_v58 }
0x20ae   :  { %v2058_v44 = vpop.permute.xlu0 %2057 }
0x20af   :  { %v2060_v45 = vsel %vm104_vm1, %v2043_v58, %v2058_v44 }
0x20b0   :  { %3088 = vmatmul.msk.f32.vlgmr.msrb.gmra.mxu0 %vm106_vm2, %v2060_v45  ;;  %3089 = vmatmul.msk.f32.vlgmr.msrb.gmra.mxu1 %vm106_vm2, %v2060_v45 }
0x20b1   :  { %2628 = vmatpush.msrb.mxu0 %v4368_v19  ;;  %2648 = vmatpush.msrb.mxu1 %v4374_v48 }
0x20b3   :  { %2629 = vmatpush.msrb.mxu0 %v4380_v49  ;;  %2649 = vmatpush.msrb.mxu1 %v4386_v39 }
0x20b5   :  { %2630 = vmatpush.msrb.mxu0 %v4392_v50  ;;  %2650 = vmatpush.msrb.mxu1 %v4398_v52 }
0x20b7   :  { %2631 = vmatpush.msrb.mxu0 %v4404_v35  ;;  %2651 = vmatpush.msrb.mxu1 %v4410_v53 }
0x20b9   :  { %2632 = vmatpush.msrb.mxu0 %v4416_v1  ;;  %2652 = vmatpush.msrb.mxu1 %v4422_v2 }
0x20bb   :  { %2633 = vmatpush.msrb.mxu0 %v4428_v3  ;;  %2653 = vmatpush.msrb.mxu1 %v4434_v4 }
0x20bd   :  { %2634 = vmatpush.msrb.mxu0 %v4440_v5  ;;  %2654 = vmatpush.msrb.mxu1 %v4446_v6 }
0x20bf   :  { %2635 = vmatpush.msrb.mxu0 %v4452_v7  ;;  %2655 = vmatpush.msrb.mxu1 %v4458_v8 }
0x212d   :  { %v2081_v26 = vpop.f32.mrf.mxu0  ;;  %v2101_v13 = vpop.f32.mrf.mxu1 }
0x212e   :  { %v2104_v17 = vadd.f32 %v3086_v10, %v2081_v26  ;;  %v2105_v38 = vadd.f32 %v3087_v12, %v2101_v13 }
0x2130   :  { %3362 = vtanh.f32 %v2104_v17  ;;  %v3091_v60 = vmul.f32 -1.442695, %v2105_v38  ;;  %v3090_v46 = vmul.f32 -1.442695, %v2104_v17 }
0x2131   :  { %3364 = vtanh.f32 %v2105_v38 }
0x2132   :  { %3366 = vpow2.f32 %v3091_v60 }
0x2136   :  { %v3363_v18 = vpop.eup %3362 }
0x2137   :  { %v3365_v55 = vpop.eup %3364  ;;  %2128 = vrot.lane.b32.xlu1 %v3363_v18, %s3543_s27 }
0x2138   :  { %2165 = vrot.lane.b32.xlu2 %v3365_v55, %s3543_s27  ;;  %v3367_v63 = vpop.eup %3366 }
0x2139   :  { %v2146_v34 = vadd.f32 1.0, %v3367_v63 }
0x213b   :  { %3368 = vrcp.f32 %v2146_v34  ;;  %v2158_v22 = vand.u32 2147483648, %v2146_v34  ;;  %vm2152_vm12 = vweird.f32 %v2146_v34  ;;  %v2156_v23 = vand.u32 2147483647, %v2146_v34 }
0x213c   :  { %3370 = vpow2.f32 %v3090_v46 }
0x213d   :  { %v2159_v32 = vor.u32 1.1754944e-38, %v2158_v22  ;;  %vm2157_vm14 = vcmp.eq.f32.partialorder %v2156_v23, 8.507059e+37 }
0x2141   :  { %v3369_v14 = vpop.eup %3368 }
0x2142   :  { %v2148_v28 = vmul.f32 %v3369_v14, %v2146_v34  ;;  %v3371_v47 = vpop.eup %3370  ;;  %vm2153_vm11 = vweird.f32 %v3369_v14 }
0x2143   :  { %v2109_v9 = vadd.f32 1.0, %v3371_v47  ;;  %vm2154_vm13 = vmor %vm2152_vm12, %vm2153_vm11 }
0x2144   :  { %v2149_v0 = vsub.f32 1.0, %v2148_v28 }
0x2145   :  { %3372 = vrcp.f32 %v2109_v9  ;;  %v2121_v45 = vand.u32 2147483648, %v2109_v9  ;;  %vm2115_vm3 = vweird.f32 %v2109_v9  ;;  %v2119_v10 = vand.u32 2147483647, %v2109_v9 }
0x2146   :  { %v2150_v31 = vmul.f32 %v3369_v14, %v2149_v0 }
0x2147   :  { %v2122_v26 = vor.u32 1.1754944e-38, %v2121_v45  ;;  %vm2120_vm5 = vcmp.eq.f32.partialorder %v2119_v10, 8.507059e+37 }
0x2148   :  { %v2151_v21 = vadd.f32 %v3369_v14, %v2150_v31 }
0x214a   :  { %v2155_v27 = vsel %vm2154_vm13, %v3369_v14, %v2151_v21 }
0x214b   :  { %v2160_v36 = vsel %vm2157_vm14, %v2159_v32, %v2155_v27  ;;  %v3373_v59 = vpop.eup %3372 }
0x214c   :  { %v2111_v25 = vmul.f32 %v3373_v59, %v2109_v9  ;;  %vm2116_vm15 = vweird.f32 %v3373_v59  ;;  %v2163_v18 = vmul.f32 %v2160_v36, %v4571_v20 }
0x214d   :  { %vm2117_vm4 = vmor %vm2115_vm3, %vm2116_vm15 }
0x214e   :  { %v2112_v42 = vsub.f32 1.0, %v2111_v25 }
0x2150   :  { %v2113_v58 = vmul.f32 %v3373_v59, %v2112_v42 }
0x2152   :  { %v2114_v44 = vadd.f32 %v3373_v59, %v2113_v58 }
0x2154   :  { %v2118_v12 = vsel %vm2117_vm4, %v3373_v59, %v2114_v44 }
0x2155   :  { %v2123_v17 = vsel %vm2120_vm5, %v2122_v26, %v2118_v12 }
0x2156   :  { %v2126_v34 = vmul.f32 %v2123_v17, %v4569_v33 }
0x2192   :  { %v2166_v57 = vpop.permute.xlu2 %2165 }
0x2193   :  { %v2168_v40 = vmul.f32 %v2166_v57, %v2160_v36 }
0x2195   :  { %2170 = vrot.lane.b32.xlu1 %v2168_v40, %s3542_s29 }
0x21a9   :  { %v2129_v13 = vpop.permute.xlu1 %2128 }
0x21aa   :  { %v2131_v38 = vmul.f32 %v2129_v13, %v2123_v17 }
0x21ac   :  { %2133 = vrot.lane.b32.xlu0 %v2131_v38, %s3542_s29 }
0x2207   :  { %v2171_v55 = vpop.permute.xlu1 %2170 }
0x2208   :  { %v4616_v60 = vadd.f32 %v2171_v55, %v2163_v18 }
0x220a   :  { %3374 = vtanh.f32 %v4616_v60 }
0x2210   :  { %v3375_v63 = vpop.eup %3374 }
0x2211   :  { %2176 = vrot.lane.b32.xlu0 %v3375_v63, %s3543_s27 }
0x221e   :  { %v2134_v14 = vpop.permute.xlu0 %2133 }
0x221f   :  { %v4621_v46 = vadd.f32 %v2134_v14, %v2126_v34 }
0x2221   :  { %3376 = vtanh.f32 %v4621_v46 }
0x2227   :  { %v3377_v28 = vpop.eup %3376 }
0x2228   :  { %2139 = vrot.lane.b32.xlu2 %v3377_v28, %s3543_s27 }
0x2282   :  { %v2140_v0 = vpop.permute.xlu2 %2139 }
0x2283   :  { %v2177_v20 = vpop.permute.xlu0 %2176  ;;  %v2142_v47 = vmul.f32 %v2140_v0, %v2123_v17 }
0x2284   :  { %v4625_v31 = vmul.f32 %v2177_v20, %v2160_v36 }
0x2285   :  { %2181 = vrot.lane.b32.xlu1 %v2142_v47, %s3542_s29 }
0x2286   :  { %2196 = vrot.lane.b32.xlu2 %v4625_v31, %s3543_s27 }
0x22e0   :  { %v2197_v9 = vpop.permute.xlu2 %2196 }
0x22f7   :  { %v2182_v33 = vpop.permute.xlu1 %2181 }
0x22f8   :  { %3092 = vst.msk [vmem:[%s4943_s5 + $0x1c] sm:$0x3] %vm67_vm0, %v2182_v33  ;;  %v2199_v21 = vsel %vm104_vm1, %v2182_v33, %v2197_v9 }
0x22f9   :  { %3096 = vmatmul.msk.f32.vlgmr.msrb.gmra.mxu2 %vm106_vm2, %v2199_v21  ;;  %3097 = vmatmul.msk.f32.vlgmr.msrb.gmra.mxu3 %vm106_vm2, %v2199_v21 }
0x22fa   :  { %2766 = vmatpush.msrb.mxu2 %v4368_v19  ;;  %2786 = vmatpush.msrb.mxu3 %v4374_v48  ;;  %v3094_v19 = vld [vmem:[%s4938_s0 + $0x1e] sm:$0x3]  ;;  %v3095_v48 = vld [vmem:[%s4939_s1 + $0x8] sm:$0x3] }
0x22fc   :  { %2767 = vmatpush.msrb.mxu2 %v4380_v49  ;;  %2787 = vmatpush.msrb.mxu3 %v4386_v39 }
0x22fe   :  { %2768 = vmatpush.msrb.mxu2 %v4392_v50  ;;  %2788 = vmatpush.msrb.mxu3 %v4398_v52 }
0x2300   :  { %2769 = vmatpush.msrb.mxu2 %v4404_v35  ;;  %2789 = vmatpush.msrb.mxu3 %v4410_v53 }
0x2302   :  { %2770 = vmatpush.msrb.mxu2 %v4416_v1  ;;  %2790 = vmatpush.msrb.mxu3 %v4422_v2 }
0x2304   :  { %2771 = vmatpush.msrb.mxu2 %v4428_v3  ;;  %2791 = vmatpush.msrb.mxu3 %v4434_v4 }
0x2306   :  { %2772 = vmatpush.msrb.mxu2 %v4440_v5  ;;  %2792 = vmatpush.msrb.mxu3 %v4446_v6 }
0x2308   :  { %2773 = vmatpush.msrb.mxu2 %v4452_v7  ;;  %2793 = vmatpush.msrb.mxu3 %v4458_v8 }
0x237c   :  { %v2220_v49 = vpop.f32.mrf.mxu2  ;;  %v2240_v39 = vpop.f32.mrf.mxu3 }
0x237d   :  { %v2243_v50 = vadd.f32 %v3094_v19, %v2220_v49  ;;  %v2244_v52 = vadd.f32 %v3095_v48, %v2240_v39 }
0x237f   :  { %3378 = vtanh.f32 %v2243_v50  ;;  %v3098_v1 = vmul.f32 -1.442695, %v2243_v50  ;;  %v3099_v2 = vmul.f32 -1.442695, %v2244_v52  ;;  %v3102_v50 = vld [vmem:[%s4938_s0 + $0x20] sm:$0x3] }
0x2380   :  { %3380 = vtanh.f32 %v2244_v52  ;;  %v3103_v52 = vld [vmem:[%s4939_s1 + $0x6] sm:$0x3] }
0x2381   :  { %3382 = vpow2.f32 %v3098_v1 }
0x2382   :  { %3384 = vpow2.f32 %v3099_v2 }
0x2385   :  { %v3379_v35 = vpop.eup %3378 }
0x2386   :  { %v3381_v53 = vpop.eup %3380  ;;  %2267 = vrot.lane.b32.xlu0 %v3379_v35, %s3543_s27 }
0x2387   :  { %2304 = vrot.lane.b32.xlu1 %v3381_v53, %s3543_s27  ;;  %v3383_v3 = vpop.eup %3382 }
0x2388   :  { %v3385_v4 = vpop.eup %3384  ;;  %v2248_v5 = vadd.f32 1.0, %v3383_v3 }
0x2389   :  { %v2285_v6 = vadd.f32 1.0, %v3385_v4 }
0x238a   :  { %3386 = vrcp.f32 %v2248_v5  ;;  %v2260_v25 = vand.u32 2147483648, %v2248_v5  ;;  %vm2254_vm8 = vweird.f32 %v2248_v5  ;;  %v2258_v58 = vand.u32 2147483647, %v2248_v5 }
0x238b   :  { %3388 = vrcp.f32 %v2285_v6  ;;  %v2297_v42 = vand.u32 2147483648, %v2285_v6  ;;  %vm2291_vm9 = vweird.f32 %v2285_v6  ;;  %v2295_v44 = vand.u32 2147483647, %v2285_v6 }
0x238c   :  { %v2261_v12 = vor.u32 1.1754944e-38, %v2260_v25  ;;  %vm2259_vm12 = vcmp.eq.f32.partialorder %v2258_v58, 8.507059e+37 }
0x238d   :  { %v2298_v26 = vor.u32 1.1754944e-38, %v2297_v42  ;;  %vm2296_vm13 = vcmp.eq.f32.partialorder %v2295_v44, 8.507059e+37 }
0x2390   :  { %v3387_v7 = vpop.eup %3386 }
0x2391   :  { %v3389_v8 = vpop.eup %3388  ;;  %v2250_v22 = vmul.f32 %v3387_v7, %v2248_v5  ;;  %vm2255_vm6 = vweird.f32 %v3387_v7 }
0x2392   :  { %v2287_v23 = vmul.f32 %v3389_v8, %v2285_v6  ;;  %vm2292_vm7 = vweird.f32 %v3389_v8  ;;  %vm2256_vm10 = vmor %vm2254_vm8, %vm2255_vm6 }
0x2393   :  { %v2251_v27 = vsub.f32 1.0, %v2250_v22  ;;  %vm2293_vm11 = vmor %vm2291_vm9, %vm2292_vm7 }
0x2394   :  { %v2288_v32 = vsub.f32 1.0, %v2287_v23 }
0x2395   :  { %v2252_v57 = vmul.f32 %v3387_v7, %v2251_v27 }
0x2396   :  { %v2289_v36 = vmul.f32 %v3389_v8, %v2288_v32 }
0x2397   :  { %v2253_v59 = vadd.f32 %v3387_v7, %v2252_v57 }
0x2398   :  { %v2290_v40 = vadd.f32 %v3389_v8, %v2289_v36 }
0x2399   :  { %v2257_v45 = vsel %vm2256_vm10, %v3387_v7, %v2253_v59 }
0x239a   :  { %v2294_v10 = vsel %vm2293_vm11, %v3389_v8, %v2290_v40  ;;  %v2262_v17 = vsel %vm2259_vm12, %v2261_v12, %v2257_v45 }
0x239b   :  { %v2299_v18 = vsel %vm2296_vm13, %v2298_v26, %v2294_v10  ;;  %v2265_v34 = vmul.f32 %v2262_v17, %v4621_v46 }
0x239c   :  { %v2302_v20 = vmul.f32 %v2299_v18, %v4616_v60 }
0x23f8   :  { %v2268_v13 = vpop.permute.xlu0 %2267 }
0x23f9   :  { %v2305_v38 = vpop.permute.xlu1 %2304  ;;  %v2270_v55 = vmul.f32 %v2268_v13, %v2262_v17 }
0x23fa   :  { %v2307_v63 = vmul.f32 %v2305_v38, %v2299_v18 }
0x23fb   :  { %2272 = vrot.lane.b32.xlu2 %v2270_v55, %s3542_s29 }
0x23fc   :  { %2309 = vrot.lane.b32.xlu0 %v2307_v63, %s3542_s29 }
0x2455   :  { %v2273_v14 = vpop.permute.xlu2 %2272 }
0x2456   :  { %v4664_v28 = vadd.f32 %v2273_v14, %v2265_v34 }
0x2458   :  { %3390 = vtanh.f32 %v4664_v28 }
0x245e   :  { %v3391_v0 = vpop.eup %3390 }
0x245f   :  { %2278 = vrot.lane.b32.xlu1 %v3391_v0, %s3543_s27 }
0x246e   :  { %v2310_v47 = vpop.permute.xlu0 %2309 }
0x246f   :  { %v4669_v9 = vadd.f32 %v2310_v47, %v2302_v20 }
0x2471   :  { %3392 = vtanh.f32 %v4669_v9 }
0x2477   :  { %v3393_v33 = vpop.eup %3392 }
0x2478   :  { %2315 = vrot.lane.b32.xlu2 %v3393_v33, %s3543_s27 }
0x24d1   :  { %v2279_v21 = vpop.permute.xlu1 %2278 }
0x24d2   :  { %v2316_v46 = vpop.permute.xlu2 %2315  ;;  %v2281_v19 = vmul.f32 %v2279_v21, %v2262_v17 }
0x24d3   :  { %v4673_v48 = vmul.f32 %v2316_v46, %v2299_v18 }
0x24d4   :  { %2320 = vrot.lane.b32.xlu0 %v2281_v19, %s3542_s29 }
0x24d5   :  { %2335 = vrot.lane.b32.xlu1 %v4673_v48, %s3543_s27 }
0x2546   :  { %v2321_v49 = vpop.permute.xlu0 %2320 }
0x2547   :  { %3100 = vst.msk [vmem:[%s4943_s5 + $0x1e] sm:$0x3] %vm67_vm0, %v2321_v49  ;;  %v2336_v60 = vpop.permute.xlu1 %2335 }
0x2548   :  { %v2338_v39 = vsel %vm104_vm1, %v2321_v49, %v2336_v60 }
0x2549   :  { %3104 = vmatmul.msk.f32.vlgmr.msra.gmra.mxu0 %vm106_vm2, %v2338_v39  ;;  %3105 = vmatmul.msk.f32.vlgmr.msra.gmra.mxu1 %vm106_vm2, %v2338_v39 }
0x25c6   :  { %v2359_v35 = vpop.f32.mrf.mxu0  ;;  %v2379_v53 = vpop.f32.mrf.mxu1 }
0x25c7   :  { %v2382_v1 = vadd.f32 %v3102_v50, %v2359_v35  ;;  %v2383_v2 = vadd.f32 %v3103_v52, %v2379_v53 }
0x25c9   :  { %3394 = vtanh.f32 %v2382_v1  ;;  %v3106_v5 = vmul.f32 -1.442695, %v2382_v1  ;;  %v3107_v22 = vmul.f32 -1.442695, %v2383_v2 }
0x25ca   :  { %3396 = vtanh.f32 %v2383_v2  ;;  %v3110_v2 = vld [vmem:[%s4938_s0 + $0x22] sm:$0x3] }
0x25cb   :  { %3398 = vpow2.f32 %v3106_v5 }
0x25cf   :  { %v3395_v3 = vpop.eup %3394 }
0x25d0   :  { %v3397_v4 = vpop.eup %3396  ;;  %2406 = vrot.lane.b32.xlu2 %v3395_v3, %s3543_s27  ;;  %v3111_v3 = vld [vmem:[%s4939_s1 + $0x4] sm:$0x3] }
0x25d1   :  { %2443 = vrot.lane.b32.xlu0 %v3397_v4, %s3543_s27  ;;  %v3399_v6 = vpop.eup %3398 }
0x25d2   :  { %v2387_v7 = vadd.f32 1.0, %v3399_v6 }
0x25d4   :  { %3400 = vrcp.f32 %v2387_v7  ;;  %v2399_v40 = vand.u32 2147483648, %v2387_v7  ;;  %vm2393_vm15 = vweird.f32 %v2387_v7  ;;  %v2397_v25 = vand.u32 2147483647, %v2387_v7 }
0x25d5   :  { %3402 = vpow2.f32 %v3107_v22 }
0x25d6   :  { %v2400_v58 = vor.u32 1.1754944e-38, %v2399_v40  ;;  %vm2398_vm4 = vcmp.eq.f32.partialorder %v2397_v25, 8.507059e+37 }
0x25da   :  { %v3401_v8 = vpop.eup %3400 }
0x25db   :  { %v2389_v23 = vmul.f32 %v3401_v8, %v2387_v7  ;;  %v3403_v57 = vpop.eup %3402  ;;  %vm2394_vm14 = vweird.f32 %v3401_v8 }
0x25dc   :  { %v2424_v36 = vadd.f32 1.0, %v3403_v57  ;;  %vm2395_vm3 = vmor %vm2393_vm15, %vm2394_vm14 }
0x25dd   :  { %v2390_v27 = vsub.f32 1.0, %v2389_v23 }
0x25de   :  { %3404 = vrcp.f32 %v2424_v36  ;;  %v2436_v18 = vand.u32 2147483648, %v2424_v36  ;;  %vm2430_vm6 = vweird.f32 %v2424_v36  ;;  %v2434_v55 = vand.u32 2147483647, %v2424_v36 }
0x25df   :  { %v2391_v32 = vmul.f32 %v3401_v8, %v2390_v27 }
0x25e0   :  { %v2437_v34 = vor.u32 1.1754944e-38, %v2436_v18  ;;  %vm2435_vm8 = vcmp.eq.f32.partialorder %v2434_v55, 8.507059e+37 }
0x25e1   :  { %v2392_v59 = vadd.f32 %v3401_v8, %v2391_v32 }
0x25e3   :  { %v2396_v42 = vsel %vm2395_vm3, %v3401_v8, %v2392_v59 }
0x25e4   :  { %v2401_v45 = vsel %vm2398_vm4, %v2400_v58, %v2396_v42  ;;  %v3405_v12 = vpop.eup %3404 }
0x25e5   :  { %v2426_v26 = vmul.f32 %v3405_v12, %v2424_v36  ;;  %vm2431_vm5 = vweird.f32 %v3405_v12  ;;  %v2404_v47 = vmul.f32 %v2401_v45, %v4664_v28 }
0x25e6   :  { %vm2432_vm7 = vmor %vm2430_vm6, %vm2431_vm5 }
0x25e7   :  { %v2427_v13 = vsub.f32 1.0, %v2426_v26 }
0x25e9   :  { %v2428_v17 = vmul.f32 %v3405_v12, %v2427_v13 }
0x25eb   :  { %v2429_v38 = vadd.f32 %v3405_v12, %v2428_v17 }
0x25ed   :  { %v2433_v63 = vsel %vm2432_vm7, %v3405_v12, %v2429_v38 }
0x25ee   :  { %v2438_v0 = vsel %vm2435_vm8, %v2437_v34, %v2433_v63 }
0x25ef   :  { %v2441_v33 = vmul.f32 %v2438_v0, %v4669_v9 }
0x262a   :  { %v2407_v44 = vpop.permute.xlu2 %2406 }
0x262b   :  { %v2409_v10 = vmul.f32 %v2407_v44, %v2401_v45 }
0x262d   :  { %2411 = vrot.lane.b32.xlu1 %v2409_v10, %s3542_s29 }
0x2643   :  { %v2444_v14 = vpop.permute.xlu0 %2443 }
0x2644   :  { %v2446_v20 = vmul.f32 %v2444_v14, %v2438_v0 }
0x2646   :  { %2448 = vrot.lane.b32.xlu2 %v2446_v20, %s3542_s29 }
0x269f   :  { %v2412_v21 = vpop.permute.xlu1 %2411 }
0x26a0   :  { %v2449_v46 = vpop.permute.xlu2 %2448  ;;  %v4697_v19 = vadd.f32 %v2412_v21, %v2404_v47 }
0x26a1   :  { %v4699_v49 = vadd.f32 %v2449_v46, %v2441_v33 }
0x26a2   :  { %3406 = vtanh.f32 %v4697_v19 }
0x26a3   :  { %3408 = vtanh.f32 %v4699_v49 }
0x26a8   :  { %v3407_v60 = vpop.eup %3406 }
0x26a9   :  { %v3409_v39 = vpop.eup %3408  ;;  %2417 = vrot.lane.b32.xlu0 %v3407_v60, %s3543_s27 }
0x26aa   :  { %2454 = vrot.lane.b32.xlu1 %v3409_v39, %s3543_s27 }
0x271b   :  { %v2418_v50 = vpop.permute.xlu0 %2417 }
0x271c   :  { %v2455_v28 = vpop.permute.xlu1 %2454  ;;  %v2420_v52 = vmul.f32 %v2418_v50, %v2401_v45 }
0x271d   :  { %v4705_v9 = vmul.f32 %v2455_v28, %v2438_v0 }
0x271e   :  { %2459 = vrot.lane.b32.xlu2 %v2420_v52, %s3542_s29 }
0x271f   :  { %2474 = vrot.lane.b32.xlu0 %v4705_v9, %s3543_s27 }
0x2778   :  { %v2460_v35 = vpop.permute.xlu2 %2459 }
0x2779   :  { %3108 = vst.msk [vmem:[%s4943_s5 + $0x20] sm:$0x3] %vm67_vm0, %v2460_v35 }
0x2791   :  { %v2475_v53 = vpop.permute.xlu0 %2474 }
0x2792   :  { %v2477_v1 = vsel %vm104_vm1, %v2460_v35, %v2475_v53 }
0x2793   :  { %3112 = vmatmul.msk.f32.vlgmr.msra.gmra.mxu2 %vm106_vm2, %v2477_v1  ;;  %3113 = vmatmul.msk.f32.vlgmr.msra.gmra.mxu3 %vm106_vm2, %v2477_v1 }
0x2816   :  { %v2498_v4 = vpop.f32.mrf.mxu2  ;;  %v2518_v5 = vpop.f32.mrf.mxu3 }
0x2817   :  { %v2521_v6 = vadd.f32 %v3110_v2, %v2498_v4  ;;  %v2522_v7 = vadd.f32 %v3111_v3, %v2518_v5 }
0x2819   :  { %3410 = vtanh.f32 %v2521_v6  ;;  %v3115_v23 = vmul.f32 -1.442695, %v2522_v7  ;;  %v3114_v36 = vmul.f32 -1.442695, %v2521_v6 }
0x281a   :  { %3412 = vtanh.f32 %v2522_v7 }
0x281b   :  { %3414 = vpow2.f32 %v3115_v23 }
0x281f   :  { %v3411_v8 = vpop.eup %3410 }
0x2820   :  { %v3413_v22 = vpop.eup %3412  ;;  %2545 = vrot.lane.b32.xlu1 %v3411_v8, %s3543_s27  ;;  %v3118_v8 = vld [vmem:[%s4938_s0 + $0x24] sm:$0x3] }
0x2821   :  { %2582 = vrot.lane.b32.xlu2 %v3413_v22, %s3543_s27  ;;  %v3415_v27 = vpop.eup %3414  ;;  %v3119_v22 = vld [vmem:[%s4939_s1 + $0x2] sm:$0x3] }
0x2822   :  { %v2563_v32 = vadd.f32 1.0, %v3415_v27 }
0x2824   :  { %3416 = vrcp.f32 %v2563_v32  ;;  %v2575_v45 = vand.u32 2147483648, %v2563_v32  ;;  %vm2569_vm10 = vweird.f32 %v2563_v32  ;;  %v2573_v10 = vand.u32 2147483647, %v2563_v32 }
0x2825   :  { %3418 = vpow2.f32 %v3114_v36 }
0x2826   :  { %v2576_v26 = vor.u32 1.1754944e-38, %v2575_v45  ;;  %vm2574_vm12 = vcmp.eq.f32.partialorder %v2573_v10, 8.507059e+37 }
0x282a   :  { %v3417_v57 = vpop.eup %3416 }
0x282b   :  { %v2565_v59 = vmul.f32 %v3417_v57, %v2563_v32  ;;  %v3419_v25 = vpop.eup %3418  ;;  %vm2570_vm9 = vweird.f32 %v3417_v57 }
0x282c   :  { %v2526_v58 = vadd.f32 1.0, %v3419_v25  ;;  %vm2571_vm11 = vmor %vm2569_vm10, %vm2570_vm9 }
0x282d   :  { %v2566_v40 = vsub.f32 1.0, %v2565_v59 }
0x282e   :  { %3420 = vrcp.f32 %v2526_v58  ;;  %v2538_v0 = vand.u32 2147483648, %v2526_v58  ;;  %vm2532_vm14 = vweird.f32 %v2526_v58  ;;  %v2536_v20 = vand.u32 2147483647, %v2526_v58 }
0x282f   :  { %v2567_v42 = vmul.f32 %v3417_v57, %v2566_v40 }
0x2830   :  { %v2539_v33 = vor.u32 1.1754944e-38, %v2538_v0  ;;  %vm2537_vm3 = vcmp.eq.f32.partialorder %v2536_v20, 8.507059e+37 }
0x2831   :  { %v2568_v44 = vadd.f32 %v3417_v57, %v2567_v42 }
0x2833   :  { %v2572_v12 = vsel %vm2571_vm11, %v3417_v57, %v2568_v44 }
0x2834   :  { %v2577_v17 = vsel %vm2574_vm12, %v2576_v26, %v2572_v12  ;;  %v3421_v38 = vpop.eup %3420 }
0x2835   :  { %v2528_v55 = vmul.f32 %v3421_v38, %v2526_v58  ;;  %vm2533_vm13 = vweird.f32 %v3421_v38  ;;  %v2580_v39 = vmul.f32 %v2577_v17, %v4699_v49 }
0x2836   :  { %vm2534_vm15 = vmor %vm2532_vm14, %vm2533_vm13 }
0x2837   :  { %v2529_v63 = vsub.f32 1.0, %v2528_v55 }
0x2839   :  { %v2530_v34 = vmul.f32 %v3421_v38, %v2529_v63 }
0x283b   :  { %v2531_v14 = vadd.f32 %v3421_v38, %v2530_v34 }
0x283d   :  { %v2535_v47 = vsel %vm2534_vm15, %v3421_v38, %v2531_v14 }
0x283e   :  { %v2540_v46 = vsel %vm2537_vm3, %v2539_v33, %v2535_v47 }
0x283f   :  { %v2543_v35 = vmul.f32 %v2540_v46, %v4697_v19 }
0x287b   :  { %v2583_v13 = vpop.permute.xlu2 %2582 }
0x287c   :  { %v2585_v18 = vmul.f32 %v2583_v13, %v2577_v17 }
0x287e   :  { %2587 = vrot.lane.b32.xlu1 %v2585_v18, %s3542_s29 }
0x2892   :  { %v2546_v21 = vpop.permute.xlu1 %2545 }
0x2893   :  { %v2548_v60 = vmul.f32 %v2546_v21, %v2540_v46 }
0x2895   :  { %2550 = vrot.lane.b32.xlu0 %v2548_v60, %s3542_s29 }
0x28f0   :  { %v2588_v50 = vpop.permute.xlu1 %2587 }
0x28f1   :  { %v4728_v28 = vadd.f32 %v2588_v50, %v2580_v39 }
0x28f3   :  { %3422 = vtanh.f32 %v4728_v28 }
0x28f9   :  { %v3423_v52 = vpop.eup %3422 }
0x28fa   :  { %2593 = vrot.lane.b32.xlu0 %v3423_v52, %s3543_s27 }
0x2907   :  { %v2551_v53 = vpop.permute.xlu0 %2550 }
0x2908   :  { %v4733_v1 = vadd.f32 %v2551_v53, %v2543_v35 }
0x290a   :  { %3424 = vtanh.f32 %v4733_v1 }
0x2910   :  { %v3425_v2 = vpop.eup %3424 }
0x2911   :  { %2556 = vrot.lane.b32.xlu2 %v3425_v2, %s3543_s27 }
0x296b   :  { %v2557_v3 = vpop.permute.xlu2 %2556 }
0x296c   :  { %v2594_v49 = vpop.permute.xlu0 %2593  ;;  %v2559_v4 = vmul.f32 %v2557_v3, %v2540_v46 }
0x296d   :  { %v4737_v5 = vmul.f32 %v2594_v49, %v2577_v17 }
0x296e   :  { %2598 = vrot.lane.b32.xlu1 %v2559_v4, %s3542_s29 }
0x296f   :  { %2613 = vrot.lane.b32.xlu2 %v4737_v5, %s3543_s27 }
0x29c9   :  { %v2614_v6 = vpop.permute.xlu2 %2613 }
0x29e0   :  { %v2599_v19 = vpop.permute.xlu1 %2598 }
0x29e1   :  { %3116 = vst.msk [vmem:[%s4943_s5 + $0x22] sm:$0x3] %vm67_vm0, %v2599_v19  ;;  %v2616_v7 = vsel %vm104_vm1, %v2599_v19, %v2614_v6 }
0x29e2   :  { %3120 = vmatmul.msk.f32.vlgmr.msrb.gmra.mxu0 %vm106_vm2, %v2616_v7  ;;  %3121 = vmatmul.msk.f32.vlgmr.msrb.gmra.mxu1 %vm106_vm2, %v2616_v7 }
0x2a5f   :  { %v2637_v23 = vpop.f32.mrf.mxu0  ;;  %v2657_v27 = vpop.f32.mrf.mxu1 }
0x2a60   :  { %v2660_v32 = vadd.f32 %v3118_v8, %v2637_v23  ;;  %v2661_v57 = vadd.f32 %v3119_v22, %v2657_v27 }
0x2a62   :  { %3426 = vtanh.f32 %v2660_v32  ;;  %v3122_v40 = vmul.f32 -1.442695, %v2660_v32  ;;  %v3123_v25 = vmul.f32 -1.442695, %v2661_v57 }
0x2a63   :  { %3428 = vtanh.f32 %v2661_v57 }
0x2a64   :  { %3430 = vpow2.f32 %v3122_v40  ;;  %v2750_v40 = vld [vmem:[%s4939_s1] sm:$0x3] }
0x2a65   :  { %3432 = vpow2.f32 %v3123_v25 }
0x2a68   :  { %v3427_v36 = vpop.eup %3426 }
0x2a69   :  { %v3429_v59 = vpop.eup %3428  ;;  %2684 = vrot.lane.b32.xlu0 %v3427_v36, %s3543_s27 }
0x2a6a   :  { %2721 = vrot.lane.b32.xlu1 %v3429_v59, %s3543_s27  ;;  %v3431_v42 = vpop.eup %3430  ;;  %v3126_v59 = vld [vmem:[%s4938_s0 + $0x26] sm:$0x3]  ;;  %s2931_s0 = sshll.u32 %s3545_s25, 4  ;;  %s2932_s0 = int_to_ptr.vmem [resolvable:$true] %s2931_s0 }
0x2a6b   :  { %v3433_v58 = vpop.eup %3432  ;;  %v2665_v44 = vadd.f32 1.0, %v3431_v42 }
0x2a6c   :  { %v2702_v45 = vadd.f32 1.0, %v3433_v58 }
0x2a6d   :  { %3434 = vrcp.f32 %v2665_v44  ;;  %v2677_v14 = vand.u32 2147483648, %v2665_v44  ;;  %vm2671_vm6 = vweird.f32 %v2665_v44  ;;  %v2675_v20 = vand.u32 2147483647, %v2665_v44 }
0x2a6e   :  { %3436 = vrcp.f32 %v2702_v45  ;;  %v2714_v0 = vand.u32 2147483648, %v2702_v45  ;;  %vm2708_vm7 = vweird.f32 %v2702_v45  ;;  %v2712_v47 = vand.u32 2147483647, %v2702_v45 }
0x2a6f   :  { %v2678_v46 = vor.u32 1.1754944e-38, %v2677_v14  ;;  %vm2676_vm10 = vcmp.eq.f32.partialorder %v2675_v20, 8.507059e+37 }
0x2a70   :  { %v2715_v60 = vor.u32 1.1754944e-38, %v2714_v0  ;;  %vm2713_vm11 = vcmp.eq.f32.partialorder %v2712_v47, 8.507059e+37 }
0x2a73   :  { %v3435_v10 = vpop.eup %3434 }
0x2a74   :  { %v3437_v12 = vpop.eup %3436  ;;  %v2667_v26 = vmul.f32 %v3435_v10, %v2665_v44  ;;  %vm2672_vm4 = vweird.f32 %v3435_v10 }
0x2a75   :  { %v2704_v13 = vmul.f32 %v3437_v12, %v2702_v45  ;;  %vm2709_vm5 = vweird.f32 %v3437_v12  ;;  %vm2673_vm8 = vmor %vm2671_vm6, %vm2672_vm4 }
0x2a76   :  { %v2668_v17 = vsub.f32 1.0, %v2667_v26  ;;  %vm2710_vm9 = vmor %vm2708_vm7, %vm2709_vm5 }
0x2a77   :  { %v2705_v38 = vsub.f32 1.0, %v2704_v13 }
0x2a78   :  { %v2669_v18 = vmul.f32 %v3435_v10, %v2668_v17 }
0x2a79   :  { %v2706_v55 = vmul.f32 %v3437_v12, %v2705_v38 }
0x2a7a   :  { %v2670_v63 = vadd.f32 %v3435_v10, %v2669_v18 }
0x2a7b   :  { %v2707_v34 = vadd.f32 %v3437_v12, %v2706_v55 }
0x2a7c   :  { %v2674_v33 = vsel %vm2673_vm8, %v3435_v10, %v2670_v63 }
0x2a7d   :  { %v2711_v21 = vsel %vm2710_vm9, %v3437_v12, %v2707_v34  ;;  %v2679_v50 = vsel %vm2676_vm10, %v2678_v46, %v2674_v33 }
0x2a7e   :  { %v2716_v35 = vsel %vm2713_vm11, %v2715_v60, %v2711_v21  ;;  %v2682_v3 = vmul.f32 %v2679_v50, %v4733_v1 }
0x2a7f   :  { %v2719_v19 = vmul.f32 %v2716_v35, %v4728_v28 }
0x2adb   :  { %v2685_v39 = vpop.permute.xlu0 %2684 }
0x2adc   :  { %v2722_v52 = vpop.permute.xlu1 %2721  ;;  %v2687_v53 = vmul.f32 %v2685_v39, %v2679_v50 }
0x2add   :  { %v2724_v2 = vmul.f32 %v2722_v52, %v2716_v35 }
0x2ade   :  { %2689 = vrot.lane.b32.xlu2 %v2687_v53, %s3542_s29 }
0x2adf   :  { %2726 = vrot.lane.b32.xlu0 %v2724_v2, %s3542_s29 }
0x2b38   :  { %v2690_v49 = vpop.permute.xlu2 %2689 }
0x2b39   :  { %v4760_v4 = vadd.f32 %v2690_v49, %v2682_v3 }
0x2b3b   :  { %3438 = vtanh.f32 %v4760_v4 }
0x2b41   :  { %v3439_v6 = vpop.eup %3438 }
0x2b42   :  { %2695 = vrot.lane.b32.xlu1 %v3439_v6, %s3543_s27 }
0x2b51   :  { %v2727_v7 = vpop.permute.xlu0 %2726 }
0x2b52   :  { %v4765_v8 = vadd.f32 %v2727_v7, %v2719_v19 }
0x2b54   :  { %3440 = vtanh.f32 %v4765_v8 }
0x2b5a   :  { %v3441_v22 = vpop.eup %3440 }
0x2b5b   :  { %2732 = vrot.lane.b32.xlu2 %v3441_v22, %s3543_s27 }
0x2bb4   :  { %v2696_v23 = vpop.permute.xlu1 %2695 }
0x2bb5   :  { %v2733_v1 = vpop.permute.xlu2 %2732  ;;  %v2698_v27 = vmul.f32 %v2696_v23, %v2679_v50 }
0x2bb6   :  { %v4769_v32 = vmul.f32 %v2733_v1, %v2716_v35 }
0x2bb7   :  { %2737 = vrot.lane.b32.xlu0 %v2698_v27, %s3542_s29 }
0x2bb8   :  { %2751 = vrot.lane.b32.xlu1 %v4769_v32, %s3543_s27 }
0x2c29   :  { %v2738_v57 = vpop.permute.xlu0 %2737 }
0x2c2a   :  { %3124 = vst.msk [vmem:[%s4943_s5 + $0x24] sm:$0x3] %vm67_vm0, %v2738_v57  ;;  %v2752_v28 = vpop.permute.xlu1 %2751 }
0x2c2b   :  { %v2754_v36 = vsel %vm104_vm1, %v2738_v57, %v2752_v28 }
0x2c2c   :  { %3127 = vmatmul.msk.f32.vlgmr.msrb.gmra.mxu2 %vm106_vm2, %v2754_v36  ;;  %3128 = vmatmul.msk.f32.vlgmr.msrb.gmra.mxu3 %vm106_vm2, %v2754_v36 }
0x2caf   :  { %v2775_v25 = vpop.f32.mrf.mxu2  ;;  %v2795_v42 = vpop.f32.mrf.mxu3 }
0x2cb0   :  { %v2798_v58 = vadd.f32 %v3126_v59, %v2775_v25  ;;  %v2799_v44 = vadd.f32 %v2795_v42, %v2750_v40 }
0x2cb2   :  { %3442 = vtanh.f32 %v2798_v58  ;;  %v3129_v12 = vmul.f32 -1.442695, %v2798_v58  ;;  %v3130_v38 = vmul.f32 -1.442695, %v2799_v44 }
0x2cb3   :  { %3444 = vtanh.f32 %v2799_v44 }
0x2cb4   :  { %3446 = vpow2.f32 %v3129_v12 }
0x2cb8   :  { %v3443_v45 = vpop.eup %3442 }
0x2cb9   :  { %v3445_v10 = vpop.eup %3444  ;;  %2822 = vrot.lane.b32.xlu2 %v3443_v45, %s3543_s27 }
0x2cba   :  { %2859 = vrot.lane.b32.xlu0 %v3445_v10, %s3543_s27  ;;  %v3447_v26 = vpop.eup %3446 }
0x2cbb   :  { %v2803_v13 = vadd.f32 1.0, %v3447_v26 }
0x2cbd   :  { %3448 = vrcp.f32 %v2803_v13  ;;  %v2815_v20 = vand.u32 2147483648, %v2803_v13  ;;  %vm2809_vm2 = vweird.f32 %v2803_v13 }
0x2cbe   :  { %3450 = vpow2.f32 %v3130_v38 }
0x2cbf   :  { %v2816_v47 = vor.u32 1.1754944e-38, %v2815_v20 }
0x2cc2   :  { %380 = vrot.lane.b32.xlu0 %v3841_v24, %s3542_s29  ;;  %v2813_v24 = vand.u32 2147483647, %v2803_v13 }
0x2cc3   :  { %v3449_v17 = vpop.eup %3448 }
0x2cc4   :  { %v2805_v18 = vmul.f32 %v3449_v17, %v2803_v13  ;;  %v3451_v34 = vpop.eup %3450  ;;  %vm2810_vm1 = vweird.f32 %v3449_v17  ;;  %vm2814_vm13 = vcmp.eq.f32.partialorder %v2813_v24, 8.507059e+37 }
0x2cc5   :  { %v2840_v14 = vadd.f32 1.0, %v3451_v34  ;;  %vm2811_vm12 = vmor %vm2809_vm2, %vm2810_vm1 }
0x2cc6   :  { %v2806_v55 = vsub.f32 1.0, %v2805_v18 }
0x2cc7   :  { %3452 = vrcp.f32 %v2840_v14  ;;  %v2852_v53 = vand.u32 2147483648, %v2840_v14  ;;  %vm2846_vm15 = vweird.f32 %v2840_v14  ;;  %v2850_v2 = vand.u32 2147483647, %v2840_v14 }
0x2cc8   :  { %v2807_v63 = vmul.f32 %v3449_v17, %v2806_v55 }
0x2cc9   :  { %v2853_v49 = vor.u32 1.1754944e-38, %v2852_v53  ;;  %vm2851_vm4 = vcmp.eq.f32.partialorder %v2850_v2, 8.507059e+37 }
0x2cca   :  { %797 = vrot.lane.b32.xlu0 %v3985_v30, %s3542_s29  ;;  %v2808_v0 = vadd.f32 %v3449_v17, %v2807_v63 }
0x2ccc   :  { %v2812_v30 = vsel %vm2811_vm12, %v3449_v17, %v2808_v0 }
0x2ccd   :  { %v4793_v21 = vsel %vm2814_vm13, %v2816_v47, %v2812_v30  ;;  %v3453_v60 = vpop.eup %3452 }
0x2cce   :  { %v2842_v39 = vmul.f32 %v3453_v60, %v2840_v14  ;;  %vm2847_vm14 = vweird.f32 %v3453_v60  ;;  %v2820_v23 = vmul.f32 %v4793_v21, %v4760_v4 }
0x2ccf   :  { %vm2848_vm3 = vmor %vm2846_vm15, %vm2847_vm14 }
0x2cd0   :  { %v2843_v50 = vsub.f32 1.0, %v2842_v39 }
0x2cd2   :  { %v2844_v52 = vmul.f32 %v3453_v60, %v2843_v50 }
0x2cd4   :  { %v2845_v35 = vadd.f32 %v3453_v60, %v2844_v52 }
0x2cd6   :  { %v2849_v3 = vsel %vm2848_vm3, %v3453_v60, %v2845_v35 }
0x2cd7   :  { %v2854_v19 = vsel %vm2851_vm4, %v2853_v49, %v2849_v3 }
0x2d13   :  { %v2823_v33 = vpop.permute.xlu2 %2822 }
0x2d14   :  { %v2825_v46 = vmul.f32 %v2823_v33, %v4793_v21 }
0x2d16   :  { %2827 = vrot.lane.b32.xlu1 %v2825_v46, %s3542_s29 }
0x2d1e   :  { %519 = vrot.lane.b32.xlu1 %v3889_v43, %s3542_s29 }
0x2d2c   :  { %v2860_v6 = vpop.permute.xlu0 %2859 }
0x2d2d   :  { %v2862_v7 = vmul.f32 %v2860_v6, %v2854_v19 }
0x2d2f   :  { %2864 = vrot.lane.b32.xlu2 %v2862_v7, %s3542_s29 }
0x2d34   :  { %v381_v22 = vpop.permute.xlu0 %380 }
0x2d35   :  { %2989 = vst.msk [vmem:[%s4944_s6 + $0x24] sm:$0x3] %vm67_vm0, %v381_v22 }
0x2d37   :  { %241 = vrot.lane.b32.xlu2 %v3793_v29, %s3542_s29  ;;  %v2857_v29 = vmul.f32 %v2854_v19, %v4765_v8 }
0x2d3c   :  { %v798_v43 = vpop.permute.xlu0 %797 }
0x2d3d   :  { %3013 = vst.msk [vmem:[%s4944_s6 + $0x1e] sm:$0x3] %vm67_vm0, %v798_v43 }
0x2d3f   :  { %658 = vrot.lane.b32.xlu2 %v3937_v51, %s3542_s29 }
0x2d47   :  { %1075 = vrot.lane.b32.xlu2 %v4161_v11, %s3542_s29 }
0x2d4f   :  { %1492 = vrot.lane.b32.xlu2 %v4305_v16, %s3542_s29 }
0x2d88   :  { %v2828_v1 = vpop.permute.xlu1 %2827 }
0x2d89   :  { %v2865_v27 = vpop.permute.xlu2 %2864  ;;  %v2830_v57 = vadd.f32 %v2828_v1, %v2820_v23 }
0x2d8a   :  { %v2867_v28 = vadd.f32 %v2865_v27, %v2857_v29 }
0x2d8b   :  { %3454 = vtanh.f32 %v2830_v57  ;;  %2892 = vrot.lane.b32.xlu2 %v2830_v57, %s3544_s28 }
0x2d8c   :  { %3456 = vtanh.f32 %v2867_v28 }
0x2d90   :  { %v520_v51 = vpop.permute.xlu1 %519 }
0x2d91   :  { %v3455_v36 = vpop.eup %3454  ;;  %v242_v59 = vpop.permute.xlu2 %241  ;;  %2997 = vst.msk [vmem:[%s4944_s6 + $0x22] sm:$0x3] %vm67_vm0, %v520_v51 }
0x2d92   :  { %v3457_v11 = vpop.eup %3456  ;;  %2981 = vst.msk [vmem:[%s4944_s6 + $0x26] sm:$0x3] %vm67_vm0, %v242_v59  ;;  %2833 = vrot.lane.b32.xlu0 %v3455_v36, %s3543_s27 }
0x2d93   :  { %2870 = vrot.lane.b32.xlu1 %v3457_v11, %s3543_s27  ;;  %1770 = vrot.lane.b32.xlu2 %v4481_v41, %s3542_s29 }
0x2d99   :  { %v659_v16 = vpop.permute.xlu2 %658 }
0x2d9a   :  { %3005 = vst.msk [vmem:[%s4944_s6 + $0x20] sm:$0x3] %vm67_vm0, %v659_v16  ;;  %1214 = vrot.lane.b32.xlu0 %v4209_v61, %s3542_s29 }
0x2d9b   :  { %936 = vrot.lane.b32.xlu1 %v4113_v54, %s3542_s29  ;;  %2187 = vrot.lane.b32.xlu2 %v4625_v31, %s3542_s29 }
0x2da1   :  { %v1076_v4 = vpop.permute.xlu2 %1075 }
0x2da2   :  { %3029 = vst.msk [vmem:[%s4944_s6 + $0x1a] sm:$0x3] %vm67_vm0, %v1076_v4  ;;  %2897 = vrot.lane.b32.xlu0 %v2867_v28, %s3544_s28 }
0x2da3   :  { %1353 = vrot.lane.b32.xlu1 %v4257_v15, %s3542_s29  ;;  %2604 = vrot.lane.b32.xlu2 %v4737_v5, %s3542_s29 }
0x2da9   :  { %v1493_v61 = vpop.permute.xlu2 %1492 }
0x2daa   :  { %3053 = vst.msk [vmem:[%s4944_s6 + $0x14] sm:$0x3] %vm67_vm0, %v1493_v61  ;;  %1909 = vrot.lane.b32.xlu0 %v4529_v56, %s3542_s29 }
0x2dab   :  { %1631 = vrot.lane.b32.xlu1 %v4353_v62, %s3542_s29 }
0x2db2   :  { %2326 = vrot.lane.b32.xlu0 %v4673_v48, %s3542_s29 }
0x2db3   :  { %2048 = vrot.lane.b32.xlu1 %v4577_v37, %s3542_s29 }
0x2de5   :  { %v2893_v54 = vpop.permute.xlu2 %2892 }
0x2de6   :  { %2895 = vst.msk [vmem:[#allocation8] sm:$0x3] %vm67_vm0, %v2893_v54 }
0x2ded   :  { %v1771_v15 = vpop.permute.xlu2 %1770 }
0x2dee   :  { %3069 = vst.msk [vmem:[%s4944_s6 + $0x10] sm:$0x3] %vm67_vm0, %v1771_v15 }
0x2df5   :  { %v2188_v41 = vpop.permute.xlu2 %2187 }
0x2df6   :  { %3093 = vst.msk [vmem:[%s4944_s6 + $0xa] sm:$0x3] %vm67_vm0, %v2188_v41 }
0x2dfd   :  { %v2605_v62 = vpop.permute.xlu2 %2604 }
0x2dfe   :  { %3117 = vst.msk [vmem:[%s4944_s6 + $0x4] sm:$0x3] %vm67_vm0, %v2605_v62 }
0x2e04   :  { %v2834_v56 = vpop.permute.xlu0 %2833 }
0x2e05   :  { %v2871_v37 = vpop.permute.xlu1 %2870  ;;  %v2836_v31 = vmul.f32 %v2834_v56, %v4793_v21 }
0x2e06   :  { %v2873_v48 = vmul.f32 %v2871_v37, %v2854_v19 }
0x2e07   :  { %2875 = vrot.lane.b32.xlu0 %v2836_v31, %s3542_s29 }
0x2e08   :  { %2881 = vrot.lane.b32.xlu1 %v2873_v48, %s3542_s29 }
0x2e0c   :  { %v1215_v5 = vpop.permute.xlu0 %1214 }
0x2e0d   :  { %v937_v8 = vpop.permute.xlu1 %936  ;;  %3037 = vst.msk [vmem:[%s4944_s6 + $0x18] sm:$0x3] %vm67_vm0, %v1215_v5 }
0x2e0e   :  { %3021 = vst.msk [vmem:[%s4944_s6 + $0x1c] sm:$0x3] %vm67_vm0, %v937_v8 }
0x2e0f   :  { %2743 = vrot.lane.b32.xlu0 %v4769_v32, %s3542_s29 }
0x2e10   :  { %2465 = vrot.lane.b32.xlu1 %v4705_v9, %s3542_s29 }
0x2e14   :  { %v2898_v40 = vpop.permute.xlu0 %2897 }
0x2e15   :  { %v1354_v25 = vpop.permute.xlu1 %1353  ;;  %2901 = vst.msk [vmem:[#allocation8 + $0x2] sm:$0x3] %vm67_vm0, %v2898_v40 }
0x2e16   :  { %3045 = vst.msk [vmem:[%s4944_s6 + $0x16] sm:$0x3] %vm67_vm0, %v1354_v25 }
0x2e17   :  { %2939 = dma.vmem_to_hbm [thread:$0]  %s2932_s0, 64, %s2934_s3, [#allocation9], %s3542_s29, %s3542_s29, %s3546_s9  }
0x2e1c   :  { %v1910_v9 = vpop.permute.xlu0 %1909 }
0x2e1d   :  { %v1632_v32 = vpop.permute.xlu1 %1631  ;;  %3077 = vst.msk [vmem:[%s4944_s6 + $0xe] sm:$0x3] %vm67_vm0, %v1910_v9 }
0x2e1e   :  { %3061 = vst.msk [vmem:[%s4944_s6 + $0x12] sm:$0x3] %vm67_vm0, %v1632_v32 }
0x2e24   :  { %v2327_v42 = vpop.permute.xlu0 %2326 }
0x2e25   :  { %v2049_v58 = vpop.permute.xlu1 %2048  ;;  %3101 = vst.msk [vmem:[%s4944_s6 + $0x8] sm:$0x3] %vm67_vm0, %v2327_v42 }
0x2e26   :  { %3085 = vst.msk [vmem:[%s4944_s6 + $0xc] sm:$0x3] %vm67_vm0, %v2049_v58 }
0x2e79   :  { %v2876_v44 = vpop.permute.xlu0 %2875 }
0x2e7a   :  { %v2882_v45 = vpop.permute.xlu1 %2881  ;;  %3131 = vst.msk [vmem:[%s4943_s5 + $0x26] sm:$0x3] %vm67_vm0, %v2876_v44 }
0x2e7b   :  { %2884 = vst.msk [vmem:[%s4944_s6] sm:$0x3] %vm67_vm0, %v2882_v45 }
0x2e7c   :  { %2890 = vst.msk [vmem:[#allocation6 + $0x2] sm:$0x3] %vm67_vm0, %v2882_v45 }
0x2e7d   :  { %2888 = vst.msk [vmem:[#allocation6] sm:$0x3] %vm67_vm0, %v2876_v44 }
0x2e7e   :  { %2926 = dma.vmem_to_hbm [thread:$0]  %s2919_s17, 64, %s2921_s20, [#allocation7], %s3542_s29, %s3542_s29, %s3546_s9  }
0x2e81   :  { %v2744_v10 = vpop.permute.xlu0 %2743 }
0x2e82   :  { %v2466_v12 = vpop.permute.xlu1 %2465  ;;  %3125 = vst.msk [vmem:[%s4944_s6 + $0x2] sm:$0x3] %vm67_vm0, %v2744_v10 }
0x2e83   :  { %3109 = vst.msk [vmem:[%s4944_s6 + $0x6] sm:$0x3] %vm67_vm0, %v2466_v12 }
0x2e84   :  { %3538 = dma.done.wait [#allocation7], 64  }
0x2e85   :  { %3539 = vsyncadd [#allocation7], 4294967232 }
0x2e86   :  { %3540 = dma.done.wait [#allocation9], 64  }
0x2e87   :  { %3541 = vsyncadd [#allocation9], 4294967232 }
0x2e88   :  { %2958 = vsyncpa [#allocation7], 1 }
0x2e89   :  { %2959 = vsyncpa [#allocation9], 1 }

</bundles_post_ra>
